<compile_context>
chip_gen: v7x
topology: tpu7x:2x2x1
jax: 0.10.0
libtpu: 0.0.40
codegen_flags: <defaults>
</compile_context>

<pallas_src>
import jax
import jax.numpy as jnp
from jax.experimental import pallas as pl
from jax.experimental.pallas import tpu as pltpu

EPS = 1e-5  # nn.GroupNorm default eps


# ---------------------------------------------------------------------------
# Fused Block kernel (factory bakes in static shapes and the shortcut variant)
# ---------------------------------------------------------------------------
def _make_block_kernel(H, W, Cin, Cout, use_shortcut):
    HW = H * W

    def body(x_ref, gnw_ref, gnb_ref, w1_ref, t_ref, pw_ref, pb_ref,
             w2_ref, ws_ref, bs_ref, o_ref, xpad_ref, hpad_ref):
        # ---- GroupNorm(num_groups=1) + swish, f32 on VPU/EUP ----------------
        x = x_ref[0]                                  # (H, W, Cin) f32
        mean = jnp.mean(x)
        xc = x - mean
        var = jnp.mean(xc * xc)                       # biased var (torch GN)
        y = xc * jax.lax.rsqrt(var + EPS)
        y = y * gnw_ref[0, 0] + gnb_ref[0, 0]         # per-channel affine
        a = y * jax.nn.sigmoid(y)                     # swish

        # ---- zero-padded halo in VMEM scratch (in-kernel "im2col") ----------
        xpad_ref[...] = jnp.zeros(xpad_ref.shape, xpad_ref.dtype)
        xpad_ref[1:H + 1, 1:W + 1, :] = a

        # ---- conv1: 9 shifted-tap matmuls, bf16 operands, f32 accumulate ----
        acc = jnp.zeros((HW, Cout), jnp.float32)
        for ky in range(3):
            for kx in range(3):
                xs = xpad_ref[ky:ky + H, kx:kx + W, :].reshape(HW, Cin)
                acc = acc + jnp.dot(xs.astype(w1_ref.dtype),
                                    w1_ref[ky * 3 + kx],
                                    preferred_element_type=jnp.float32)

        # ---- epilogue: + swish(proj(t)) broadcast over pixels, then swish ---
        p = jnp.dot(t_ref[0], pw_ref[...],
                    preferred_element_type=jnp.float32) + pb_ref[...]   # (1, Cout)
        p = p * jax.nn.sigmoid(p)
        h = acc + p
        h = h * jax.nn.sigmoid(h)                     # (HW, Cout) f32

        # ---- conv2 over the re-padded activation ----------------------------
        hpad_ref[...] = jnp.zeros(hpad_ref.shape, hpad_ref.dtype)
        hpad_ref[1:H + 1, 1:W + 1, :] = h.reshape(H, W, Cout)

        acc2 = jnp.zeros((HW, Cout), jnp.float32)
        for ky in range(3):
            for kx in range(3):
                hs = hpad_ref[ky:ky + H, kx:kx + W, :].reshape(HW, Cout)
                acc2 = acc2 + jnp.dot(hs.astype(w2_ref.dtype),
                                      w2_ref[ky * 3 + kx],
                                      preferred_element_type=jnp.float32)

        # ---- residual: 1x1-conv shortcut (Cin != Cout) or identity ----------
        if use_shortcut:
            xs0 = x_ref[0].reshape(HW, Cin)
            res = jnp.dot(xs0.astype(ws_ref.dtype), ws_ref[...],
                          preferred_element_type=jnp.float32) + bs_ref[...]
        else:
            res = x_ref[0].reshape(HW, Cout)

        out = acc2 + res
        o_ref[0] = out.reshape(H, W, Cout).astype(o_ref.dtype)

    if use_shortcut:
        return body

    def body_identity(x_ref, gnw_ref, gnb_ref, w1_ref, t_ref, pw_ref, pb_ref,
                      w2_ref, o_ref, xpad_ref, hpad_ref):
        body(x_ref, gnw_ref, gnb_ref, w1_ref, t_ref, pw_ref, pb_ref,
             w2_ref, None, None, o_ref, xpad_ref, hpad_ref)

    return body_identity


# ---------------------------------------------------------------------------
# Wrapper: NCHW (PyTorch) interface -> single fused pallas_call
# ---------------------------------------------------------------------------
def block_forward(x, t, params, *, compute_dtype=jnp.bfloat16):
    B, Cin, H, W = x.shape
    Cout = params["conv1_w"].shape[0]
    emb_dim = t.shape[1]
    use_shortcut = (Cin != Cout)

    # Channels-last so C sits on the 128-lane axis inside the kernel.
    x_nhwc = jnp.transpose(x.astype(jnp.float32), (0, 2, 3, 1))
    t3 = t.astype(jnp.float32).reshape(B, 1, emb_dim)
    gnw = params["norm1_w"].astype(jnp.float32).reshape(1, 1, 1, Cin)
    gnb = params["norm1_b"].astype(jnp.float32).reshape(1, 1, 1, Cin)
    # Conv weights -> (tap, Cin, Cout) with tap = ky*3 + kx, bf16 MXU operands.
    w1 = jnp.transpose(params["conv1_w"], (2, 3, 1, 0)).reshape(9, Cin, Cout)
    w1 = w1.astype(compute_dtype)
    w2 = jnp.transpose(params["conv2_w"], (2, 3, 1, 0)).reshape(9, Cout, Cout)
    w2 = w2.astype(compute_dtype)
    pw = params["proj_w"].astype(jnp.float32).T                 # (emb_dim, Cout)
    pb = params["proj_b"].astype(jnp.float32).reshape(1, Cout)

    in_specs = [
        pl.BlockSpec((1, H, W, Cin), lambda b: (b, 0, 0, 0)),       # x (per batch)
        pl.BlockSpec((1, 1, 1, Cin), lambda b: (0, 0, 0, 0)),       # gn weight
        pl.BlockSpec((1, 1, 1, Cin), lambda b: (0, 0, 0, 0)),       # gn bias
        pl.BlockSpec((9, Cin, Cout), lambda b: (0, 0, 0)),          # conv1 taps
        pl.BlockSpec((1, 1, emb_dim), lambda b: (b, 0, 0)),         # t (per batch)
        pl.BlockSpec((emb_dim, Cout), lambda b: (0, 0)),            # proj W
        pl.BlockSpec((1, Cout), lambda b: (0, 0)),                  # proj b
        pl.BlockSpec((9, Cout, Cout), lambda b: (0, 0, 0)),         # conv2 taps
    ]
    args = [x_nhwc, gnw, gnb, w1, t3, pw, pb, w2]
    if use_shortcut:
        ws = jnp.transpose(params["short_w"].reshape(Cout, Cin))    # (Cin, Cout)
        ws = ws.astype(compute_dtype)
        bs = params["short_b"].astype(jnp.float32).reshape(1, Cout)
        in_specs += [pl.BlockSpec((Cin, Cout), lambda b: (0, 0)),
                     pl.BlockSpec((1, Cout), lambda b: (0, 0))]
        args += [ws, bs]

    out_nhwc = pl.pallas_call(
        _make_block_kernel(H, W, Cin, Cout, use_shortcut),
        grid=(B,),
        in_specs=in_specs,
        out_specs=pl.BlockSpec((1, H, W, Cout), lambda b: (b, 0, 0, 0)),
        out_shape=jax.ShapeDtypeStruct((B, H, W, Cout), jnp.float32),
        scratch_shapes=[pltpu.VMEM((H + 2, W + 2, Cin), jnp.float32),   # padded GN+swish(x)
                        pltpu.VMEM((H + 2, W + 2, Cout), jnp.float32)], # padded conv1 activation
        compiler_params=pltpu.CompilerParams(
            dimension_semantics=("parallel",),           # batches across TCs (v7x megacore)
            vmem_limit_bytes=32 * 1024 * 1024),
    )(*args)

    return jnp.transpose(out_nhwc, (0, 3, 1, 2))          # back to NCHW


# ---------------------------------------------------------------------------
# Pure-JAX reference (matches the PyTorch Block forward) and params
# ---------------------------------------------------------------------------
def block_reference(x, t, params):
    Cin = x.shape[1]
    Cout = params["conv1_w"].shape[0]
    dn = ("NCHW", "OIHW", "NCHW")
    mean = jnp.mean(x, axis=(1, 2, 3), keepdims=True)
    var = jnp.mean((x - mean) ** 2, axis=(1, 2, 3), keepdims=True)
    h = (x - mean) / jnp.sqrt(var + EPS)
    h = h * params["norm1_w"].reshape(1, Cin, 1, 1) + params["norm1_b"].reshape(1, Cin, 1, 1)
    h = h * jax.nn.sigmoid(h)
    h = jax.lax.conv_general_dilated(h, params["conv1_w"], (1, 1),
                                     [(1, 1), (1, 1)], dimension_numbers=dn)
    p = t @ params["proj_w"].T + params["proj_b"]
    p = p * jax.nn.sigmoid(p)
    h = h + p[:, :, None, None]
    h = h * jax.nn.sigmoid(h)
    h = jax.lax.conv_general_dilated(h, params["conv2_w"], (1, 1),
                                     [(1, 1), (1, 1)], dimension_numbers=dn)
    if Cin != Cout:
        x = jax.lax.conv_general_dilated(x, params["short_w"], (1, 1),
                                         [(0, 0), (0, 0)], dimension_numbers=dn)
        x = x + params["short_b"].reshape(1, Cout, 1, 1)
    return x + h


def init_params(key, in_channels, out_channels, emb_dim=256):
    ks = jax.random.split(key, 8)

    def rnd(k, shape, scale):
        return scale * jax.random.normal(k, shape, jnp.float32)

    return {
        "norm1_w": 1.0 + rnd(ks[0], (in_channels,), 0.1),
        "norm1_b": rnd(ks[1], (in_channels,), 0.1),
        "conv1_w": rnd(ks[2], (out_channels, in_channels, 3, 3), 0.1),
        "proj_w": rnd(ks[3], (out_channels, emb_dim), 0.05),
        "proj_b": rnd(ks[4], (out_channels,), 0.05),
        "conv2_w": rnd(ks[5], (out_channels, out_channels, 3, 3), 0.1),
        "short_w": rnd(ks[6], (out_channels, in_channels, 1, 1), 0.1),
        "short_b": rnd(ks[7], (out_channels,), 0.05),
    }


if __name__ == "__main__":
    key = jax.random.PRNGKey(0)
    kx, kt, kp = jax.random.split(key, 3)

    B, Cin, H, W = 2, 4, 16, 16
    Cout, emb_dim = 8, 256          # Cin != Cout -> exercises the 1x1 shortcut

    x = jax.random.normal(kx, (B, Cin, H, W), jnp.float32)
    t = jax.random.normal(kt, (B, emb_dim), jnp.float32)
    params = init_params(kp, Cin, Cout, emb_dim)

    fwd = jax.jit(block_forward)
    out = jax.block_until_ready(fwd(x, t, params))
    assert out.shape == (B, Cout, H, W)
    assert out.dtype == jnp.float32

    ref = jax.block_until_ready(block_reference(x, t, params))
    max_err = float(jnp.max(jnp.abs(out - ref)))
    assert max_err < 5e-2, f"mismatch vs reference: max abs err {max_err}"

    print("KERNEL_OK")
</pallas_src>

<mosaic_0001>
module attributes {stable_mosaic.version = 11 : i64} {
  func.func @body(%arg0: i32, %arg1: memref<1x16x16x4xf32, #tpu.memory_space<vmem>>, %arg2: memref<1x1x1x4xf32, #tpu.memory_space<vmem>>, %arg3: memref<1x1x1x4xf32, #tpu.memory_space<vmem>>, %arg4: memref<9x4x8xbf16, #tpu.memory_space<vmem>>, %arg5: memref<1x1x256xf32, #tpu.memory_space<vmem>>, %arg6: memref<256x8xf32, #tpu.memory_space<vmem>>, %arg7: memref<1x8xf32, #tpu.memory_space<vmem>>, %arg8: memref<9x8x8xbf16, #tpu.memory_space<vmem>>, %arg9: memref<4x8xbf16, #tpu.memory_space<vmem>>, %arg10: memref<1x8xf32, #tpu.memory_space<vmem>>, %arg11: memref<1x16x16x8xf32, #tpu.memory_space<vmem>>, %arg12: memref<18x18x4xf32, #tpu.memory_space<vmem>>, %arg13: memref<18x18x8xf32, #tpu.memory_space<vmem>>) attributes {dimension_semantics = [#tpu.dimension_semantics<parallel>], iteration_bounds = array<i64: 2>, scalar_prefetch = 0 : i64, scratch_operands = 2 : i64, tpu.core_type = #tpu.core_type<tc>, window_params = [{transform_indices = @transform_0, window_bounds = array<i64: 1, 16, 16, 4>}, {pipeline_mode = #tpu.pipeline_mode<synchronous>, transform_indices = @transform_1, window_bounds = array<i64: 1, 1, 1, 4>}, {pipeline_mode = #tpu.pipeline_mode<synchronous>, transform_indices = @transform_2, window_bounds = array<i64: 1, 1, 1, 4>}, {pipeline_mode = #tpu.pipeline_mode<synchronous>, transform_indices = @transform_3, window_bounds = array<i64: 9, 4, 8>}, {transform_indices = @transform_4, window_bounds = array<i64: 1, 1, 256>}, {pipeline_mode = #tpu.pipeline_mode<synchronous>, transform_indices = @transform_5, window_bounds = array<i64: 256, 8>}, {pipeline_mode = #tpu.pipeline_mode<synchronous>, transform_indices = @transform_6, window_bounds = array<i64: 1, 8>}, {pipeline_mode = #tpu.pipeline_mode<synchronous>, transform_indices = @transform_7, window_bounds = array<i64: 9, 8, 8>}, {pipeline_mode = #tpu.pipeline_mode<synchronous>, transform_indices = @transform_8, window_bounds = array<i64: 4, 8>}, {pipeline_mode = #tpu.pipeline_mode<synchronous>, transform_indices = @transform_9, window_bounds = array<i64: 1, 8>}, {transform_indices = @transform_10, window_bounds = array<i64: 1, 16, 16, 8>}]} {
    %c0 = arith.constant 0 : index
    %c0_0 = arith.constant 0 : index
    %c0_1 = arith.constant 0 : index
    %c0_2 = arith.constant 0 : index
    %0 = vector.load %arg1[%c0, %c0_0, %c0_1, %c0_2] : memref<1x16x16x4xf32, #tpu.memory_space<vmem>>, vector<1x16x16x4xf32>
    %1 = vector.shape_cast %0 : vector<1x16x16x4xf32> to vector<16x16x4xf32>
    %2 = vector.shape_cast %1 : vector<16x16x4xf32> to vector<1x16x16x4xf32>
    %cst = arith.constant dense<0.000000e+00> : vector<1xf32>
    %3 = vector.multi_reduction <add>, %2, %cst [1, 2, 3] : vector<1x16x16x4xf32> to vector<1xf32>
    %4 = vector.shape_cast %3 : vector<1xf32> to vector<1x1x1x1xf32>
    %5 = vector.extract %4[0, 0, 0, 0] : f32 from vector<1x1x1x1xf32>
    %cst_3 = arith.constant 1.024000e+03 : f32
    %6 = arith.divf %5, %cst_3 : f32
    %7 = vector.broadcast %6 : f32 to vector<16x16x4xf32>
    %8 = arith.subf %1, %7 : vector<16x16x4xf32>
    %9 = arith.mulf %8, %8 : vector<16x16x4xf32>
    %10 = vector.shape_cast %9 : vector<16x16x4xf32> to vector<1x16x16x4xf32>
    %cst_4 = arith.constant dense<0.000000e+00> : vector<1xf32>
    %11 = vector.multi_reduction <add>, %10, %cst_4 [1, 2, 3] : vector<1x16x16x4xf32> to vector<1xf32>
    %12 = vector.shape_cast %11 : vector<1xf32> to vector<1x1x1x1xf32>
    %13 = vector.extract %12[0, 0, 0, 0] : f32 from vector<1x1x1x1xf32>
    %cst_5 = arith.constant 1.024000e+03 : f32
    %14 = arith.divf %13, %cst_5 : f32
    %cst_6 = arith.constant 9.99999974E-6 : f32
    %15 = arith.addf %14, %cst_6 : f32
    %16 = math.rsqrt %15 : f32
    %17 = vector.broadcast %16 : f32 to vector<16x16x4xf32>
    %18 = arith.mulf %8, %17 : vector<16x16x4xf32>
    %c0_7 = arith.constant 0 : index
    %c0_8 = arith.constant 0 : index
    %c0_9 = arith.constant 0 : index
    %c0_10 = arith.constant 0 : index
    %19 = vector.load %arg2[%c0_7, %c0_8, %c0_9, %c0_10] : memref<1x1x1x4xf32, #tpu.memory_space<vmem>>, vector<1x1x1x4xf32>
    %20 = vector.shape_cast %19 : vector<1x1x1x4xf32> to vector<1x4xf32>
    %21 = vector.shape_cast %20 : vector<1x4xf32> to vector<1x1x4xf32>
    %22 = vector.broadcast %21 : vector<1x1x4xf32> to vector<16x16x4xf32>
    %23 = arith.mulf %18, %22 : vector<16x16x4xf32>
    %c0_11 = arith.constant 0 : index
    %c0_12 = arith.constant 0 : index
    %c0_13 = arith.constant 0 : index
    %c0_14 = arith.constant 0 : index
    %24 = vector.load %arg3[%c0_11, %c0_12, %c0_13, %c0_14] : memref<1x1x1x4xf32, #tpu.memory_space<vmem>>, vector<1x1x1x4xf32>
    %25 = vector.shape_cast %24 : vector<1x1x1x4xf32> to vector<1x4xf32>
    %26 = vector.shape_cast %25 : vector<1x4xf32> to vector<1x1x4xf32>
    %27 = vector.broadcast %26 : vector<1x1x4xf32> to vector<16x16x4xf32>
    %28 = arith.addf %23, %27 : vector<16x16x4xf32>
    %29 = arith.negf %28 : vector<16x16x4xf32>
    %30 = math.exp %29 : vector<16x16x4xf32>
    %cst_15 = arith.constant 1.000000e+00 : f32
    %31 = vector.broadcast %cst_15 : f32 to vector<16x16x4xf32>
    %32 = arith.addf %31, %30 : vector<16x16x4xf32>
    %33 = arith.divf %31, %32 : vector<16x16x4xf32>
    %34 = arith.mulf %28, %33 : vector<16x16x4xf32>
    %cst_16 = arith.constant 0.000000e+00 : f32
    %35 = vector.broadcast %cst_16 : f32 to vector<18x18x4xf32>
    %c0_17 = arith.constant 0 : index
    %c0_18 = arith.constant 0 : index
    %c0_19 = arith.constant 0 : index
    %36 = vector.load %arg12[%c0_17, %c0_18, %c0_19] : memref<18x18x4xf32, #tpu.memory_space<vmem>>, vector<18x18x4xf32>
    tpu.vector_store %arg12[%c0_17, %c0_18, %c0_19], %35 {strides = array<i32>} : memref<18x18x4xf32, #tpu.memory_space<vmem>>, vector<18x18x4xf32>,
    %c1 = arith.constant 1 : index
    %c1_20 = arith.constant 1 : index
    %c0_21 = arith.constant 0 : index
    %37 = vector.load %arg12[%c1, %c1_20, %c0_21] : memref<18x18x4xf32, #tpu.memory_space<vmem>>, vector<16x16x4xf32>
    tpu.vector_store %arg12[%c1, %c1_20, %c0_21], %34 {strides = array<i32>} : memref<18x18x4xf32, #tpu.memory_space<vmem>>, vector<16x16x4xf32>,
    %cst_22 = arith.constant 0.000000e+00 : f32
    %38 = vector.broadcast %cst_22 : f32 to vector<256x8xf32>
    %c0_23 = arith.constant 0 : index
    %c0_24 = arith.constant 0 : index
    %c0_25 = arith.constant 0 : index
    %39 = vector.load %arg12[%c0_23, %c0_24, %c0_25] : memref<18x18x4xf32, #tpu.memory_space<vmem>>, vector<16x16x4xf32>
    %40 = vector.shape_cast %39 : vector<16x16x4xf32> to vector<256x4xf32>
    %41 = arith.truncf %40 : vector<256x4xf32> to vector<256x4xbf16>
    %c0_26 = arith.constant 0 : index
    %c0_27 = arith.constant 0 : index
    %c0_28 = arith.constant 0 : index
    %42 = vector.load %arg4[%c0_26, %c0_27, %c0_28] : memref<9x4x8xbf16, #tpu.memory_space<vmem>>, vector<1x4x8xbf16>
    %43 = vector.shape_cast %42 : vector<1x4x8xbf16> to vector<4x8xbf16>
    %cst_29 = arith.constant dense<0.000000e+00> : vector<256x8xf32>
    %44 = tpu.matmul %41, %43, %cst_29 {dimension_numbers = #tpu.dot_dimension_numbers<[1], [0], [0], [1], [0, 0, 1, 1], [], []>} : vector<256x4xbf16>, vector<4x8xbf16>, vector<256x8xf32> -> vector<256x8xf32>
    %45 = arith.addf %38, %44 : vector<256x8xf32>
    %c0_30 = arith.constant 0 : index
    %c1_31 = arith.constant 1 : index
    %c0_32 = arith.constant 0 : index
    %46 = vector.load %arg12[%c0_30, %c1_31, %c0_32] : memref<18x18x4xf32, #tpu.memory_space<vmem>>, vector<16x16x4xf32>
    %47 = vector.shape_cast %46 : vector<16x16x4xf32> to vector<256x4xf32>
    %48 = arith.truncf %47 : vector<256x4xf32> to vector<256x4xbf16>
    %c1_33 = arith.constant 1 : index
    %c0_34 = arith.constant 0 : index
    %c0_35 = arith.constant 0 : index
    %49 = vector.load %arg4[%c1_33, %c0_34, %c0_35] : memref<9x4x8xbf16, #tpu.memory_space<vmem>>, vector<1x4x8xbf16>
    %50 = vector.shape_cast %49 : vector<1x4x8xbf16> to vector<4x8xbf16>
    %cst_36 = arith.constant dense<0.000000e+00> : vector<256x8xf32>
    %51 = tpu.matmul %48, %50, %cst_36 {dimension_numbers = #tpu.dot_dimension_numbers<[1], [0], [0], [1], [0, 0, 1, 1], [], []>} : vector<256x4xbf16>, vector<4x8xbf16>, vector<256x8xf32> -> vector<256x8xf32>
    %52 = arith.addf %45, %51 : vector<256x8xf32>
    %c0_37 = arith.constant 0 : index
    %c2 = arith.constant 2 : index
    %c0_38 = arith.constant 0 : index
    %53 = vector.load %arg12[%c0_37, %c2, %c0_38] : memref<18x18x4xf32, #tpu.memory_space<vmem>>, vector<16x16x4xf32>
    %54 = vector.shape_cast %53 : vector<16x16x4xf32> to vector<256x4xf32>
    %55 = arith.truncf %54 : vector<256x4xf32> to vector<256x4xbf16>
    %c2_39 = arith.constant 2 : index
    %c0_40 = arith.constant 0 : index
    %c0_41 = arith.constant 0 : index
    %56 = vector.load %arg4[%c2_39, %c0_40, %c0_41] : memref<9x4x8xbf16, #tpu.memory_space<vmem>>, vector<1x4x8xbf16>
    %57 = vector.shape_cast %56 : vector<1x4x8xbf16> to vector<4x8xbf16>
    %cst_42 = arith.constant dense<0.000000e+00> : vector<256x8xf32>
    %58 = tpu.matmul %55, %57, %cst_42 {dimension_numbers = #tpu.dot_dimension_numbers<[1], [0], [0], [1], [0, 0, 1, 1], [], []>} : vector<256x4xbf16>, vector<4x8xbf16>, vector<256x8xf32> -> vector<256x8xf32>
    %59 = arith.addf %52, %58 : vector<256x8xf32>
    %c1_43 = arith.constant 1 : index
    %c0_44 = arith.constant 0 : index
    %c0_45 = arith.constant 0 : index
    %60 = vector.load %arg12[%c1_43, %c0_44, %c0_45] : memref<18x18x4xf32, #tpu.memory_space<vmem>>, vector<16x16x4xf32>
    %61 = vector.shape_cast %60 : vector<16x16x4xf32> to vector<256x4xf32>
    %62 = arith.truncf %61 : vector<256x4xf32> to vector<256x4xbf16>
    %c3 = arith.constant 3 : index
    %c0_46 = arith.constant 0 : index
    %c0_47 = arith.constant 0 : index
    %63 = vector.load %arg4[%c3, %c0_46, %c0_47] : memref<9x4x8xbf16, #tpu.memory_space<vmem>>, vector<1x4x8xbf16>
    %64 = vector.shape_cast %63 : vector<1x4x8xbf16> to vector<4x8xbf16>
    %cst_48 = arith.constant dense<0.000000e+00> : vector<256x8xf32>
    %65 = tpu.matmul %62, %64, %cst_48 {dimension_numbers = #tpu.dot_dimension_numbers<[1], [0], [0], [1], [0, 0, 1, 1], [], []>} : vector<256x4xbf16>, vector<4x8xbf16>, vector<256x8xf32> -> vector<256x8xf32>
    %66 = arith.addf %59, %65 : vector<256x8xf32>
    %c1_49 = arith.constant 1 : index
    %c1_50 = arith.constant 1 : index
    %c0_51 = arith.constant 0 : index
    %67 = vector.load %arg12[%c1_49, %c1_50, %c0_51] : memref<18x18x4xf32, #tpu.memory_space<vmem>>, vector<16x16x4xf32>
    %68 = vector.shape_cast %67 : vector<16x16x4xf32> to vector<256x4xf32>
    %69 = arith.truncf %68 : vector<256x4xf32> to vector<256x4xbf16>
    %c4 = arith.constant 4 : index
    %c0_52 = arith.constant 0 : index
    %c0_53 = arith.constant 0 : index
    %70 = vector.load %arg4[%c4, %c0_52, %c0_53] : memref<9x4x8xbf16, #tpu.memory_space<vmem>>, vector<1x4x8xbf16>
    %71 = vector.shape_cast %70 : vector<1x4x8xbf16> to vector<4x8xbf16>
    %cst_54 = arith.constant dense<0.000000e+00> : vector<256x8xf32>
    %72 = tpu.matmul %69, %71, %cst_54 {dimension_numbers = #tpu.dot_dimension_numbers<[1], [0], [0], [1], [0, 0, 1, 1], [], []>} : vector<256x4xbf16>, vector<4x8xbf16>, vector<256x8xf32> -> vector<256x8xf32>
    %73 = arith.addf %66, %72 : vector<256x8xf32>
    %c1_55 = arith.constant 1 : index
    %c2_56 = arith.constant 2 : index
    %c0_57 = arith.constant 0 : index
    %74 = vector.load %arg12[%c1_55, %c2_56, %c0_57] : memref<18x18x4xf32, #tpu.memory_space<vmem>>, vector<16x16x4xf32>
    %75 = vector.shape_cast %74 : vector<16x16x4xf32> to vector<256x4xf32>
    %76 = arith.truncf %75 : vector<256x4xf32> to vector<256x4xbf16>
    %c5 = arith.constant 5 : index
    %c0_58 = arith.constant 0 : index
    %c0_59 = arith.constant 0 : index
    %77 = vector.load %arg4[%c5, %c0_58, %c0_59] : memref<9x4x8xbf16, #tpu.memory_space<vmem>>, vector<1x4x8xbf16>
    %78 = vector.shape_cast %77 : vector<1x4x8xbf16> to vector<4x8xbf16>
    %cst_60 = arith.constant dense<0.000000e+00> : vector<256x8xf32>
    %79 = tpu.matmul %76, %78, %cst_60 {dimension_numbers = #tpu.dot_dimension_numbers<[1], [0], [0], [1], [0, 0, 1, 1], [], []>} : vector<256x4xbf16>, vector<4x8xbf16>, vector<256x8xf32> -> vector<256x8xf32>
    %80 = arith.addf %73, %79 : vector<256x8xf32>
    %c2_61 = arith.constant 2 : index
    %c0_62 = arith.constant 0 : index
    %c0_63 = arith.constant 0 : index
    %81 = vector.load %arg12[%c2_61, %c0_62, %c0_63] : memref<18x18x4xf32, #tpu.memory_space<vmem>>, vector<16x16x4xf32>
    %82 = vector.shape_cast %81 : vector<16x16x4xf32> to vector<256x4xf32>
    %83 = arith.truncf %82 : vector<256x4xf32> to vector<256x4xbf16>
    %c6 = arith.constant 6 : index
    %c0_64 = arith.constant 0 : index
    %c0_65 = arith.constant 0 : index
    %84 = vector.load %arg4[%c6, %c0_64, %c0_65] : memref<9x4x8xbf16, #tpu.memory_space<vmem>>, vector<1x4x8xbf16>
    %85 = vector.shape_cast %84 : vector<1x4x8xbf16> to vector<4x8xbf16>
    %cst_66 = arith.constant dense<0.000000e+00> : vector<256x8xf32>
    %86 = tpu.matmul %83, %85, %cst_66 {dimension_numbers = #tpu.dot_dimension_numbers<[1], [0], [0], [1], [0, 0, 1, 1], [], []>} : vector<256x4xbf16>, vector<4x8xbf16>, vector<256x8xf32> -> vector<256x8xf32>
    %87 = arith.addf %80, %86 : vector<256x8xf32>
    %c2_67 = arith.constant 2 : index
    %c1_68 = arith.constant 1 : index
    %c0_69 = arith.constant 0 : index
    %88 = vector.load %arg12[%c2_67, %c1_68, %c0_69] : memref<18x18x4xf32, #tpu.memory_space<vmem>>, vector<16x16x4xf32>
    %89 = vector.shape_cast %88 : vector<16x16x4xf32> to vector<256x4xf32>
    %90 = arith.truncf %89 : vector<256x4xf32> to vector<256x4xbf16>
    %c7 = arith.constant 7 : index
    %c0_70 = arith.constant 0 : index
    %c0_71 = arith.constant 0 : index
    %91 = vector.load %arg4[%c7, %c0_70, %c0_71] : memref<9x4x8xbf16, #tpu.memory_space<vmem>>, vector<1x4x8xbf16>
    %92 = vector.shape_cast %91 : vector<1x4x8xbf16> to vector<4x8xbf16>
    %cst_72 = arith.constant dense<0.000000e+00> : vector<256x8xf32>
    %93 = tpu.matmul %90, %92, %cst_72 {dimension_numbers = #tpu.dot_dimension_numbers<[1], [0], [0], [1], [0, 0, 1, 1], [], []>} : vector<256x4xbf16>, vector<4x8xbf16>, vector<256x8xf32> -> vector<256x8xf32>
    %94 = arith.addf %87, %93 : vector<256x8xf32>
    %c2_73 = arith.constant 2 : index
    %c2_74 = arith.constant 2 : index
    %c0_75 = arith.constant 0 : index
    %95 = vector.load %arg12[%c2_73, %c2_74, %c0_75] : memref<18x18x4xf32, #tpu.memory_space<vmem>>, vector<16x16x4xf32>
    %96 = vector.shape_cast %95 : vector<16x16x4xf32> to vector<256x4xf32>
    %97 = arith.truncf %96 : vector<256x4xf32> to vector<256x4xbf16>
    %c8 = arith.constant 8 : index
    %c0_76 = arith.constant 0 : index
    %c0_77 = arith.constant 0 : index
    %98 = vector.load %arg4[%c8, %c0_76, %c0_77] : memref<9x4x8xbf16, #tpu.memory_space<vmem>>, vector<1x4x8xbf16>
    %99 = vector.shape_cast %98 : vector<1x4x8xbf16> to vector<4x8xbf16>
    %cst_78 = arith.constant dense<0.000000e+00> : vector<256x8xf32>
    %100 = tpu.matmul %97, %99, %cst_78 {dimension_numbers = #tpu.dot_dimension_numbers<[1], [0], [0], [1], [0, 0, 1, 1], [], []>} : vector<256x4xbf16>, vector<4x8xbf16>, vector<256x8xf32> -> vector<256x8xf32>
    %101 = arith.addf %94, %100 : vector<256x8xf32>
    %c0_79 = arith.constant 0 : index
    %c0_80 = arith.constant 0 : index
    %c0_81 = arith.constant 0 : index
    %102 = vector.load %arg5[%c0_79, %c0_80, %c0_81] : memref<1x1x256xf32, #tpu.memory_space<vmem>>, vector<1x1x256xf32>
    %103 = vector.shape_cast %102 : vector<1x1x256xf32> to vector<1x256xf32>
    %c0_82 = arith.constant 0 : index
    %c0_83 = arith.constant 0 : index
    %104 = vector.load %arg6[%c0_82, %c0_83] : memref<256x8xf32, #tpu.memory_space<vmem>>, vector<256x8xf32>
    %cst_84 = arith.constant dense<0.000000e+00> : vector<1x8xf32>
    %105 = tpu.matmul %103, %104, %cst_84 {dimension_numbers = #tpu.dot_dimension_numbers<[1], [0], [0], [1], [0, 0, 1, 1], [], []>} : vector<1x256xf32>, vector<256x8xf32>, vector<1x8xf32> -> vector<1x8xf32>
    %c0_85 = arith.constant 0 : index
    %c0_86 = arith.constant 0 : index
    %106 = vector.load %arg7[%c0_85, %c0_86] : memref<1x8xf32, #tpu.memory_space<vmem>>, vector<1x8xf32>
    %107 = arith.addf %105, %106 : vector<1x8xf32>
    %108 = arith.negf %107 : vector<1x8xf32>
    %109 = math.exp %108 : vector<1x8xf32>
    %cst_87 = arith.constant 1.000000e+00 : f32
    %110 = vector.broadcast %cst_87 : f32 to vector<1x8xf32>
    %111 = arith.addf %110, %109 : vector<1x8xf32>
    %112 = arith.divf %110, %111 : vector<1x8xf32>
    %113 = arith.mulf %107, %112 : vector<1x8xf32>
    %114 = vector.broadcast %113 : vector<1x8xf32> to vector<256x8xf32>
    %115 = arith.addf %101, %114 : vector<256x8xf32>
    %116 = arith.negf %115 : vector<256x8xf32>
    %117 = math.exp %116 : vector<256x8xf32>
    %cst_88 = arith.constant 1.000000e+00 : f32
    %118 = vector.broadcast %cst_88 : f32 to vector<256x8xf32>
    %119 = arith.addf %118, %117 : vector<256x8xf32>
    %120 = arith.divf %118, %119 : vector<256x8xf32>
    %121 = arith.mulf %115, %120 : vector<256x8xf32>
    %cst_89 = arith.constant 0.000000e+00 : f32
    %122 = vector.broadcast %cst_89 : f32 to vector<18x18x8xf32>
    %c0_90 = arith.constant 0 : index
    %c0_91 = arith.constant 0 : index
    %c0_92 = arith.constant 0 : index
    %123 = vector.load %arg13[%c0_90, %c0_91, %c0_92] : memref<18x18x8xf32, #tpu.memory_space<vmem>>, vector<18x18x8xf32>
    tpu.vector_store %arg13[%c0_90, %c0_91, %c0_92], %122 {strides = array<i32>} : memref<18x18x8xf32, #tpu.memory_space<vmem>>, vector<18x18x8xf32>,
    %124 = vector.shape_cast %121 : vector<256x8xf32> to vector<16x16x8xf32>
    %c1_93 = arith.constant 1 : index
    %c1_94 = arith.constant 1 : index
    %c0_95 = arith.constant 0 : index
    %125 = vector.load %arg13[%c1_93, %c1_94, %c0_95] : memref<18x18x8xf32, #tpu.memory_space<vmem>>, vector<16x16x8xf32>
    tpu.vector_store %arg13[%c1_93, %c1_94, %c0_95], %124 {strides = array<i32>} : memref<18x18x8xf32, #tpu.memory_space<vmem>>, vector<16x16x8xf32>,
    %cst_96 = arith.constant 0.000000e+00 : f32
    %126 = vector.broadcast %cst_96 : f32 to vector<256x8xf32>
    %c0_97 = arith.constant 0 : index
    %c0_98 = arith.constant 0 : index
    %c0_99 = arith.constant 0 : index
    %127 = vector.load %arg13[%c0_97, %c0_98, %c0_99] : memref<18x18x8xf32, #tpu.memory_space<vmem>>, vector<16x16x8xf32>
    %128 = vector.shape_cast %127 : vector<16x16x8xf32> to vector<256x8xf32>
    %129 = arith.truncf %128 : vector<256x8xf32> to vector<256x8xbf16>
    %c0_100 = arith.constant 0 : index
    %c0_101 = arith.constant 0 : index
    %c0_102 = arith.constant 0 : index
    %130 = vector.load %arg8[%c0_100, %c0_101, %c0_102] : memref<9x8x8xbf16, #tpu.memory_space<vmem>>, vector<1x8x8xbf16>
    %131 = vector.shape_cast %130 : vector<1x8x8xbf16> to vector<8x8xbf16>
    %cst_103 = arith.constant dense<0.000000e+00> : vector<256x8xf32>
    %132 = tpu.matmul %129, %131, %cst_103 {dimension_numbers = #tpu.dot_dimension_numbers<[1], [0], [0], [1], [0, 0, 1, 1], [], []>} : vector<256x8xbf16>, vector<8x8xbf16>, vector<256x8xf32> -> vector<256x8xf32>
    %133 = arith.addf %126, %132 : vector<256x8xf32>
    %c0_104 = arith.constant 0 : index
    %c1_105 = arith.constant 1 : index
    %c0_106 = arith.constant 0 : index
    %134 = vector.load %arg13[%c0_104, %c1_105, %c0_106] : memref<18x18x8xf32, #tpu.memory_space<vmem>>, vector<16x16x8xf32>
    %135 = vector.shape_cast %134 : vector<16x16x8xf32> to vector<256x8xf32>
    %136 = arith.truncf %135 : vector<256x8xf32> to vector<256x8xbf16>
    %c1_107 = arith.constant 1 : index
    %c0_108 = arith.constant 0 : index
    %c0_109 = arith.constant 0 : index
    %137 = vector.load %arg8[%c1_107, %c0_108, %c0_109] : memref<9x8x8xbf16, #tpu.memory_space<vmem>>, vector<1x8x8xbf16>
    %138 = vector.shape_cast %137 : vector<1x8x8xbf16> to vector<8x8xbf16>
    %cst_110 = arith.constant dense<0.000000e+00> : vector<256x8xf32>
    %139 = tpu.matmul %136, %138, %cst_110 {dimension_numbers = #tpu.dot_dimension_numbers<[1], [0], [0], [1], [0, 0, 1, 1], [], []>} : vector<256x8xbf16>, vector<8x8xbf16>, vector<256x8xf32> -> vector<256x8xf32>
    %140 = arith.addf %133, %139 : vector<256x8xf32>
    %c0_111 = arith.constant 0 : index
    %c2_112 = arith.constant 2 : index
    %c0_113 = arith.constant 0 : index
    %141 = vector.load %arg13[%c0_111, %c2_112, %c0_113] : memref<18x18x8xf32, #tpu.memory_space<vmem>>, vector<16x16x8xf32>
    %142 = vector.shape_cast %141 : vector<16x16x8xf32> to vector<256x8xf32>
    %143 = arith.truncf %142 : vector<256x8xf32> to vector<256x8xbf16>
    %c2_114 = arith.constant 2 : index
    %c0_115 = arith.constant 0 : index
    %c0_116 = arith.constant 0 : index
    %144 = vector.load %arg8[%c2_114, %c0_115, %c0_116] : memref<9x8x8xbf16, #tpu.memory_space<vmem>>, vector<1x8x8xbf16>
    %145 = vector.shape_cast %144 : vector<1x8x8xbf16> to vector<8x8xbf16>
    %cst_117 = arith.constant dense<0.000000e+00> : vector<256x8xf32>
    %146 = tpu.matmul %143, %145, %cst_117 {dimension_numbers = #tpu.dot_dimension_numbers<[1], [0], [0], [1], [0, 0, 1, 1], [], []>} : vector<256x8xbf16>, vector<8x8xbf16>, vector<256x8xf32> -> vector<256x8xf32>
    %147 = arith.addf %140, %146 : vector<256x8xf32>
    %c1_118 = arith.constant 1 : index
    %c0_119 = arith.constant 0 : index
    %c0_120 = arith.constant 0 : index
    %148 = vector.load %arg13[%c1_118, %c0_119, %c0_120] : memref<18x18x8xf32, #tpu.memory_space<vmem>>, vector<16x16x8xf32>
    %149 = vector.shape_cast %148 : vector<16x16x8xf32> to vector<256x8xf32>
    %150 = arith.truncf %149 : vector<256x8xf32> to vector<256x8xbf16>
    %c3_121 = arith.constant 3 : index
    %c0_122 = arith.constant 0 : index
    %c0_123 = arith.constant 0 : index
    %151 = vector.load %arg8[%c3_121, %c0_122, %c0_123] : memref<9x8x8xbf16, #tpu.memory_space<vmem>>, vector<1x8x8xbf16>
    %152 = vector.shape_cast %151 : vector<1x8x8xbf16> to vector<8x8xbf16>
    %cst_124 = arith.constant dense<0.000000e+00> : vector<256x8xf32>
    %153 = tpu.matmul %150, %152, %cst_124 {dimension_numbers = #tpu.dot_dimension_numbers<[1], [0], [0], [1], [0, 0, 1, 1], [], []>} : vector<256x8xbf16>, vector<8x8xbf16>, vector<256x8xf32> -> vector<256x8xf32>
    %154 = arith.addf %147, %153 : vector<256x8xf32>
    %c1_125 = arith.constant 1 : index
    %c1_126 = arith.constant 1 : index
    %c0_127 = arith.constant 0 : index
    %155 = vector.load %arg13[%c1_125, %c1_126, %c0_127] : memref<18x18x8xf32, #tpu.memory_space<vmem>>, vector<16x16x8xf32>
    %156 = vector.shape_cast %155 : vector<16x16x8xf32> to vector<256x8xf32>
    %157 = arith.truncf %156 : vector<256x8xf32> to vector<256x8xbf16>
    %c4_128 = arith.constant 4 : index
    %c0_129 = arith.constant 0 : index
    %c0_130 = arith.constant 0 : index
    %158 = vector.load %arg8[%c4_128, %c0_129, %c0_130] : memref<9x8x8xbf16, #tpu.memory_space<vmem>>, vector<1x8x8xbf16>
    %159 = vector.shape_cast %158 : vector<1x8x8xbf16> to vector<8x8xbf16>
    %cst_131 = arith.constant dense<0.000000e+00> : vector<256x8xf32>
    %160 = tpu.matmul %157, %159, %cst_131 {dimension_numbers = #tpu.dot_dimension_numbers<[1], [0], [0], [1], [0, 0, 1, 1], [], []>} : vector<256x8xbf16>, vector<8x8xbf16>, vector<256x8xf32> -> vector<256x8xf32>
    %161 = arith.addf %154, %160 : vector<256x8xf32>
    %c1_132 = arith.constant 1 : index
    %c2_133 = arith.constant 2 : index
    %c0_134 = arith.constant 0 : index
    %162 = vector.load %arg13[%c1_132, %c2_133, %c0_134] : memref<18x18x8xf32, #tpu.memory_space<vmem>>, vector<16x16x8xf32>
    %163 = vector.shape_cast %162 : vector<16x16x8xf32> to vector<256x8xf32>
    %164 = arith.truncf %163 : vector<256x8xf32> to vector<256x8xbf16>
    %c5_135 = arith.constant 5 : index
    %c0_136 = arith.constant 0 : index
    %c0_137 = arith.constant 0 : index
    %165 = vector.load %arg8[%c5_135, %c0_136, %c0_137] : memref<9x8x8xbf16, #tpu.memory_space<vmem>>, vector<1x8x8xbf16>
    %166 = vector.shape_cast %165 : vector<1x8x8xbf16> to vector<8x8xbf16>
    %cst_138 = arith.constant dense<0.000000e+00> : vector<256x8xf32>
    %167 = tpu.matmul %164, %166, %cst_138 {dimension_numbers = #tpu.dot_dimension_numbers<[1], [0], [0], [1], [0, 0, 1, 1], [], []>} : vector<256x8xbf16>, vector<8x8xbf16>, vector<256x8xf32> -> vector<256x8xf32>
    %168 = arith.addf %161, %167 : vector<256x8xf32>
    %c2_139 = arith.constant 2 : index
    %c0_140 = arith.constant 0 : index
    %c0_141 = arith.constant 0 : index
    %169 = vector.load %arg13[%c2_139, %c0_140, %c0_141] : memref<18x18x8xf32, #tpu.memory_space<vmem>>, vector<16x16x8xf32>
    %170 = vector.shape_cast %169 : vector<16x16x8xf32> to vector<256x8xf32>
    %171 = arith.truncf %170 : vector<256x8xf32> to vector<256x8xbf16>
    %c6_142 = arith.constant 6 : index
    %c0_143 = arith.constant 0 : index
    %c0_144 = arith.constant 0 : index
    %172 = vector.load %arg8[%c6_142, %c0_143, %c0_144] : memref<9x8x8xbf16, #tpu.memory_space<vmem>>, vector<1x8x8xbf16>
    %173 = vector.shape_cast %172 : vector<1x8x8xbf16> to vector<8x8xbf16>
    %cst_145 = arith.constant dense<0.000000e+00> : vector<256x8xf32>
    %174 = tpu.matmul %171, %173, %cst_145 {dimension_numbers = #tpu.dot_dimension_numbers<[1], [0], [0], [1], [0, 0, 1, 1], [], []>} : vector<256x8xbf16>, vector<8x8xbf16>, vector<256x8xf32> -> vector<256x8xf32>
    %175 = arith.addf %168, %174 : vector<256x8xf32>
    %c2_146 = arith.constant 2 : index
    %c1_147 = arith.constant 1 : index
    %c0_148 = arith.constant 0 : index
    %176 = vector.load %arg13[%c2_146, %c1_147, %c0_148] : memref<18x18x8xf32, #tpu.memory_space<vmem>>, vector<16x16x8xf32>
    %177 = vector.shape_cast %176 : vector<16x16x8xf32> to vector<256x8xf32>
    %178 = arith.truncf %177 : vector<256x8xf32> to vector<256x8xbf16>
    %c7_149 = arith.constant 7 : index
    %c0_150 = arith.constant 0 : index
    %c0_151 = arith.constant 0 : index
    %179 = vector.load %arg8[%c7_149, %c0_150, %c0_151] : memref<9x8x8xbf16, #tpu.memory_space<vmem>>, vector<1x8x8xbf16>
    %180 = vector.shape_cast %179 : vector<1x8x8xbf16> to vector<8x8xbf16>
    %cst_152 = arith.constant dense<0.000000e+00> : vector<256x8xf32>
    %181 = tpu.matmul %178, %180, %cst_152 {dimension_numbers = #tpu.dot_dimension_numbers<[1], [0], [0], [1], [0, 0, 1, 1], [], []>} : vector<256x8xbf16>, vector<8x8xbf16>, vector<256x8xf32> -> vector<256x8xf32>
    %182 = arith.addf %175, %181 : vector<256x8xf32>
    %c2_153 = arith.constant 2 : index
    %c2_154 = arith.constant 2 : index
    %c0_155 = arith.constant 0 : index
    %183 = vector.load %arg13[%c2_153, %c2_154, %c0_155] : memref<18x18x8xf32, #tpu.memory_space<vmem>>, vector<16x16x8xf32>
    %184 = vector.shape_cast %183 : vector<16x16x8xf32> to vector<256x8xf32>
    %185 = arith.truncf %184 : vector<256x8xf32> to vector<256x8xbf16>
    %c8_156 = arith.constant 8 : index
    %c0_157 = arith.constant 0 : index
    %c0_158 = arith.constant 0 : index
    %186 = vector.load %arg8[%c8_156, %c0_157, %c0_158] : memref<9x8x8xbf16, #tpu.memory_space<vmem>>, vector<1x8x8xbf16>
    %187 = vector.shape_cast %186 : vector<1x8x8xbf16> to vector<8x8xbf16>
    %cst_159 = arith.constant dense<0.000000e+00> : vector<256x8xf32>
    %188 = tpu.matmul %185, %187, %cst_159 {dimension_numbers = #tpu.dot_dimension_numbers<[1], [0], [0], [1], [0, 0, 1, 1], [], []>} : vector<256x8xbf16>, vector<8x8xbf16>, vector<256x8xf32> -> vector<256x8xf32>
    %189 = arith.addf %182, %188 : vector<256x8xf32>
    %c0_160 = arith.constant 0 : index
    %c0_161 = arith.constant 0 : index
    %c0_162 = arith.constant 0 : index
    %c0_163 = arith.constant 0 : index
    %190 = vector.load %arg1[%c0_160, %c0_161, %c0_162, %c0_163] : memref<1x16x16x4xf32, #tpu.memory_space<vmem>>, vector<1x16x16x4xf32>
    %191 = vector.shape_cast %190 : vector<1x16x16x4xf32> to vector<16x16x4xf32>
    %192 = vector.shape_cast %191 : vector<16x16x4xf32> to vector<256x4xf32>
    %193 = arith.truncf %192 : vector<256x4xf32> to vector<256x4xbf16>
    %c0_164 = arith.constant 0 : index
    %c0_165 = arith.constant 0 : index
    %194 = vector.load %arg9[%c0_164, %c0_165] : memref<4x8xbf16, #tpu.memory_space<vmem>>, vector<4x8xbf16>
    %cst_166 = arith.constant dense<0.000000e+00> : vector<256x8xf32>
    %195 = tpu.matmul %193, %194, %cst_166 {dimension_numbers = #tpu.dot_dimension_numbers<[1], [0], [0], [1], [0, 0, 1, 1], [], []>} : vector<256x4xbf16>, vector<4x8xbf16>, vector<256x8xf32> -> vector<256x8xf32>
    %c0_167 = arith.constant 0 : index
    %c0_168 = arith.constant 0 : index
    %196 = vector.load %arg10[%c0_167, %c0_168] : memref<1x8xf32, #tpu.memory_space<vmem>>, vector<1x8xf32>
    %197 = vector.broadcast %196 : vector<1x8xf32> to vector<256x8xf32>
    %198 = arith.addf %195, %197 : vector<256x8xf32>
    %199 = arith.addf %189, %198 : vector<256x8xf32>
    %200 = vector.shape_cast %199 : vector<256x8xf32> to vector<16x16x8xf32>
    %c0_169 = arith.constant 0 : index
    %c0_170 = arith.constant 0 : index
    %c0_171 = arith.constant 0 : index
    %c0_172 = arith.constant 0 : index
    %201 = vector.load %arg11[%c0_169, %c0_170, %c0_171, %c0_172] : memref<1x16x16x8xf32, #tpu.memory_space<vmem>>, vector<1x16x16x8xf32>
    %202 = vector.shape_cast %201 : vector<1x16x16x8xf32> to vector<16x16x8xf32>
    %203 = vector.shape_cast %200 : vector<16x16x8xf32> to vector<1x16x16x8xf32>
    tpu.vector_store %arg11[%c0_169, %c0_170, %c0_171, %c0_172], %203 {strides = array<i32>} : memref<1x16x16x8xf32, #tpu.memory_space<vmem>>, vector<1x16x16x8xf32>,
    return
  }
  func.func @transform_0(%arg0: i32) -> (i32, i32, i32, i32) {
    %c0_i32 = arith.constant 0 : i32
    %c0_i32_0 = arith.constant 0 : i32
    %c0_i32_1 = arith.constant 0 : i32
    %c0_i32_2 = arith.constant 0 : i32
    return %arg0, %c0_i32, %c0_i32_0, %c0_i32_1 : i32, i32, i32, i32
  }
  func.func @transform_1(%arg0: i32) -> (i32, i32, i32, i32) {
    %c0_i32 = arith.constant 0 : i32
    %c0_i32_0 = arith.constant 0 : i32
    %c0_i32_1 = arith.constant 0 : i32
    %c0_i32_2 = arith.constant 0 : i32
    %c0_i32_3 = arith.constant 0 : i32
    return %c0_i32, %c0_i32_0, %c0_i32_1, %c0_i32_2 : i32, i32, i32, i32
  }
  func.func @transform_2(%arg0: i32) -> (i32, i32, i32, i32) {
    %c0_i32 = arith.constant 0 : i32
    %c0_i32_0 = arith.constant 0 : i32
    %c0_i32_1 = arith.constant 0 : i32
    %c0_i32_2 = arith.constant 0 : i32
    %c0_i32_3 = arith.constant 0 : i32
    return %c0_i32, %c0_i32_0, %c0_i32_1, %c0_i32_2 : i32, i32, i32, i32
  }
  func.func @transform_3(%arg0: i32) -> (i32, i32, i32) {
    %c0_i32 = arith.constant 0 : i32
    %c0_i32_0 = arith.constant 0 : i32
    %c0_i32_1 = arith.constant 0 : i32
    %c0_i32_2 = arith.constant 0 : i32
    return %c0_i32, %c0_i32_0, %c0_i32_1 : i32, i32, i32
  }
  func.func @transform_4(%arg0: i32) -> (i32, i32, i32) {
    %c0_i32 = arith.constant 0 : i32
    %c0_i32_0 = arith.constant 0 : i32
    %c0_i32_1 = arith.constant 0 : i32
    return %arg0, %c0_i32, %c0_i32_0 : i32, i32, i32
  }
  func.func @transform_5(%arg0: i32) -> (i32, i32) {
    %c0_i32 = arith.constant 0 : i32
    %c0_i32_0 = arith.constant 0 : i32
    %c0_i32_1 = arith.constant 0 : i32
    return %c0_i32, %c0_i32_0 : i32, i32
  }
  func.func @transform_6(%arg0: i32) -> (i32, i32) {
    %c0_i32 = arith.constant 0 : i32
    %c0_i32_0 = arith.constant 0 : i32
    %c0_i32_1 = arith.constant 0 : i32
    return %c0_i32, %c0_i32_0 : i32, i32
  }
  func.func @transform_7(%arg0: i32) -> (i32, i32, i32) {
    %c0_i32 = arith.constant 0 : i32
    %c0_i32_0 = arith.constant 0 : i32
    %c0_i32_1 = arith.constant 0 : i32
    %c0_i32_2 = arith.constant 0 : i32
    return %c0_i32, %c0_i32_0, %c0_i32_1 : i32, i32, i32
  }
  func.func @transform_8(%arg0: i32) -> (i32, i32) {
    %c0_i32 = arith.constant 0 : i32
    %c0_i32_0 = arith.constant 0 : i32
    %c0_i32_1 = arith.constant 0 : i32
    return %c0_i32, %c0_i32_0 : i32, i32
  }
  func.func @transform_9(%arg0: i32) -> (i32, i32) {
    %c0_i32 = arith.constant 0 : i32
    %c0_i32_0 = arith.constant 0 : i32
    %c0_i32_1 = arith.constant 0 : i32
    return %c0_i32, %c0_i32_0 : i32, i32
  }
  func.func @transform_10(%arg0: i32) -> (i32, i32, i32, i32) {
    %c0_i32 = arith.constant 0 : i32
    %c0_i32_0 = arith.constant 0 : i32
    %c0_i32_1 = arith.constant 0 : i32
    %c0_i32_2 = arith.constant 0 : i32
    return %arg0, %c0_i32, %c0_i32_0, %c0_i32_1 : i32, i32, i32, i32
  }
}

</mosaic_0001>

<bundles_post_ra>
// kernel: block_forward.1
= control target key start
LH: loop header
LB: loop body
LE: loop exit
PB: predicated region body
PF: predicated region fallthrough
CT: control target
= control target key end

     0   :  { %s9466_s13 = smov 0   ;;  %s11790_s0 = inlined_call_operand.vmem [shape: f32[2,16,16,4], index: 0, kind: input, shape index: {}]   ;;  %s11791_s1 = inlined_call_operand.vmem [shape: f32[1,1,1,4], index: 1, kind: input, shape index: {}]   ;;  %s11792_s2 = inlined_call_operand.vmem [shape: f32[1,1,1,4], index: 2, kind: input, shape index: {}]   ;;  %s11793_s3 = inlined_call_operand.vmem [shape: bf16[9,4,8], index: 3, kind: input, shape index: {}]   ;;  %s11794_s4 = inlined_call_operand.vmem [shape: f32[2,1,256], index: 4, kind: input, shape index: {}]   ;;  %s11795_s5 = inlined_call_operand.vmem [shape: f32[256,8], index: 5, kind: input, shape index: {}]   ;;  %s11796_s6 = inlined_call_operand.vmem [shape: f32[1,8], index: 6, kind: input, shape index: {}]   ;;  %s11797_s7 = inlined_call_operand.vmem [shape: bf16[9,8,8], index: 7, kind: input, shape index: {}]   ;;  %s11798_s8 = inlined_call_operand.vmem [shape: bf16[4,8], index: 8, kind: input, shape index: {}]   ;;  %s11799_s9 = inlined_call_operand.vmem [shape: f32[1,8], index: 9, kind: input, shape index: {}]   ;;  %s11800_s10 = inlined_call_operand.vmem [shape: f32[2,16,16,8], index: 10, kind: output, shape index: {}]  }
   0x1 LB: > { %s7089_s14 = sadd.s32 4294967295, %s9408_s13   ;;  %p7093_p0 = scmp.ge.s32.totalorder %s9408_s13, 1  ;;  %s9408_s13 = sphi %s9466_s13, %s20_s13  }
   0x2   : > { %p321_p1 = scmp.lt.s32.totalorder %s9408_s13, 3 }
   0x4   : > { %p322_p2 = pnand %p7093_p0, %p321_p1 }
   0x6   : > { %325 = sbr.rel (%p322_p2) target bundleno = 2337 (0x921), region = 60 }
   0xd   : > { %p363_p3 = scmp.lt.s32.totalorder %s7089_s14, 1  ;;  %vm410_vm0 = vcmask 31744   ;;  %vm967_vm1 = vcmask 25600   ;;  %v9410_v0 = vmov 0.0   ;;  %vm1200_vm2 = vcmask 1041408  }
   0xe   : > { %1000 = vst.msk [vmem:[#allocation2 + $0x110] sm:$0xff] %vm410_vm0, %v9410_v0  ;;  %1002 = vst.msk [vmem:[#allocation2 + $0x120] sm:$0xff] %vm410_vm0, %v9410_v0  ;;  %vm4018_vm3 = vcmask 64512   ;;  %vm4021_vm4 = vcmask 58368   ;;  %vm4254_vm5 = vcmask 1043456  }
   0xf   : > { %s11820_s14 = smov (!%p363_p3, %s7089_s14), 1  ;;  %1001 = vst.msk [vmem:[#allocation2 + $0x118] sm:$0x3] %vm967_vm1, %v9410_v0  ;;  %1004 = vst.msk [vmem:[#allocation2 + $0x130] sm:$0x3] %vm967_vm1, %v9410_v0 }
  0x10   : > { %1003 = vst.msk [vmem:[#allocation2 + $0x128] sm:$0xff] %vm410_vm0, %v9410_v0  ;;  %1005 = vst.msk [vmem:[#allocation2 + $0x138] sm:$0xff] %vm410_vm0, %v9410_v0  ;;  %s7489_s15 = sshll.u32 %s11820_s14, 8  ;;  %s7096_s27 = sshll.u32 %s11820_s14, 1 }
  0x11   : > { %1006 = vst.msk [vmem:[#allocation2 + $0x140] sm:$0xff] %vm410_vm0, %v9410_v0  ;;  %1008 = vst.msk [vmem:[#allocation2 + $0x150] sm:$0xff] %vm410_vm0, %v9410_v0  ;;  %s9590_s18 = scalar_lea.vmem %s11790_s0, %s7489_s15  ;;  %s371_s12 = scalar_lea.vmem %s11794_s4, %s7096_s27 }
  0x12   : > { %1007 = vst.msk [vmem:[#allocation2 + $0x148] sm:$0x3] %vm967_vm1, %v9410_v0  ;;  %1010 = vst.msk [vmem:[#allocation2 + $0x160] sm:$0x3] %vm967_vm1, %v9410_v0  ;;  %v9593_v1 = vld [vmem:[%s9590_s18] sm:$0xff]  ;;  %v9596_v2 = vld [vmem:[%s9590_s18 + $0x8] sm:$0xff] }
  0x13   : > { %1009 = vst.msk [vmem:[#allocation2 + $0x158] sm:$0xff] %vm410_vm0, %v9410_v0  ;;  %1011 = vst.msk [vmem:[#allocation2 + $0x168] sm:$0xff] %vm410_vm0, %v9410_v0  ;;  %v9599_v3 = vld [vmem:[%s9590_s18 + $0x10] sm:$0xff]  ;;  %v9602_v4 = vld [vmem:[%s9590_s18 + $0x18] sm:$0xff]  ;;  %v411_v5 = vsel %vm410_vm0, %v9593_v1, 0.0  ;;  %v412_v6 = vsel %vm410_vm0, %v9596_v2, 0.0 }
  0x14   : > { %1012 = vst.msk [vmem:[#allocation2 + $0x170] sm:$0xff] %vm410_vm0, %v9410_v0  ;;  %1014 = vst.msk [vmem:[#allocation2 + $0x180] sm:$0xff] %vm410_vm0, %v9410_v0  ;;  %v414_v7 = vsel %vm410_vm0, %v9599_v3, 0.0  ;;  %v9611_v8 = vld [vmem:[%s9590_s18 + $0x20] sm:$0xff]  ;;  %v413_v9 = vadd.f32 %v412_v6, %v411_v5  ;;  %v416_v10 = vsel %vm410_vm0, %v9602_v4, 0.0  ;;  %v9616_v11 = vld [vmem:[%s9590_s18 + $0x28] sm:$0xff] }
  0x15   : > { %1013 = vst.msk [vmem:[#allocation2 + $0x178] sm:$0x3] %vm967_vm1, %v9410_v0  ;;  %1016 = vst.msk [vmem:[#allocation2 + $0x190] sm:$0x3] %vm967_vm1, %v9410_v0  ;;  %v418_v13 = vsel %vm410_vm0, %v9611_v8, 0.0  ;;  %v9621_v14 = vld [vmem:[%s9590_s18 + $0x30] sm:$0xff] }
  0x16   : > { %1015 = vst.msk [vmem:[#allocation2 + $0x188] sm:$0xff] %vm410_vm0, %v9410_v0  ;;  %965 = vst.msk [vmem:[#allocation2] sm:$0xff] %vm410_vm0, %v9410_v0  ;;  %v415_v12 = vadd.f32 %v414_v7, %v413_v9  ;;  %v420_v16 = vsel %vm410_vm0, %v9616_v11, 0.0  ;;  %v9626_v17 = vld [vmem:[%s9590_s18 + $0x38] sm:$0xff]  ;;  %v422_v19 = vsel %vm410_vm0, %v9621_v14, 0.0  ;;  %v9631_v20 = vld [vmem:[%s9590_s18 + $0x40] sm:$0xff] }
  0x17   : > { %966 = vst.msk [vmem:[#allocation2 + $0x8] sm:$0xff] %vm410_vm0, %v9410_v0  ;;  %969 = vst.msk [vmem:[#allocation2 + $0x18] sm:$0xff] %vm410_vm0, %v9410_v0  ;;  %v424_v22 = vsel %vm410_vm0, %v9626_v17, 0.0  ;;  %v9636_v23 = vld [vmem:[%s9590_s18 + $0x48] sm:$0xff]  ;;  %v426_v25 = vsel %vm410_vm0, %v9631_v20, 0.0  ;;  %v9641_v26 = vld [vmem:[%s9590_s18 + $0x50] sm:$0xff] }
  0x18   : > { %968 = vst.msk [vmem:[#allocation2 + $0x10] sm:$0x3] %vm967_vm1, %v9410_v0  ;;  %971 = vst.msk [vmem:[#allocation2 + $0x28] sm:$0x3] %vm967_vm1, %v9410_v0  ;;  %v417_v15 = vadd.f32 %v416_v10, %v415_v12  ;;  %v428_v28 = vsel %vm410_vm0, %v9636_v23, 0.0  ;;  %v9646_v29 = vld [vmem:[%s9590_s18 + $0x58] sm:$0xff] }
  0x19   : > { %970 = vst.msk [vmem:[#allocation2 + $0x20] sm:$0xff] %vm410_vm0, %v9410_v0  ;;  %972 = vst.msk [vmem:[#allocation2 + $0x30] sm:$0xff] %vm410_vm0, %v9410_v0  ;;  %v430_v31 = vsel %vm410_vm0, %v9641_v26, 0.0  ;;  %v9651_v32 = vld [vmem:[%s9590_s18 + $0x60] sm:$0xff]  ;;  %v432_v34 = vsel %vm410_vm0, %v9646_v29, 0.0  ;;  %v9656_v35 = vld [vmem:[%s9590_s18 + $0x68] sm:$0xff] }
  0x1a   : > { %973 = vst.msk [vmem:[#allocation2 + $0x38] sm:$0xff] %vm410_vm0, %v9410_v0  ;;  %975 = vst.msk [vmem:[#allocation2 + $0x48] sm:$0xff] %vm410_vm0, %v9410_v0  ;;  %v419_v18 = vadd.f32 %v418_v13, %v417_v15  ;;  %v434_v37 = vsel %vm410_vm0, %v9651_v32, 0.0  ;;  %v9661_v38 = vld [vmem:[%s9590_s18 + $0x70] sm:$0xff]  ;;  %v436_v40 = vsel %vm410_vm0, %v9656_v35, 0.0  ;;  %v9666_v41 = vld [vmem:[%s9590_s18 + $0x78] sm:$0xff] }
  0x1b   : > { %974 = vst.msk [vmem:[#allocation2 + $0x40] sm:$0x3] %vm967_vm1, %v9410_v0  ;;  %977 = vst.msk [vmem:[#allocation2 + $0x58] sm:$0x3] %vm967_vm1, %v9410_v0  ;;  %v438_v43 = vsel %vm410_vm0, %v9661_v38, 0.0  ;;  %v9671_v44 = vld [vmem:[%s9590_s18 + $0x80] sm:$0xff] }
  0x1c   : > { %976 = vst.msk [vmem:[#allocation2 + $0x50] sm:$0xff] %vm410_vm0, %v9410_v0  ;;  %978 = vst.msk [vmem:[#allocation2 + $0x60] sm:$0xff] %vm410_vm0, %v9410_v0  ;;  %v421_v21 = vadd.f32 %v420_v16, %v419_v18  ;;  %v440_v46 = vsel %vm410_vm0, %v9666_v41, 0.0  ;;  %v9676_v47 = vld [vmem:[%s9590_s18 + $0x88] sm:$0xff]  ;;  %v442_v49 = vsel %vm410_vm0, %v9671_v44, 0.0  ;;  %v9681_v50 = vld [vmem:[%s9590_s18 + $0x90] sm:$0xff] }
  0x1d   : > { %979 = vst.msk [vmem:[#allocation2 + $0x68] sm:$0xff] %vm410_vm0, %v9410_v0  ;;  %981 = vst.msk [vmem:[#allocation2 + $0x78] sm:$0xff] %vm410_vm0, %v9410_v0  ;;  %v444_v52 = vsel %vm410_vm0, %v9676_v47, 0.0  ;;  %v9686_v53 = vld [vmem:[%s9590_s18 + $0x98] sm:$0xff]  ;;  %v446_v55 = vsel %vm410_vm0, %v9681_v50, 0.0  ;;  %v9691_v56 = vld [vmem:[%s9590_s18 + $0xa0] sm:$0xff] }
  0x1e   : > { %980 = vst.msk [vmem:[#allocation2 + $0x70] sm:$0x3] %vm967_vm1, %v9410_v0  ;;  %983 = vst.msk [vmem:[#allocation2 + $0x88] sm:$0x3] %vm967_vm1, %v9410_v0  ;;  %v423_v24 = vadd.f32 %v422_v19, %v421_v21  ;;  %v448_v58 = vsel %vm410_vm0, %v9686_v53, 0.0  ;;  %v9696_v59 = vld [vmem:[%s9590_s18 + $0xa8] sm:$0xff] }
  0x1f   : > { %982 = vst.msk [vmem:[#allocation2 + $0x80] sm:$0xff] %vm410_vm0, %v9410_v0  ;;  %984 = vst.msk [vmem:[#allocation2 + $0x90] sm:$0xff] %vm410_vm0, %v9410_v0  ;;  %v450_v61 = vsel %vm410_vm0, %v9691_v56, 0.0  ;;  %v9701_v62 = vld [vmem:[%s9590_s18 + $0xb0] sm:$0xff]  ;;  %v452_v5 = vsel %vm410_vm0, %v9696_v59, 0.0  ;;  %v9706_v6 = vld [vmem:[%s9590_s18 + $0xb8] sm:$0xff] }
  0x20   : > { %985 = vst.msk [vmem:[#allocation2 + $0x98] sm:$0xff] %vm410_vm0, %v9410_v0  ;;  %987 = vst.msk [vmem:[#allocation2 + $0xa8] sm:$0xff] %vm410_vm0, %v9410_v0  ;;  %v425_v27 = vadd.f32 %v424_v22, %v423_v24  ;;  %v454_v9 = vsel %vm410_vm0, %v9701_v62, 0.0  ;;  %v9711_v10 = vld [vmem:[%s9590_s18 + $0xc0] sm:$0xff]  ;;  %v456_v13 = vsel %vm410_vm0, %v9706_v6, 0.0  ;;  %v9716_v15 = vld [vmem:[%s9590_s18 + $0xc8] sm:$0xff] }
  0x21   : > { %986 = vst.msk [vmem:[#allocation2 + $0xa0] sm:$0x3] %vm967_vm1, %v9410_v0  ;;  %989 = vst.msk [vmem:[#allocation2 + $0xb8] sm:$0x3] %vm967_vm1, %v9410_v0  ;;  %v458_v18 = vsel %vm410_vm0, %v9711_v10, 0.0  ;;  %v9721_v19 = vld [vmem:[%s9590_s18 + $0xd0] sm:$0xff] }
  0x22   : > { %988 = vst.msk [vmem:[#allocation2 + $0xb0] sm:$0xff] %vm410_vm0, %v9410_v0  ;;  %990 = vst.msk [vmem:[#allocation2 + $0xc0] sm:$0xff] %vm410_vm0, %v9410_v0  ;;  %v427_v30 = vadd.f32 %v426_v25, %v425_v27  ;;  %v460_v22 = vsel %vm410_vm0, %v9716_v15, 0.0  ;;  %v9726_v24 = vld [vmem:[%s9590_s18 + $0xd8] sm:$0xff]  ;;  %v462_v27 = vsel %vm410_vm0, %v9721_v19, 0.0 }
  0x23   : > { %991 = vst.msk [vmem:[#allocation2 + $0xc8] sm:$0xff] %vm410_vm0, %v9410_v0  ;;  %993 = vst.msk [vmem:[#allocation2 + $0xd8] sm:$0xff] %vm410_vm0, %v9410_v0 }
  0x24   : > { %992 = vst.msk [vmem:[#allocation2 + $0xd0] sm:$0x3] %vm967_vm1, %v9410_v0  ;;  %995 = vst.msk [vmem:[#allocation2 + $0xe8] sm:$0x3] %vm967_vm1, %v9410_v0  ;;  %v429_v33 = vadd.f32 %v428_v28, %v427_v30  ;;  %v9731_v28 = vld [vmem:[%s9590_s18 + $0xe0] sm:$0xff] }
  0x25   : > { %994 = vst.msk [vmem:[#allocation2 + $0xe0] sm:$0xff] %vm410_vm0, %v9410_v0  ;;  %996 = vst.msk [vmem:[#allocation2 + $0xf0] sm:$0xff] %vm410_vm0, %v9410_v0 }
  0x26   : > { %997 = vst.msk [vmem:[#allocation2 + $0xf8] sm:$0xff] %vm410_vm0, %v9410_v0  ;;  %999 = vst.msk [vmem:[#allocation2 + $0x108] sm:$0xff] %vm410_vm0, %v9410_v0  ;;  %v431_v36 = vadd.f32 %v430_v31, %v429_v33  ;;  %v464_v31 = vsel %vm410_vm0, %v9726_v24, 0.0  ;;  %v9736_v33 = vld [vmem:[%s9590_s18 + $0xe8] sm:$0xff] }
  0x27   : > { %998 = vst.msk [vmem:[#allocation2 + $0x100] sm:$0x3] %vm967_vm1, %v9410_v0  ;;  %1019 = vst.msk [vmem:[#allocation2 + $0x1a8] sm:$0x3] %vm967_vm1, %v9410_v0 }
  0x28   : > { %1017 = vst.msk [vmem:[#allocation2 + $0x198] sm:$0xff] %vm410_vm0, %v9410_v0  ;;  %1018 = vst.msk [vmem:[#allocation2 + $0x1a0] sm:$0xff] %vm410_vm0, %v9410_v0  ;;  %v433_v39 = vadd.f32 %v432_v34, %v431_v36  ;;  %v466_v36 = vsel %vm410_vm0, %v9731_v28, 0.0 }
  0x29   : > { %4026 = vst.msk [vmem:[#allocation3 + $0x30] sm:$0xff] %vm4018_vm3, %v9410_v0  ;;  %4027 = vst.msk [vmem:[#allocation3 + $0x38] sm:$0xff] %vm4018_vm3, %v9410_v0 }
  0x2a   : > { %v435_v42 = vadd.f32 %v434_v37, %v433_v39  ;;  %v9741_v37 = vld [vmem:[%s9590_s18 + $0xf0] sm:$0xff]  ;;  %4019 = vst.msk [vmem:[#allocation3] sm:$0xff] %vm4018_vm3, %v9410_v0  ;;  %4020 = vst.msk [vmem:[#allocation3 + $0x8] sm:$0xff] %vm4018_vm3, %v9410_v0 }
  0x2b   : > { %4023 = vst.msk [vmem:[#allocation3 + $0x18] sm:$0xff] %vm4018_vm3, %v9410_v0  ;;  %4024 = vst.msk [vmem:[#allocation3 + $0x20] sm:$0xff] %vm4018_vm3, %v9410_v0 }
  0x2c   : > { %v437_v45 = vadd.f32 %v436_v40, %v435_v42  ;;  %v468_v40 = vsel %vm410_vm0, %v9736_v33, 0.0  ;;  %v9746_v42 = vld [vmem:[%s9590_s18 + $0xf8] sm:$0xff]  ;;  %4029 = vst.msk [vmem:[#allocation3 + $0x48] sm:$0xff] %vm4018_vm3, %v9410_v0  ;;  %4030 = vst.msk [vmem:[#allocation3 + $0x50] sm:$0xff] %vm4018_vm3, %v9410_v0 }
  0x2d   : > { %4032 = vst.msk [vmem:[#allocation3 + $0x60] sm:$0xff] %vm4018_vm3, %v9410_v0  ;;  %4033 = vst.msk [vmem:[#allocation3 + $0x68] sm:$0xff] %vm4018_vm3, %v9410_v0 }
  0x2e   : > { %v439_v48 = vadd.f32 %v438_v43, %v437_v45  ;;  %v470_v45 = vsel %vm410_vm0, %v9741_v37, 0.0  ;;  %4035 = vst.msk [vmem:[#allocation3 + $0x78] sm:$0xff] %vm4018_vm3, %v9410_v0  ;;  %4036 = vst.msk [vmem:[#allocation3 + $0x80] sm:$0xff] %vm4018_vm3, %v9410_v0 }
  0x2f   : > { %4038 = vst.msk [vmem:[#allocation3 + $0x90] sm:$0xff] %vm4018_vm3, %v9410_v0  ;;  %4039 = vst.msk [vmem:[#allocation3 + $0x98] sm:$0xff] %vm4018_vm3, %v9410_v0 }
  0x30   : > { %v441_v51 = vadd.f32 %v440_v46, %v439_v48  ;;  %v472_v48 = vsel %vm410_vm0, %v9746_v42, 0.0  ;;  %4041 = vst.msk [vmem:[#allocation3 + $0xa8] sm:$0xff] %vm4018_vm3, %v9410_v0  ;;  %4042 = vst.msk [vmem:[#allocation3 + $0xb0] sm:$0xff] %vm4018_vm3, %v9410_v0 }
  0x31   : > { %4044 = vst.msk [vmem:[#allocation3 + $0xc0] sm:$0xff] %vm4018_vm3, %v9410_v0  ;;  %4045 = vst.msk [vmem:[#allocation3 + $0xc8] sm:$0xff] %vm4018_vm3, %v9410_v0 }
  0x32   : > { %v443_v54 = vadd.f32 %v442_v49, %v441_v51  ;;  %4047 = vst.msk [vmem:[#allocation3 + $0xd8] sm:$0xff] %vm4018_vm3, %v9410_v0  ;;  %4048 = vst.msk [vmem:[#allocation3 + $0xe0] sm:$0xff] %vm4018_vm3, %v9410_v0 }
  0x33   : > { %4050 = vst.msk [vmem:[#allocation3 + $0xf0] sm:$0xff] %vm4018_vm3, %v9410_v0  ;;  %4051 = vst.msk [vmem:[#allocation3 + $0xf8] sm:$0xff] %vm4018_vm3, %v9410_v0 }
  0x34   : > { %v445_v57 = vadd.f32 %v444_v52, %v443_v54  ;;  %4053 = vst.msk [vmem:[#allocation3 + $0x108] sm:$0xff] %vm4018_vm3, %v9410_v0  ;;  %4054 = vst.msk [vmem:[#allocation3 + $0x110] sm:$0xff] %vm4018_vm3, %v9410_v0 }
  0x35   : > { %4056 = vst.msk [vmem:[#allocation3 + $0x120] sm:$0xff] %vm4018_vm3, %v9410_v0  ;;  %4057 = vst.msk [vmem:[#allocation3 + $0x128] sm:$0xff] %vm4018_vm3, %v9410_v0 }
  0x36   : > { %v447_v60 = vadd.f32 %v446_v55, %v445_v57  ;;  %4059 = vst.msk [vmem:[#allocation3 + $0x138] sm:$0xff] %vm4018_vm3, %v9410_v0  ;;  %4060 = vst.msk [vmem:[#allocation3 + $0x140] sm:$0xff] %vm4018_vm3, %v9410_v0 }
  0x37   : > { %4062 = vst.msk [vmem:[#allocation3 + $0x150] sm:$0xff] %vm4018_vm3, %v9410_v0  ;;  %4063 = vst.msk [vmem:[#allocation3 + $0x158] sm:$0xff] %vm4018_vm3, %v9410_v0 }
  0x38   : > { %v449_v63 = vadd.f32 %v448_v58, %v447_v60  ;;  %4065 = vst.msk [vmem:[#allocation3 + $0x168] sm:$0xff] %vm4018_vm3, %v9410_v0  ;;  %4066 = vst.msk [vmem:[#allocation3 + $0x170] sm:$0xff] %vm4018_vm3, %v9410_v0 }
  0x39   : > { %4068 = vst.msk [vmem:[#allocation3 + $0x180] sm:$0xff] %vm4018_vm3, %v9410_v0  ;;  %4069 = vst.msk [vmem:[#allocation3 + $0x188] sm:$0xff] %vm4018_vm3, %v9410_v0 }
  0x3a   : > { %v451_v7 = vadd.f32 %v450_v61, %v449_v63  ;;  %4071 = vst.msk [vmem:[#allocation3 + $0x198] sm:$0xff] %vm4018_vm3, %v9410_v0  ;;  %4072 = vst.msk [vmem:[#allocation3 + $0x1a0] sm:$0xff] %vm4018_vm3, %v9410_v0 }
  0x3b   : > { %4028 = vst.msk [vmem:[#allocation3 + $0x40] sm:$0x3] %vm4021_vm4, %v9410_v0  ;;  %4022 = vst.msk [vmem:[#allocation3 + $0x10] sm:$0x3] %vm4021_vm4, %v9410_v0 }
  0x3c   : > { %v453_v12 = vadd.f32 %v452_v5, %v451_v7  ;;  %4025 = vst.msk [vmem:[#allocation3 + $0x28] sm:$0x3] %vm4021_vm4, %v9410_v0  ;;  %4031 = vst.msk [vmem:[#allocation3 + $0x58] sm:$0x3] %vm4021_vm4, %v9410_v0 }
  0x3d   : > { %4034 = vst.msk [vmem:[#allocation3 + $0x70] sm:$0x3] %vm4021_vm4, %v9410_v0  ;;  %4037 = vst.msk [vmem:[#allocation3 + $0x88] sm:$0x3] %vm4021_vm4, %v9410_v0 }
  0x3e   : > { %v455_v16 = vadd.f32 %v454_v9, %v453_v12  ;;  %4040 = vst.msk [vmem:[#allocation3 + $0xa0] sm:$0x3] %vm4021_vm4, %v9410_v0  ;;  %4043 = vst.msk [vmem:[#allocation3 + $0xb8] sm:$0x3] %vm4021_vm4, %v9410_v0 }
  0x3f   : > { %4046 = vst.msk [vmem:[#allocation3 + $0xd0] sm:$0x3] %vm4021_vm4, %v9410_v0  ;;  %4049 = vst.msk [vmem:[#allocation3 + $0xe8] sm:$0x3] %vm4021_vm4, %v9410_v0 }
  0x40   : > { %v457_v21 = vadd.f32 %v456_v13, %v455_v16  ;;  %4052 = vst.msk [vmem:[#allocation3 + $0x100] sm:$0x3] %vm4021_vm4, %v9410_v0  ;;  %4055 = vst.msk [vmem:[#allocation3 + $0x118] sm:$0x3] %vm4021_vm4, %v9410_v0 }
  0x41   : > { %4058 = vst.msk [vmem:[#allocation3 + $0x130] sm:$0x3] %vm4021_vm4, %v9410_v0  ;;  %4061 = vst.msk [vmem:[#allocation3 + $0x148] sm:$0x3] %vm4021_vm4, %v9410_v0 }
  0x42   : > { %v459_v25 = vadd.f32 %v458_v18, %v457_v21  ;;  %4064 = vst.msk [vmem:[#allocation3 + $0x160] sm:$0x3] %vm4021_vm4, %v9410_v0  ;;  %4067 = vst.msk [vmem:[#allocation3 + $0x178] sm:$0x3] %vm4021_vm4, %v9410_v0 }
  0x43   : > { %4070 = vst.msk [vmem:[#allocation3 + $0x190] sm:$0x3] %vm4021_vm4, %v9410_v0  ;;  %4073 = vst.msk [vmem:[#allocation3 + $0x1a8] sm:$0x3] %vm4021_vm4, %v9410_v0  ;;  %v3669_v0 = vld [vmem:[%s11796_s6] sm:$0x1] }
  0x44   : > { %v461_v30 = vadd.f32 %v460_v22, %v459_v25 }
  0x46   : > { %v463_v34 = vadd.f32 %v462_v27, %v461_v30 }
  0x48   : > { %v465_v39 = vadd.f32 %v464_v31, %v463_v34 }
  0x4a   : > { %v467_v43 = vadd.f32 %v466_v36, %v465_v39 }
  0x4c   : > { %v469_v46 = vadd.f32 %v468_v40, %v467_v43 }
  0x4e   : > { %v471_v49 = vadd.f32 %v470_v45, %v469_v46 }
  0x50   : > { %v473_v51 = vadd.f32 %v472_v48, %v471_v49 }
  0x52   : > { %474 = vadd.xlane.f32.xlu0 %v473_v51 }
  0xdf   : > { %v475_v52 = vpop.xlane.xlu0 %474 }
  0xe0   : > { %v476_v54 = vrot.slane %v475_v52, 4 }
  0xe2   : > { %v477_v55 = vadd.f32 %v476_v54, %v475_v52 }
  0xe4   : > { %v478_v57 = vrot.slane %v477_v55, 2 }
  0xe6   : > { %v479_v58 = vadd.f32 %v478_v57, %v477_v55 }
  0xe8   : > { %v480_v60 = vrot.slane %v479_v58, 1 }
  0xea   : > { %v481_v61 = vadd.f32 %v480_v60, %v479_v58 }
  0xec   : > { %9125 = vpush %v481_v61 }
 0x11d   : > { %s9126_s19 = spop %9125 }
 0x11e   : > { %s485_s20 = smul.f32 0.0009765625, %s9126_s19 }
 0x120   : > { %v9752_v63 = vstv %s485_s20 }
 0x121   : > { %v9756_v5 = vsub.f32 %v9593_v1, %v9752_v63  ;;  %v9760_v7 = vsub.f32 %v9596_v2, %v9752_v63  ;;  %v9764_v9 = vsub.f32 %v9599_v3, %v9752_v63  ;;  %v9768_v12 = vsub.f32 %v9602_v4, %v9752_v63 }
 0x122   : > { %v9776_v1 = vsub.f32 %v9611_v8, %v9752_v63  ;;  %v9782_v3 = vsub.f32 %v9616_v11, %v9752_v63  ;;  %v9790_v25 = vsub.f32 %v9621_v14, %v9752_v63  ;;  %v9797_v11 = vsub.f32 %v9626_v17, %v9752_v63 }
 0x123   : > { %v519_v13 = vmul.f32 %v9756_v5, %v9756_v5  ;;  %v520_v16 = vmul.f32 %v9760_v7, %v9760_v7  ;;  %v521_v2 = vmul.f32 %v9764_v9, %v9764_v9  ;;  %v522_v4 = vmul.f32 %v9768_v12, %v9768_v12 }
 0x124   : > { %v523_v8 = vmul.f32 %v9776_v1, %v9776_v1  ;;  %v524_v31 = vmul.f32 %v9782_v3, %v9782_v3  ;;  %v9804_v14 = vsub.f32 %v9631_v20, %v9752_v63  ;;  %v525_v39 = vmul.f32 %v9790_v25, %v9790_v25 }
 0x125   : > { %v551_v18 = vsel %vm410_vm0, %v519_v13, 0.0  ;;  %v552_v21 = vsel %vm410_vm0, %v520_v16, 0.0  ;;  %v554_v27 = vsel %vm410_vm0, %v521_v2, 0.0  ;;  %v556_v34 = vsel %vm410_vm0, %v522_v4, 0.0 }
 0x126   : > { %v553_v22 = vadd.f32 %v552_v21, %v551_v18  ;;  %v558_v40 = vsel %vm410_vm0, %v523_v8, 0.0  ;;  %v9811_v17 = vsub.f32 %v9636_v23, %v9752_v63  ;;  %v526_v45 = vmul.f32 %v9797_v11, %v9797_v11 }
 0x127   : > { %v560_v46 = vsel %vm410_vm0, %v524_v31, 0.0  ;;  %v9818_v20 = vsub.f32 %v9641_v26, %v9752_v63  ;;  %v527_v49 = vmul.f32 %v9804_v14, %v9804_v14  ;;  %v562_v51 = vsel %vm410_vm0, %v525_v39, 0.0 }
 0x128   : > { %v555_v30 = vadd.f32 %v554_v27, %v553_v22  ;;  %v9825_v23 = vsub.f32 %v9646_v29, %v9752_v63  ;;  %v528_v54 = vmul.f32 %v9811_v17, %v9811_v17  ;;  %v564_v55 = vsel %vm410_vm0, %v526_v45, 0.0 }
 0x129   : > { %v9832_v26 = vsub.f32 %v9651_v32, %v9752_v63  ;;  %v529_v58 = vmul.f32 %v9818_v20, %v9818_v20  ;;  %v566_v60 = vsel %vm410_vm0, %v527_v49, 0.0  ;;  %v9839_v29 = vsub.f32 %v9656_v35, %v9752_v63 }
 0x12a   : > { %v557_v36 = vadd.f32 %v556_v34, %v555_v30  ;;  %v530_v13 = vmul.f32 %v9825_v23, %v9825_v23  ;;  %v568_v16 = vsel %vm410_vm0, %v528_v54, 0.0  ;;  %v9846_v32 = vsub.f32 %v9661_v38, %v9752_v63 }
 0x12b   : > { %v531_v4 = vmul.f32 %v9832_v26, %v9832_v26  ;;  %v570_v18 = vsel %vm410_vm0, %v529_v58, 0.0  ;;  %v9853_v35 = vsub.f32 %v9666_v41, %v9752_v63  ;;  %v532_v22 = vmul.f32 %v9839_v29, %v9839_v29 }
 0x12c   : > { %v559_v43 = vadd.f32 %v558_v40, %v557_v36  ;;  %v572_v8 = vsel %vm410_vm0, %v530_v13, 0.0  ;;  %v9860_v38 = vsub.f32 %v9671_v44, %v9752_v63  ;;  %v533_v30 = vmul.f32 %v9846_v32, %v9846_v32 }
 0x12d   : > { %v574_v31 = vsel %vm410_vm0, %v531_v4, 0.0  ;;  %v9867_v41 = vsub.f32 %v9676_v47, %v9752_v63  ;;  %v534_v36 = vmul.f32 %v9853_v35, %v9853_v35  ;;  %v576_v39 = vsel %vm410_vm0, %v532_v22, 0.0 }
 0x12e   : > { %v561_v48 = vadd.f32 %v560_v46, %v559_v43  ;;  %v9874_v44 = vsub.f32 %v9681_v50, %v9752_v63  ;;  %v535_v43 = vmul.f32 %v9860_v38, %v9860_v38  ;;  %v578_v45 = vsel %vm410_vm0, %v533_v30, 0.0 }
 0x12f   : > { %v9881_v47 = vsub.f32 %v9686_v53, %v9752_v63  ;;  %v580_v49 = vsel %vm410_vm0, %v534_v36, 0.0  ;;  %v9888_v50 = vsub.f32 %v9691_v56, %v9752_v63  ;;  %v9895_v53 = vsub.f32 %v9696_v59, %v9752_v63 }
 0x130   : > { %v563_v52 = vadd.f32 %v562_v51, %v561_v48  ;;  %v536_v48 = vmul.f32 %v9867_v41, %v9867_v41  ;;  %v582_v54 = vsel %vm410_vm0, %v535_v43, 0.0  ;;  %v9902_v56 = vsub.f32 %v9701_v62, %v9752_v63 }
 0x131   : > { %v9909_v59 = vsub.f32 %v9706_v6, %v9752_v63  ;;  %v9916_v62 = vsub.f32 %v9711_v10, %v9752_v63  ;;  %v9923_v6 = vsub.f32 %v9716_v15, %v9752_v63  ;;  %v9930_v10 = vsub.f32 %v9721_v19, %v9752_v63 }
 0x132   : > { %v565_v57 = vadd.f32 %v564_v55, %v563_v52  ;;  %v537_v52 = vmul.f32 %v9874_v44, %v9874_v44  ;;  %v584_v58 = vsel %vm410_vm0, %v536_v48, 0.0  ;;  %v9937_v15 = vsub.f32 %v9726_v24, %v9752_v63 }
 0x133   : > { %v9944_v19 = vsub.f32 %v9731_v28, %v9752_v63  ;;  %v9951_v24 = vsub.f32 %v9736_v33, %v9752_v63  ;;  %v9958_v28 = vsub.f32 %v9741_v37, %v9752_v63  ;;  %v9965_v33 = vsub.f32 %v9746_v42, %v9752_v63 }
 0x134   : > { %v567_v61 = vadd.f32 %v566_v60, %v565_v57  ;;  %v538_v57 = vmul.f32 %v9881_v47, %v9881_v47  ;;  %v586_v13 = vsel %vm410_vm0, %v537_v52, 0.0 }
 0x135   : > { %v549_v37 = vmul.f32 %v9958_v28, %v9958_v28 }
 0x136   : > { %v569_v2 = vadd.f32 %v568_v16, %v567_v61  ;;  %v539_v61 = vmul.f32 %v9888_v50, %v9888_v50  ;;  %v588_v4 = vsel %vm410_vm0, %v538_v57, 0.0 }
 0x137   : > { %v610_v42 = vsel %vm410_vm0, %v549_v37, 0.0 }
 0x138   : > { %v571_v21 = vadd.f32 %v570_v18, %v569_v2  ;;  %v540_v2 = vmul.f32 %v9895_v53, %v9895_v53  ;;  %v590_v22 = vsel %vm410_vm0, %v539_v61, 0.0 }
 0x13a   : > { %v573_v27 = vadd.f32 %v572_v8, %v571_v21  ;;  %v541_v21 = vmul.f32 %v9902_v56, %v9902_v56  ;;  %v592_v30 = vsel %vm410_vm0, %v540_v2, 0.0 }
 0x13c   : > { %v575_v34 = vadd.f32 %v574_v31, %v573_v27  ;;  %v542_v27 = vmul.f32 %v9909_v59, %v9909_v59  ;;  %v594_v36 = vsel %vm410_vm0, %v541_v21, 0.0 }
 0x13e   : > { %v577_v40 = vadd.f32 %v576_v39, %v575_v34  ;;  %v543_v34 = vmul.f32 %v9916_v62, %v9916_v62  ;;  %v596_v43 = vsel %vm410_vm0, %v542_v27, 0.0 }
 0x140   : > { %v579_v46 = vadd.f32 %v578_v45, %v577_v40  ;;  %v544_v40 = vmul.f32 %v9923_v6, %v9923_v6  ;;  %v598_v48 = vsel %vm410_vm0, %v543_v34, 0.0 }
 0x142   : > { %v581_v51 = vadd.f32 %v580_v49, %v579_v46  ;;  %v545_v46 = vmul.f32 %v9930_v10, %v9930_v10  ;;  %v600_v52 = vsel %vm410_vm0, %v544_v40, 0.0 }
 0x144   : > { %v583_v55 = vadd.f32 %v582_v54, %v581_v51  ;;  %v546_v51 = vmul.f32 %v9937_v15, %v9937_v15  ;;  %v602_v57 = vsel %vm410_vm0, %v545_v46, 0.0  ;;  %v1102_v46 = vld [vmem:[#allocation2 + $0x1] sm:$0xff] }
 0x146   : > { %v585_v60 = vadd.f32 %v584_v58, %v583_v55  ;;  %v547_v55 = vmul.f32 %v9944_v19, %v9944_v19  ;;  %v604_v61 = vsel %vm410_vm0, %v546_v51, 0.0 }
 0x148   : > { %v587_v16 = vadd.f32 %v586_v13, %v585_v60  ;;  %v548_v60 = vmul.f32 %v9951_v24, %v9951_v24 }
 0x14a   : > { %v589_v18 = vadd.f32 %v588_v4, %v587_v16  ;;  %v606_v16 = vsel %vm410_vm0, %v547_v55, 0.0  ;;  %v550_v4 = vmul.f32 %v9965_v33, %v9965_v33 }
 0x14c   : > { %v591_v8 = vadd.f32 %v590_v22, %v589_v18  ;;  %v608_v18 = vsel %vm410_vm0, %v548_v60, 0.0  ;;  %v612_v22 = vsel %vm410_vm0, %v550_v4, 0.0  ;;  %v10018_v4 = vld [vmem:[%s11792_s2] ss:$0 sm:$0xff] }
 0x14e   : > { %v593_v31 = vadd.f32 %v592_v30, %v591_v8 }
 0x150   : > { %v595_v39 = vadd.f32 %v594_v36, %v593_v31 }
 0x152   : > { %v597_v45 = vadd.f32 %v596_v43, %v595_v39 }
 0x154   : > { %v599_v49 = vadd.f32 %v598_v48, %v597_v45  ;;  %v7133_v45 = vld [vmem:[%s11793_s3 + $0x2] sm:$0x3]  ;;  %v1103_v48 = vld [vmem:[#allocation2 + $0x9] sm:$0xff] }
 0x155   : > { %9105 = vmatprep.subr.msk.bf16.mxu0 %vm1200_vm2, %v7133_v45  ;;  %v1134_v51 = vpack.c.bf16 %v1103_v48, %v1102_v46 }
 0x156   : > { %v601_v54 = vadd.f32 %v600_v52, %v599_v49  ;;  %v1202_v49 = vsel %vm1200_vm2, %v7133_v45, 0  ;;  %v9986_v52 = vld [vmem:[%s11793_s3] sm:$0x3] }
 0x157   : > { %7850 = vmatpush3.bf16.msra.mxu0 %v1202_v49  ;;  %7851 = vmatprep.mubr.msk.bf16.mxu0 %vm410_vm0, %v1134_v51 }
 0x158   : > { %v603_v58 = vadd.f32 %v602_v57, %v601_v54  ;;  %9106 = vmatprep.subr.msk.bf16.mxu0 %vm1200_vm2, %v9986_v52 }
 0x15a   : > { %v605_v13 = vadd.f32 %v604_v61, %v603_v58  ;;  %v10002_v61 = vld [vmem:[%s11791_s1] ss:$0 sm:$0xff] }
 0x15c   : > { %v607_v2 = vadd.f32 %v606_v16, %v605_v13 }
 0x15e   : > { %v609_v21 = vadd.f32 %v608_v18, %v607_v2 }
 0x160   : > { %v611_v63 = vadd.f32 %v610_v42, %v609_v21 }
 0x162   : > { %v613_v8 = vadd.f32 %v612_v22, %v611_v63 }
 0x164   : > { %614 = vadd.xlane.f32.xlu0 %v613_v8 }
 0x1f1   : > { %v615_v27 = vpop.xlane.xlu0 %614 }
 0x1f2   : > { %v616_v30 = vrot.slane %v615_v27, 4 }
 0x1f4   : > { %v617_v31 = vadd.f32 %v616_v30, %v615_v27 }
 0x1f6   : > { %v618_v34 = vrot.slane %v617_v31, 2 }
 0x1f8   : > { %v619_v36 = vadd.f32 %v618_v34, %v617_v31 }
 0x1fa   : > { %v620_v39 = vrot.slane %v619_v36, 1 }
 0x1fc   : > { %v621_v40 = vadd.f32 %v620_v39, %v619_v36 }
 0x1fe   : > { %9127 = vpush %v621_v40 }
 0x22f   : > { %s9128_s21 = spop %9127 }
 0x230   : > { %s625_s22 = smul.f32 0.0009765625, %s9128_s21 }
 0x232   : > { %s626_s23 = sadd.f32 1e-05, %s625_s22 }
 0x234   : > { %v627_v43 = vstv %s626_s23 }
 0x235   : > { %9140 = vrsqrt.f32 %v627_v43 }
 0x23f   : > { %v9141_v54 = vpop.eup %9140 }
 0x240   : > { %9129 = vpush %v9141_v54 }
 0x271   : > { %s9130_s28 = spop %9129 }
 0x272   : > { %v9991_v55 = vstv %s9130_s28  ;;  %s11670_s28 = scalar_lea.vmem %s11800_s10, %s7489_s15 }
 0x273   : > { %v642_v57 = vmul.f32 %v9991_v55, %v9825_v23  ;;  %v643_v58 = vmul.f32 %v9991_v55, %v9832_v26  ;;  %v644_v60 = vmul.f32 %v9991_v55, %v9839_v29  ;;  %v645_v13 = vmul.f32 %v9991_v55, %v9846_v32 }
 0x274   : > { %v646_v37 = vmul.f32 %v9991_v55, %v9853_v35  ;;  %v647_v23 = vmul.f32 %v9991_v55, %v9860_v38  ;;  %v648_v26 = vmul.f32 %v9991_v55, %v9867_v41  ;;  %v649_v32 = vmul.f32 %v9991_v55, %v9874_v44 }
 0x275   : > { %v681_v16 = vmul.f32 %v10002_v61, %v642_v57  ;;  %v682_v29 = vmul.f32 %v10002_v61, %v643_v58  ;;  %v683_v2 = vmul.f32 %v10002_v61, %v644_v60  ;;  %v650_v35 = vmul.f32 %v9991_v55, %v9881_v47 }
 0x276   : > { %v684_v38 = vmul.f32 %v10002_v61, %v645_v13  ;;  %v651_v41 = vmul.f32 %v9991_v55, %v9888_v50  ;;  %v652_v18 = vmul.f32 %v9991_v55, %v9895_v53  ;;  %v653_v21 = vmul.f32 %v9991_v55, %v9902_v56 }
 0x277   : > { %v685_v42 = vmul.f32 %v10002_v61, %v646_v37  ;;  %v654_v63 = vmul.f32 %v9991_v55, %v9909_v59  ;;  %v655_v44 = vmul.f32 %v9991_v55, %v9916_v62  ;;  %v656_v47 = vmul.f32 %v9991_v55, %v9923_v6 }
 0x278   : > { %v686_v22 = vmul.f32 %v10002_v61, %v647_v23  ;;  %v687_v50 = vmul.f32 %v10002_v61, %v648_v26  ;;  %v10041_v53 = vadd.f32 %v10018_v4, %v681_v16  ;;  %v10044_v56 = vadd.f32 %v10018_v4, %v682_v29 }
 0x279   : > { %v10047_v8 = vadd.f32 %v10018_v4, %v683_v2  ;;  %v657_v59 = vmul.f32 %v9991_v55, %v9930_v10  ;;  %v658_v62 = vmul.f32 %v9991_v55, %v9937_v15  ;;  %v688_v6 = vmul.f32 %v10002_v61, %v649_v32 }
 0x27a   : > { %v10055_v27 = vadd.f32 %v10018_v4, %v684_v38  ;;  %v659_v30 = vmul.f32 %v9991_v55, %v9944_v19  ;;  %v660_v31 = vmul.f32 %v9991_v55, %v9951_v24  ;;  %v689_v34 = vmul.f32 %v10002_v61, %v650_v35 }
 0x27b   : > { %v10063_v36 = vadd.f32 %v10018_v4, %v685_v42  ;;  %v661_v10 = vmul.f32 %v9991_v55, %v9958_v28  ;;  %v690_v15 = vmul.f32 %v10002_v61, %v651_v41  ;;  %v691_v39 = vmul.f32 %v10002_v61, %v652_v18 }
 0x27c   : > { %v10070_v40 = vadd.f32 %v10018_v4, %v686_v22  ;;  %v10073_v19 = vadd.f32 %v10018_v4, %v687_v50  ;;  %v7112_v24 = vmul.f32 -1.442695, %v10041_v53  ;;  %v7113_v43 = vmul.f32 -1.442695, %v10044_v56 }
 0x27d   : > { %v7114_v45 = vmul.f32 -1.442695, %v10047_v8  ;;  %v662_v46 = vmul.f32 %v9991_v55, %v9965_v33  ;;  %v692_v28 = vmul.f32 %v10002_v61, %v653_v21  ;;  %v10082_v48 = vadd.f32 %v10018_v4, %v688_v6 }
 0x27e   : > { %v7115_v49 = vmul.f32 -1.442695, %v10055_v27  ;;  %v693_v51 = vmul.f32 %v10002_v61, %v654_v63  ;;  %v10087_v54 = vadd.f32 %v10018_v4, %v689_v34  ;;  %9142 = vpow2.f32 %v7112_v24 }
 0x27f   : > { %v7116_v57 = vmul.f32 -1.442695, %v10063_v36  ;;  %v694_v58 = vmul.f32 %v10002_v61, %v655_v44  ;;  %v10092_v60 = vadd.f32 %v10018_v4, %v690_v15  ;;  %9144 = vpow2.f32 %v7113_v43 }
 0x280   : > { %v7117_v33 = vmul.f32 -1.442695, %v10070_v40  ;;  %v695_v13 = vmul.f32 %v10002_v61, %v656_v47  ;;  %v10097_v37 = vadd.f32 %v10018_v4, %v691_v39  ;;  %9146 = vpow2.f32 %v7114_v45 }
 0x281   : > { %v7118_v23 = vmul.f32 -1.442695, %v10073_v19  ;;  %v696_v26 = vmul.f32 %v10002_v61, %v657_v59  ;;  %v10102_v16 = vadd.f32 %v10018_v4, %v692_v28  ;;  %9148 = vpow2.f32 %v7115_v49 }
 0x282   : > { %v7119_v29 = vmul.f32 -1.442695, %v10082_v48  ;;  %v697_v2 = vmul.f32 %v10002_v61, %v658_v62  ;;  %v10107_v32 = vadd.f32 %v10018_v4, %v693_v51  ;;  %9150 = vpow2.f32 %v7116_v57 }
 0x283   : > { %v7120_v35 = vmul.f32 -1.442695, %v10087_v54  ;;  %v698_v38 = vmul.f32 %v10002_v61, %v659_v30  ;;  %v10112_v41 = vadd.f32 %v10018_v4, %v694_v58  ;;  %9152 = vpow2.f32 %v7117_v33 }
 0x284   : > { %v7121_v18 = vmul.f32 -1.442695, %v10092_v60  ;;  %v699_v21 = vmul.f32 %v10002_v61, %v660_v31  ;;  %v10117_v42 = vadd.f32 %v10018_v4, %v695_v13  ;;  %9154 = vpow2.f32 %v7118_v23 }
 0x285   : > { %v7122_v63 = vmul.f32 -1.442695, %v10097_v37  ;;  %v700_v44 = vmul.f32 %v10002_v61, %v661_v10  ;;  %v10122_v47 = vadd.f32 %v10018_v4, %v696_v26  ;;  %9156 = vpow2.f32 %v7119_v29 }
 0x286   : > { %v7123_v22 = vmul.f32 -1.442695, %v10102_v16  ;;  %v701_v50 = vmul.f32 %v10002_v61, %v662_v46  ;;  %v10127_v59 = vadd.f32 %v10018_v4, %v697_v2  ;;  %9158 = vpow2.f32 %v7120_v35 }
 0x287   : > { %v7124_v62 = vmul.f32 -1.442695, %v10107_v32  ;;  %v10131_v6 = vadd.f32 %v10018_v4, %v698_v38  ;;  %9160 = vpow2.f32 %v7121_v18  ;;  %v7125_v30 = vmul.f32 -1.442695, %v10112_v41 }
 0x288   : > { %v9143_v31 = vpop.eup %9142  ;;  %v10135_v34 = vadd.f32 %v10018_v4, %v699_v21  ;;  %9162 = vpow2.f32 %v7122_v63  ;;  %v7126_v10 = vmul.f32 -1.442695, %v10117_v42  ;;  %v10139_v39 = vadd.f32 %v10018_v4, %v700_v44 }
 0x289   : > { %v9145_v15 = vpop.eup %9144  ;;  %9164 = vpow2.f32 %v7123_v22  ;;  %v7127_v24 = vmul.f32 -1.442695, %v10122_v47  ;;  %v10143_v45 = vadd.f32 %v10018_v4, %v701_v50  ;;  %v7128_v46 = vmul.f32 -1.442695, %v10127_v59 }
 0x28a   : > { %v9147_v43 = vpop.eup %9146  ;;  %9166 = vpow2.f32 %v7124_v62  ;;  %v7129_v49 = vmul.f32 -1.442695, %v10131_v6  ;;  %v7130_v57 = vmul.f32 -1.442695, %v10135_v34  ;;  %v7131_v33 = vmul.f32 -1.442695, %v10139_v39 }
 0x28b   : > { %v9149_v28 = vpop.eup %9148  ;;  %9168 = vpow2.f32 %v7125_v30  ;;  %v7132_v23 = vmul.f32 -1.442695, %v10143_v45  ;;  %v848_v29 = vadd.f32 1.0, %v9143_v31  ;;  %v849_v35 = vadd.f32 1.0, %v9145_v15 }
 0x28c   : > { %v9151_v51 = vpop.eup %9150  ;;  %9170 = vpow2.f32 %v7126_v10  ;;  %v850_v18 = vadd.f32 1.0, %v9147_v43  ;;  %v851_v63 = vadd.f32 1.0, %v9149_v28  ;;  %v631_v50 = vmul.f32 %v9991_v55, %v9756_v5 }
 0x28d   : > { %v9153_v58 = vpop.eup %9152  ;;  %9172 = vpow2.f32 %v7127_v24  ;;  %v852_v22 = vadd.f32 1.0, %v9151_v51  ;;  %v10154_v30 = vmul.f32 %v9991_v55, %v9797_v11  ;;  %v10158_v15 = vmul.f32 %v9991_v55, %v9804_v14 }
 0x28e   : > { %v9155_v13 = vpop.eup %9154  ;;  %9174 = vpow2.f32 %v7128_v46  ;;  %v853_v31 = vadd.f32 1.0, %v9153_v58  ;;  %v632_v43 = vmul.f32 %v9991_v55, %v9760_v7  ;;  %v640_v5 = vmul.f32 %v9991_v55, %v9811_v17 }
 0x28f   : > { %v9157_v26 = vpop.eup %9156  ;;  %9176 = vpow2.f32 %v7129_v49  ;;  %v854_v24 = vadd.f32 1.0, %v9155_v13  ;;  %v641_v11 = vmul.f32 %v9991_v55, %v9818_v20  ;;  %v670_v14 = vmul.f32 %v10002_v61, %v631_v50 }
 0x290   : > { %v9159_v2 = vpop.eup %9158  ;;  %9178 = vpow2.f32 %v7130_v57  ;;  %v855_v28 = vadd.f32 1.0, %v9157_v26  ;;  %v633_v57 = vmul.f32 %v9991_v55, %v9764_v9  ;;  %v634_v7 = vmul.f32 %v9991_v55, %v9768_v12 }
 0x291   : > { %v9161_v38 = vpop.eup %9160  ;;  %9180 = vpow2.f32 %v7131_v33  ;;  %v856_v51 = vadd.f32 1.0, %v9159_v2  ;;  %v635_v17 = vmul.f32 %v9991_v55, %v9776_v1  ;;  %v636_v26 = vmul.f32 %v9991_v55, %v9782_v3 }
 0x292   : > { %v9163_v21 = vpop.eup %9162  ;;  %9182 = vpow2.f32 %v7132_v23  ;;  %v857_v33 = vadd.f32 1.0, %v9161_v38  ;;  %v671_v23 = vmul.f32 %v10002_v61, %v632_v43  ;;  %v10177_v9 = vmul.f32 %v10002_v61, %v640_v5 }
 0x293   : > { %v9165_v44 = vpop.eup %9164  ;;  %9184 = vrcp.f32 %v848_v29  ;;  %v858_v13 = vadd.f32 1.0, %v9163_v21  ;;  %v10180_v2 = vmul.f32 %v10002_v61, %v641_v11  ;;  %v10183_v1 = vadd.f32 %v10018_v4, %v670_v14 }
 0x294   : > { %v9167_v62 = vpop.eup %9166  ;;  %9186 = vrcp.f32 %v849_v35  ;;  %v859_v35 = vadd.f32 1.0, %v9165_v44  ;;  %v673_v3 = vmul.f32 %v10002_v61, %v634_v7  ;;  %v10189_v44 = vadd.f32 %v10018_v4, %v671_v23 }
 0x295   : > { %v9169_v10 = vpop.eup %9168  ;;  %9188 = vrcp.f32 %v850_v18  ;;  %v860_v38 = vadd.f32 1.0, %v9167_v62  ;;  %v672_v18 = vmul.f32 %v10002_v61, %v633_v57  ;;  %v675_v62 = vmul.f32 %v10002_v61, %v636_v26 }
 0x296   : > { %v9171_v46 = vpop.eup %9170  ;;  %9190 = vrcp.f32 %v851_v63  ;;  %v861_v63 = vadd.f32 1.0, %v9169_v10  ;;  %v637_v5 = vmul.f32 %v9991_v55, %v9790_v25 }
 0x297   : > { %v9173_v49 = vpop.eup %9172  ;;  %9192 = vrcp.f32 %v852_v22  ;;  %v674_v22 = vmul.f32 %v10002_v61, %v635_v17 }
 0x298   : > { %v9175_v58 = vpop.eup %9174  ;;  %9194 = vrcp.f32 %v853_v31  ;;  %v862_v31 = vadd.f32 1.0, %v9171_v46  ;;  %v863_v43 = vadd.f32 1.0, %v9173_v49  ;;  %v10199_v49 = vadd.f32 %v10018_v4, %v672_v18 }
 0x299   : > { %v9177_v20 = vpop.eup %9176  ;;  %9196 = vrcp.f32 %v854_v24  ;;  %v676_v17 = vmul.f32 %v10002_v61, %v637_v5 }
 0x29a   : > { %v9179_v29 = vpop.eup %9178  ;;  %9198 = vrcp.f32 %v855_v28  ;;  %v864_v28 = vadd.f32 1.0, %v9175_v58  ;;  %v865_v57 = vadd.f32 1.0, %v9177_v20  ;;  %v10204_v58 = vadd.f32 %v10018_v4, %v673_v3 }
 0x29b   : > { %v9181_v12 = vpop.eup %9180  ;;  %9200 = vrcp.f32 %v856_v51  ;;  %v7101_v51 = vmul.f32 -1.442695, %v10183_v1  ;;  %v866_v55 = vadd.f32 1.0, %v9179_v29 }
 0x29c   : > { %v9183_v21 = vpop.eup %9182  ;;  %9202 = vrcp.f32 %v857_v33  ;;  %v867_v7 = vadd.f32 1.0, %v9181_v12 }
 0x29d   : > { %v9185_v50 = vpop.eup %9184  ;;  %9204 = vrcp.f32 %v858_v13  ;;  %v868_v13 = vadd.f32 1.0, %v9183_v21  ;;  %v7103_v21 = vmul.f32 -1.442695, %v10199_v49 }
 0x29e   : > { %v9187_v24 = vpop.eup %9186  ;;  %9206 = vrcp.f32 %v859_v35  ;;  %v944_v10 = vmul.f32 %v9185_v50, %v10041_v53  ;;  %v678_v35 = vmul.f32 %v10002_v61, %v10158_v15 }
 0x29f   : > { %v9189_v11 = vpop.eup %9188  ;;  %9208 = vrcp.f32 %v860_v38  ;;  %v945_v46 = vmul.f32 %v9187_v24, %v10044_v56  ;;  %v10225_v38 = vadd.f32 %v10018_v4, %v675_v62 }
 0x2a0   : > { %v9191_v14 = vpop.eup %9190  ;;  %9210 = vrcp.f32 %v861_v63  ;;  %v946_v33 = vmul.f32 %v9189_v11, %v10047_v8  ;;  %1032 = vst.msk [vmem:[#allocation2 + $0x99] sm:$0xff] %vm410_vm0, %v944_v10  ;;  %v7104_v63 = vmul.f32 -1.442695, %v10204_v58 }
 0x2a1   : > { %v9193_v25 = vpop.eup %9192  ;;  %9212 = vrcp.f32 %v862_v31  ;;  %v947_v53 = vmul.f32 %v9191_v14, %v10055_v27  ;;  %1033 = vst.msk [vmem:[#allocation2 + $0xa9] sm:$0xff] %vm410_vm0, %v945_v46  ;;  %v677_v27 = vmul.f32 %v10002_v61, %v10154_v30  ;;  %v7102_v30 = vmul.f32 -1.442695, %v10189_v44 }
 0x2a2   : > { %v9195_v56 = vpop.eup %9194  ;;  %9214 = vrcp.f32 %v863_v43  ;;  %v948_v8 = vmul.f32 %v9193_v25, %v10063_v36  ;;  %1034 = vst.msk [vmem:[#allocation2 + $0xb1] sm:$0xff] %vm410_vm0, %v946_v33  ;;  %v10217_v36 = vadd.f32 %v10018_v4, %v674_v22  ;;  %v10231_v61 = vadd.f32 %v10018_v4, %v676_v17 }
 0x2a3   : > { %v9197_v20 = vpop.eup %9196  ;;  %9216 = vrcp.f32 %v864_v28  ;;  %v949_v23 = vmul.f32 %v9195_v56, %v10070_v40  ;;  %1035 = vst.msk [vmem:[#allocation2 + $0xc1] sm:$0xff] %vm410_vm0, %v947_v53  ;;  %v10237_v3 = vadd.f32 %v10018_v4, %v677_v27  ;;  %v10243_v31 = vadd.f32 %v10018_v4, %v678_v35 }
 0x2a4   : > { %v9199_v26 = vpop.eup %9198  ;;  %9218 = vrcp.f32 %v865_v57  ;;  %v950_v29 = vmul.f32 %v9197_v20, %v10073_v19  ;;  %1036 = vst.msk [vmem:[#allocation2 + $0xc9] sm:$0xff] %vm410_vm0, %v948_v8  ;;  %v7105_v50 = vmul.f32 -1.442695, %v10217_v36  ;;  %v7106_v24 = vmul.f32 -1.442695, %v10225_v38 }
 0x2a5   : > { %v9201_v12 = vpop.eup %9200  ;;  %9220 = vrcp.f32 %v866_v55  ;;  %v951_v40 = vmul.f32 %v9199_v26, %v10082_v48  ;;  %1037 = vst.msk [vmem:[#allocation2 + $0xd9] sm:$0xff] %vm410_vm0, %v949_v23  ;;  %v10250_v43 = vadd.f32 %v10018_v4, %v10177_v9  ;;  %v7107_v10 = vmul.f32 -1.442695, %v10231_v61 }
 0x2a6   : > { %v9203_v19 = vpop.eup %9202  ;;  %9222 = vrcp.f32 %v867_v7  ;;  %v952_v18 = vmul.f32 %v9201_v12, %v10087_v54  ;;  %1038 = vst.msk [vmem:[#allocation2 + $0xe1] sm:$0xff] %vm410_vm0, %v950_v29  ;;  %v7108_v9 = vmul.f32 -1.442695, %v10237_v3  ;;  %v7109_v46 = vmul.f32 -1.442695, %v10243_v31 }
 0x2a7   : > { %v9205_v15 = vpop.eup %9204  ;;  %9224 = vrcp.f32 %v868_v13  ;;  %v953_v48 = vmul.f32 %v9203_v19, %v10092_v60  ;;  %1039 = vst.msk [vmem:[#allocation2 + $0xf1] sm:$0xff] %vm410_vm0, %v951_v40 }
 0x2a8   : > { %v9207_v22 = vpop.eup %9206  ;;  %v954_v54 = vmul.f32 %v9205_v15, %v10097_v37  ;;  %1040 = vst.msk [vmem:[#allocation2 + $0xf9] sm:$0xff] %vm410_vm0, %v952_v18  ;;  %9226 = vpow2.f32 %v7101_v51 }
 0x2a9   : > { %v9209_v62 = vpop.eup %9208  ;;  %v955_v60 = vmul.f32 %v9207_v22, %v10102_v16  ;;  %1041 = vst.msk [vmem:[#allocation2 + $0x109] sm:$0xff] %vm410_vm0, %v953_v48  ;;  %9228 = vpow2.f32 %v7102_v30  ;;  %v10257_v16 = vadd.f32 %v10018_v4, %v10180_v2 }
 0x2aa   : > { %v9211_v37 = vpop.eup %9210  ;;  %v956_v5 = vmul.f32 %v9209_v62, %v10107_v32  ;;  %1042 = vst.msk [vmem:[#allocation2 + $0x111] sm:$0xff] %vm410_vm0, %v954_v54  ;;  %9230 = vpow2.f32 %v7103_v21 }
 0x2ab   : > { %v9213_v11 = vpop.eup %9212  ;;  %v957_v28 = vmul.f32 %v9211_v37, %v10112_v41  ;;  %1043 = vst.msk [vmem:[#allocation2 + $0x121] sm:$0xff] %vm410_vm0, %v955_v60  ;;  %9232 = vpow2.f32 %v7104_v63  ;;  %v7110_v41 = vmul.f32 -1.442695, %v10250_v43 }
 0x2ac   : > { %v9215_v51 = vpop.eup %9214  ;;  %v958_v32 = vmul.f32 %v9213_v11, %v10117_v42  ;;  %1044 = vst.msk [vmem:[#allocation2 + $0x129] sm:$0xff] %vm410_vm0, %v956_v5  ;;  %9234 = vpow2.f32 %v7105_v50  ;;  %v7111_v42 = vmul.f32 -1.442695, %v10257_v16 }
 0x2ad   : > { %v9217_v14 = vpop.eup %9216  ;;  %v959_v4 = vmul.f32 %v9215_v51, %v10122_v47  ;;  %1045 = vst.msk [vmem:[#allocation2 + $0x139] sm:$0xff] %vm410_vm0, %v957_v28  ;;  %9236 = vpow2.f32 %v7106_v24 }
 0x2ae   : > { %v9219_v2 = vpop.eup %9218  ;;  %v960_v57 = vmul.f32 %v9217_v14, %v10127_v59  ;;  %1046 = vst.msk [vmem:[#allocation2 + $0x141] sm:$0xff] %vm410_vm0, %v958_v32  ;;  %9238 = vpow2.f32 %v7107_v10 }
 0x2af   : > { %v9221_v33 = vpop.eup %9220  ;;  %v961_v25 = vmul.f32 %v9219_v2, %v10131_v6  ;;  %1047 = vst.msk [vmem:[#allocation2 + $0x151] sm:$0xff] %vm410_vm0, %v959_v4  ;;  %9240 = vpow2.f32 %v7108_v9 }
 0x2b0   : > { %v9223_v47 = vpop.eup %9222  ;;  %v962_v55 = vmul.f32 %v9221_v33, %v10135_v34  ;;  %1048 = vst.msk [vmem:[#allocation2 + $0x159] sm:$0xff] %vm410_vm0, %v960_v57  ;;  %9242 = vpow2.f32 %v7109_v46 }
 0x2b1   : > { %v9225_v53 = vpop.eup %9224  ;;  %v963_v59 = vmul.f32 %v9223_v47, %v10139_v39  ;;  %1049 = vst.msk [vmem:[#allocation2 + $0x169] sm:$0xff] %vm410_vm0, %v961_v25  ;;  %9244 = vpow2.f32 %v7110_v41 }
 0x2b2   : > { %v9227_v56 = vpop.eup %9226  ;;  %v964_v7 = vmul.f32 %v9225_v53, %v10143_v45  ;;  %1050 = vst.msk [vmem:[#allocation2 + $0x171] sm:$0xff] %vm410_vm0, %v962_v55  ;;  %9246 = vpow2.f32 %v7111_v42 }
 0x2b3   : > { %v9229_v6 = vpop.eup %9228  ;;  %1051 = vst.msk [vmem:[#allocation2 + $0x181] sm:$0xff] %vm410_vm0, %v963_v59  ;;  %v837_v8 = vadd.f32 1.0, %v9227_v56  ;;  %v1115_v59 = vld [vmem:[#allocation2 + $0x99] sm:$0xff] }
 0x2b4   : > { %v9231_v34 = vpop.eup %9230  ;;  %1052 = vst.msk [vmem:[#allocation2 + $0x189] sm:$0xff] %vm410_vm0, %v964_v7  ;;  %v838_v17 = vadd.f32 1.0, %v9229_v6  ;;  %v1116_v6 = vld [vmem:[#allocation2 + $0xa9] sm:$0xff] }
 0x2b5   : > { %v9233_v20 = vpop.eup %9232  ;;  %9248 = vrcp.f32 %v837_v8  ;;  %v839_v39 = vadd.f32 1.0, %v9231_v34  ;;  %v1117_v8 = vld [vmem:[#allocation2 + $0xb1] sm:$0xff]  ;;  %v1118_v34 = vld [vmem:[#allocation2 + $0xc1] sm:$0xff] }
 0x2b6   : > { %v9235_v13 = vpop.eup %9234  ;;  %9250 = vrcp.f32 %v838_v17  ;;  %v840_v23 = vadd.f32 1.0, %v9233_v20  ;;  %v1119_v17 = vld [vmem:[#allocation2 + $0xc9] sm:$0xff]  ;;  %v10336_v20 = vpack.c.bf16 %v1117_v8, %v1116_v6  ;;  %v1072_v6 = vld [vmem:[#allocation2 + $0xe0] sm:$0xff] }
 0x2b7   : > { %v9237_v27 = vpop.eup %9236  ;;  %9252 = vrcp.f32 %v839_v39  ;;  %v841_v45 = vadd.f32 1.0, %v9235_v13  ;;  %v10338_v39 = vpack.c.bf16 %v1119_v17, %v1118_v34  ;;  %v1120_v13 = vld [vmem:[#allocation2 + $0xd9] sm:$0xff]  ;;  %v1073_v8 = vld [vmem:[#allocation2 + $0xf0] sm:$0xff] }
 0x2b8   : > { %v9239_v26 = vpop.eup %9238  ;;  %9254 = vrcp.f32 %v840_v23  ;;  %v842_v29 = vadd.f32 1.0, %v9237_v27  ;;  %v1121_v23 = vld [vmem:[#allocation2 + $0xe1] sm:$0xff]  ;;  %v1122_v27 = vld [vmem:[#allocation2 + $0xf1] sm:$0xff] }
 0x2b9   : > { %v9241_v35 = vpop.eup %9240  ;;  %9256 = vrcp.f32 %v841_v45  ;;  %v843_v12 = vadd.f32 1.0, %v9239_v26  ;;  %v1123_v45 = vld [vmem:[#allocation2 + $0xf9] sm:$0xff]  ;;  %v10344_v26 = vpack.c.bf16 %v1121_v23, %v1120_v13  ;;  %v1075_v23 = vld [vmem:[#allocation2 + $0x108] sm:$0xff] }
 0x2ba   : > { %v9243_v40 = vpop.eup %9242  ;;  %9258 = vrcp.f32 %v842_v29  ;;  %v844_v30 = vadd.f32 1.0, %v9241_v35  ;;  %v10346_v29 = vpack.c.bf16 %v1123_v45, %v1122_v27  ;;  %v1124_v35 = vld [vmem:[#allocation2 + $0x109] sm:$0xff]  ;;  %v1074_v34 = vld [vmem:[#allocation2 + $0xf8] sm:$0xff]  ;;  %v1077_v45 = vld [vmem:[#allocation2 + $0x120] sm:$0xff] }
 0x2bb   : > { %v9245_v19 = vpop.eup %9244  ;;  %9260 = vrcp.f32 %v843_v12  ;;  %v845_v18 = vadd.f32 1.0, %v9243_v40  ;;  %v1125_v12 = vld [vmem:[#allocation2 + $0x111] sm:$0xff]  ;;  %v1126_v40 = vld [vmem:[#allocation2 + $0x121] sm:$0xff]  ;;  %v10416_v13 = vpack.c.bf16 %v1074_v34, %v1073_v8 }
 0x2bc   : > { %v9247_v21 = vpop.eup %9246  ;;  %9262 = vrcp.f32 %v844_v30  ;;  %v846_v15 = vadd.f32 1.0, %v9245_v19  ;;  %v1127_v30 = vld [vmem:[#allocation2 + $0x129] sm:$0xff]  ;;  %v10352_v19 = vpack.c.bf16 %v1125_v12, %v1124_v35 }
 0x2bd   : > { %9264 = vrcp.f32 %v845_v18  ;;  %v847_v48 = vadd.f32 1.0, %v9247_v21  ;;  %v10354_v18 = vpack.c.bf16 %v1127_v30, %v1126_v40  ;;  %v1128_v21 = vld [vmem:[#allocation2 + $0x139] sm:$0xff]  ;;  %v1076_v27 = vld [vmem:[#allocation2 + $0x110] sm:$0xff]  ;;  %v1078_v35 = vld [vmem:[#allocation2 + $0x128] sm:$0xff] }
 0x2be   : > { %9266 = vrcp.f32 %v846_v15  ;;  %v1129_v15 = vld [vmem:[#allocation2 + $0x141] sm:$0xff]  ;;  %v10422_v12 = vpack.c.bf16 %v1076_v27, %v1075_v23  ;;  %v10424_v40 = vpack.c.bf16 %v1078_v35, %v1077_v45  ;;  %v1079_v30 = vld [vmem:[#allocation2 + $0x138] sm:$0xff]  ;;  %v1591_v23 = vld [vmem:[#allocation2 + $0xaa] sm:$0xff] }
 0x2bf   : > { %v9249_v63 = vpop.eup %9248  ;;  %9268 = vrcp.f32 %v847_v48  ;;  %v1130_v48 = vld [vmem:[#allocation2 + $0x151] sm:$0xff]  ;;  %v1593_v45 = vld [vmem:[#allocation2 + $0xc2] sm:$0xff] }
 0x2c0   : > { %v9251_v22 = vpop.eup %9250  ;;  %v933_v54 = vmul.f32 %v9249_v63, %v10183_v1  ;;  %v1131_v63 = vld [vmem:[#allocation2 + $0x159] sm:$0xff]  ;;  %v1594_v35 = vld [vmem:[#allocation2 + $0xca] sm:$0xff] }
 0x2c1   : > { %v9253_v50 = vpop.eup %9252  ;;  %v934_v62 = vmul.f32 %v9251_v22, %v10189_v44  ;;  %v10360_v22 = vpack.c.bf16 %v1129_v15, %v1128_v21  ;;  %v1080_v21 = vld [vmem:[#allocation2 + $0x140] sm:$0xff]  ;;  %v1081_v15 = vld [vmem:[#allocation2 + $0x150] sm:$0xff] }
 0x2c2   : > { %v9255_v60 = vpop.eup %9254  ;;  %1021 = vst.msk [vmem:[#allocation2 + $0x19] sm:$0xff] %vm410_vm0, %v933_v54  ;;  %v935_v24 = vmul.f32 %v9253_v50, %v10199_v49  ;;  %v10362_v54 = vpack.c.bf16 %v1131_v63, %v1130_v48  ;;  %v1053_v50 = vld [vmem:[#allocation2] sm:$0xff]  ;;  %v1082_v48 = vld [vmem:[#allocation2 + $0x158] sm:$0xff]  ;;  %v10430_v63 = vpack.c.bf16 %v1080_v21, %v1079_v30  ;;  %v10475_v21 = vpack.c.bf16 %v1594_v35, %v1593_v45  ;;  %v7217_v45 = vld [vmem:[%s11793_s3 + $0xa] sm:$0x3] }
 0x2c3   : > { %v9257_v37 = vpop.eup %9256  ;;  %1022 = vst.msk [vmem:[#allocation2 + $0x21] sm:$0xff] %vm410_vm0, %v934_v62  ;;  %v936_v5 = vmul.f32 %v9255_v60, %v10204_v58  ;;  %v1054_v62 = vld [vmem:[#allocation2 + $0x8] sm:$0xff]  ;;  %v1592_v27 = vld [vmem:[#allocation2 + $0xb2] sm:$0xff] }
 0x2c4   : > { %v9259_v10 = vpop.eup %9258  ;;  %1023 = vst.msk [vmem:[#allocation2 + $0x31] sm:$0xff] %vm410_vm0, %v935_v24  ;;  %v937_v11 = vmul.f32 %v9257_v37, %v10217_v36  ;;  %v1132_v60 = vld [vmem:[#allocation2 + $0x169] sm:$0xff]  ;;  %v1133_v24 = vld [vmem:[#allocation2 + $0x171] sm:$0xff]  ;;  %v1085_v37 = vpack.c.bf16 %v1054_v62, %v1053_v50  ;;  %v10432_v50 = vpack.c.bf16 %v1082_v48, %v1081_v15  ;;  %v10473_v30 = vpack.c.bf16 %v1592_v27, %v1591_v23  ;;  %v1595_v15 = vld [vmem:[#allocation2 + $0xda] sm:$0xff] }
 0x2c5   : > { %v9261_v28 = vpop.eup %9260  ;;  %1024 = vst.msk [vmem:[#allocation2 + $0x39] sm:$0xff] %vm410_vm0, %v936_v5  ;;  %v938_v1 = vmul.f32 %v9259_v10, %v10225_v38  ;;  %v10368_v5 = vpack.c.bf16 %v1133_v24, %v1132_v60  ;;  %v1577_v62 = vld [vmem:[#allocation2 + $0x2] sm:$0xff]  ;;  %v1578_v60 = vld [vmem:[#allocation2 + $0xa] sm:$0xff] }
 0x2c6   : > { %v9263_v44 = vpop.eup %9262  ;;  %1025 = vst.msk [vmem:[#allocation2 + $0x49] sm:$0xff] %vm410_vm0, %v937_v11  ;;  %v939_v49 = vmul.f32 %v9261_v28, %v10231_v61  ;;  %v1083_v24 = vld [vmem:[#allocation2 + $0x168] sm:$0xff] }
 0x2c7   : > { %v9265_v9 = vpop.eup %9264  ;;  %1026 = vst.msk [vmem:[#allocation2 + $0x51] sm:$0xff] %vm410_vm0, %v938_v1  ;;  %v940_v58 = vmul.f32 %v9263_v44, %v10237_v3  ;;  %v1414_v3 = vsel %vm1200_vm2, %v9986_v52, 0  ;;  %v1596_v48 = vld [vmem:[#allocation2 + $0xe2] sm:$0xff] }
 0x2c8   : > { %v9267_v51 = vpop.eup %9266  ;;  %1027 = vst.msk [vmem:[#allocation2 + $0x61] sm:$0xff] %vm410_vm0, %v939_v49  ;;  %v941_v36 = vmul.f32 %v9265_v9, %v10243_v31 }
 0x2c9   : > { %v9269_v32 = vpop.eup %9268  ;;  %v1104_v46 = vld [vmem:[#allocation2 + $0x19] sm:$0xff]  ;;  %1028 = vst.msk [vmem:[#allocation2 + $0x69] sm:$0xff] %vm410_vm0, %v940_v58  ;;  %v942_v38 = vmul.f32 %v9267_v51, %v10250_v43  ;;  %v10310_v43 = vld [vmem:[%s11793_s3 + $0x4] sm:$0x3]  ;;  %v10382_v58 = vld [vmem:[%s11793_s3 + $0x6] sm:$0x3] }
 0x2ca   : > { %v1105_v14 = vld [vmem:[#allocation2 + $0x21] sm:$0xff]  ;;  %1029 = vst.msk [vmem:[#allocation2 + $0x79] sm:$0xff] %vm410_vm0, %v941_v36  ;;  %v943_v61 = vmul.f32 %v9269_v32, %v10257_v16  ;;  %v1055_v10 = vld [vmem:[#allocation2 + $0x18] sm:$0xff]  ;;  %v1676_v49 = vsel %vm1200_vm2, %v10310_v43, 0 }
 0x2cb   : > { %v10301_v4 = vpack.c.bf16 %v1105_v14, %v1104_v46  ;;  %v1106_v41 = vld [vmem:[#allocation2 + $0x31] sm:$0xff]  ;;  %1030 = vst.msk [vmem:[#allocation2 + $0x81] sm:$0xff] %vm410_vm0, %v942_v38  ;;  %v1056_v11 = vld [vmem:[#allocation2 + $0x20] sm:$0xff] }
 0x2cc   : > { %v1107_v31 = vld [vmem:[#allocation2 + $0x39] sm:$0xff]  ;;  %1031 = vst.msk [vmem:[#allocation2 + $0x91] sm:$0xff] %vm410_vm0, %v943_v61  ;;  %v1057_v28 = vld [vmem:[#allocation2 + $0x30] sm:$0xff]  ;;  %v10373_v44 = vpack.c.bf16 %v1056_v11, %v1055_v10  ;;  %v1609_v10 = vpack.c.bf16 %v1578_v60, %v1577_v62 }
 0x2cd   : > { %7852 = vmatmul.mubr.msk.bf16.vlgmr.msra.gmra.mrb[0].mxu0 %vm410_vm0, %v10301_v4  ;;  %v10314_v16 = vpack.c.bf16 %v1107_v31, %v1106_v41  ;;  %v1108_v52 = vld [vmem:[#allocation2 + $0x49] sm:$0xff]  ;;  %v1058_v1 = vld [vmem:[#allocation2 + $0x38] sm:$0xff] }
 0x2ce   : > { %7884 = vmatpush3.bf16.msra.mxu0 %v1414_v3  ;;  %v1109_v2 = vld [vmem:[#allocation2 + $0x51] sm:$0xff]  ;;  %v10377_v9 = vpack.c.bf16 %v1058_v1, %v1057_v28  ;;  %v1059_v51 = vld [vmem:[#allocation2 + $0x48] sm:$0xff]  ;;  %v1579_v28 = vld [vmem:[#allocation2 + $0x1a] sm:$0xff] }
 0x2cf   : > { %7855 = vmatprep.mubr.msk.bf16.mxu0 %vm410_vm0, %v10314_v16  ;;  %9107 = vmatprep.subr.msk.bf16.mxu0 %vm1200_vm2, %v10310_v43  ;;  %v1110_v57 = vld [vmem:[#allocation2 + $0x61] sm:$0xff]  ;;  %v10320_v33 = vpack.c.bf16 %v1109_v2, %v1108_v52  ;;  %v1060_v36 = vld [vmem:[#allocation2 + $0x50] sm:$0xff] }
 0x2d0   : > { %v1111_v42 = vld [vmem:[#allocation2 + $0x69] sm:$0xff]  ;;  %v1061_v32 = vld [vmem:[#allocation2 + $0x60] sm:$0xff]  ;;  %v10390_v38 = vpack.c.bf16 %v1060_v36, %v1059_v51  ;;  %v1597_v62 = vld [vmem:[#allocation2 + $0xf2] sm:$0xff] }
 0x2d1   : > { %v10322_v25 = vpack.c.bf16 %v1111_v42, %v1110_v57  ;;  %v1112_v47 = vld [vmem:[#allocation2 + $0x79] sm:$0xff]  ;;  %v1062_v46 = vld [vmem:[#allocation2 + $0x68] sm:$0xff]  ;;  %v1068_v57 = vld [vmem:[#allocation2 + $0xb0] sm:$0xff] }
 0x2d2   : > { %v1113_v55 = vld [vmem:[#allocation2 + $0x81] sm:$0xff]  ;;  %v10392_v14 = vpack.c.bf16 %v1062_v46, %v1061_v32  ;;  %v1063_v61 = vld [vmem:[#allocation2 + $0x78] sm:$0xff]  ;;  %v1970_v32 = vsel %vm1200_vm2, %v10382_v58, 0 }
 0x2d3   : > { %v1114_v53 = vld [vmem:[#allocation2 + $0x91] sm:$0xff]  ;;  %v10328_v56 = vpack.c.bf16 %v1113_v55, %v1112_v47  ;;  %v1064_v3 = vld [vmem:[#allocation2 + $0x80] sm:$0xff]  ;;  %v1067_v2 = vld [vmem:[#allocation2 + $0xa8] sm:$0xff] }
 0x2d4   : > { %v10330_v7 = vpack.c.bf16 %v1115_v59, %v1114_v53  ;;  %v1065_v41 = vld [vmem:[#allocation2 + $0x90] sm:$0xff]  ;;  %v1066_v31 = vld [vmem:[#allocation2 + $0x98] sm:$0xff]  ;;  %v10398_v43 = vpack.c.bf16 %v1064_v3, %v1063_v61  ;;  %v1069_v42 = vld [vmem:[#allocation2 + $0xc0] sm:$0xff]  ;;  %v10406_v55 = vpack.c.bf16 %v1068_v57, %v1067_v2 }
 0x2d5   : > { %7856 = vmatmul.mubr.msk.bf16.gmra.mrb[4].mxu0 %vm410_vm0, %v10320_v33  ;;  %v10400_v52 = vpack.c.bf16 %v1066_v31, %v1065_v41  ;;  %v1070_v47 = vld [vmem:[#allocation2 + $0xc8] sm:$0xff]  ;;  %v1071_v59 = vld [vmem:[#allocation2 + $0xd8] sm:$0xff] }
 0x2d6   : > { %7859 = vmatprep.mubr.msk.bf16.mxu0 %vm410_vm0, %v10322_v25  ;;  %v10408_v53 = vpack.c.bf16 %v1070_v47, %v1069_v42  ;;  %v10414_v17 = vpack.c.bf16 %v1072_v6, %v1071_v59  ;;  %v1580_v1 = vld [vmem:[#allocation2 + $0x22] sm:$0xff]  ;;  %v1582_v51 = vld [vmem:[#allocation2 + $0x3a] sm:$0xff]  ;;  %v1583_v3 = vld [vmem:[#allocation2 + $0x4a] sm:$0xff] }
 0x2d7   : > { %v10443_v36 = vpack.c.bf16 %v1580_v1, %v1579_v28  ;;  %v7200_v61 = vld [vmem:[%s11793_s3 + $0x8] sm:$0x3]  ;;  %v1584_v41 = vld [vmem:[#allocation2 + $0x52] sm:$0xff]  ;;  %v1586_v2 = vld [vmem:[#allocation2 + $0x6a] sm:$0xff] }
 0x2d8   : > { %v1585_v31 = vld [vmem:[#allocation2 + $0x62] sm:$0xff]  ;;  %v1587_v42 = vld [vmem:[#allocation2 + $0x7a] sm:$0xff]  ;;  %v1589_v59 = vld [vmem:[#allocation2 + $0x92] sm:$0xff]  ;;  %v2264_v27 = vsel %vm1200_vm2, %v7200_v61, 0 }
 0x2d9   : > { %v10459_v57 = vpack.c.bf16 %v1586_v2, %v1585_v31  ;;  %v1588_v47 = vld [vmem:[#allocation2 + $0x82] sm:$0xff]  ;;  %v1590_v6 = vld [vmem:[#allocation2 + $0x9a] sm:$0xff]  ;;  %v1600_v28 = vld [vmem:[#allocation2 + $0x112] sm:$0xff] }
 0x2da   : > { %v10465_v8 = vpack.c.bf16 %v1588_v47, %v1587_v42  ;;  %v10467_v34 = vpack.c.bf16 %v1590_v6, %v1589_v59  ;;  %v1598_v60 = vld [vmem:[#allocation2 + $0xfa] sm:$0xff]  ;;  %v1601_v1 = vld [vmem:[#allocation2 + $0x122] sm:$0xff]  ;;  %v1605_v31 = vld [vmem:[#allocation2 + $0x152] sm:$0xff] }
 0x2db   : > { %v1606_v2 = vld [vmem:[#allocation2 + $0x15a] sm:$0xff]  ;;  %v1607_v59 = vld [vmem:[#allocation2 + $0x16a] sm:$0xff]  ;;  %v1608_v6 = vld [vmem:[#allocation2 + $0x172] sm:$0xff] }
 0x2dc   : > { %v10499_v47 = vpack.c.bf16 %v1606_v2, %v1605_v31  ;;  %v10505_v23 = vpack.c.bf16 %v1608_v6, %v1607_v59  ;;  %v3641_v2 = vld [vmem:[%s11795_s5 + $0x20] sm:$0xff]  ;;  %v3642_v59 = vld [vmem:[%s11795_s5 + $0x28] sm:$0xff] }
 0x2dd   : > { %7860 = vmatmul.mubr.msk.bf16.gmra.mrb[8].mxu0 %vm410_vm0, %v10328_v56  ;;  %v8505_v6 = vpack.c.bf16 %v3642_v59, %v3641_v2  ;;  %v3667_v2 = vld [vmem:[%s11795_s5 + $0xf0] sm:$0xff]  ;;  %v3668_v59 = vld [vmem:[%s11795_s5 + $0xf8] sm:$0xff] }
 0x2de   : > { %7863 = vmatprep.mubr.msk.bf16.mxu0 %vm410_vm0, %v10330_v7 }
 0x2e5   : > { %7864 = vmatmul.mubr.msk.bf16.gmra.mrb[12].mxu0 %vm410_vm0, %v10336_v20 }
 0x2e6   : > { %7867 = vmatprep.mubr.msk.bf16.mxu0 %vm410_vm0, %v10338_v39 }
 0x2ed   : > { %7868 = vmatmul.mubr.msk.bf16.gmra.mrb[16].mxu0 %vm410_vm0, %v10344_v26 }
 0x2ee   : > { %7871 = vmatprep.mubr.msk.bf16.mxu0 %vm410_vm0, %v10346_v29 }
 0x2f5   : > { %7872 = vmatmul.mubr.msk.bf16.gmra.mrb[20].mxu0 %vm410_vm0, %v10352_v19 }
 0x2f6   : > { %7875 = vmatprep.mubr.msk.bf16.mxu0 %vm410_vm0, %v10354_v18 }
 0x2fd   : > { %7876 = vmatmul.mubr.msk.bf16.gmra.mrb[24].mxu0 %vm410_vm0, %v10360_v22 }
 0x2fe   : > { %7879 = vmatprep.mubr.msk.bf16.mxu0 %vm410_vm0, %v10362_v54 }
 0x305   : > { %7880 = vmatmul.mubr.msk.bf16.gmra.mrb[28].mxu0 %vm410_vm0, %v10368_v5 }
 0x306   : > { %7885 = vmatprep.mubr.msk.bf16.mxu0 %vm410_vm0, %v1085_v37  ;;  %v1084_v37 = vld [vmem:[#allocation2 + $0x170] sm:$0xff] }
 0x307   : > { %v10438_v11 = vpack.c.bf16 %v1084_v37, %v1083_v24  ;;  %v10481_v24 = vpack.c.bf16 %v1596_v48, %v1595_v15  ;;  %v10483_v37 = vpack.c.bf16 %v1598_v60, %v1597_v62  ;;  %v2558_v15 = vsel %vm1200_vm2, %v7217_v45, 0  ;;  %v7234_v48 = vld [vmem:[%s11793_s3 + $0xc] sm:$0x3]  ;;  %v3655_v62 = vld [vmem:[%s11795_s5 + $0x90] sm:$0xff]  ;;  %v3656_v60 = vld [vmem:[%s11795_s5 + $0x98] sm:$0xff] }
 0x30d   : > { %7886 = vmatmul.mubr.msk.bf16.vlgmr.msra.gmra.mrb[0].mxu0 %vm410_vm0, %v10373_v44 }
 0x30e   : > { %7918 = vmatpush3.bf16.msra.mxu0 %v1676_v49  ;;  %7889 = vmatprep.mubr.msk.bf16.mxu0 %vm410_vm0, %v10377_v9  ;;  %v1581_v49 = vld [vmem:[#allocation2 + $0x32] sm:$0xff] }
 0x30f   : > { %9108 = vmatprep.subr.msk.bf16.mxu0 %vm1200_vm2, %v10382_v58  ;;  %v10447_v46 = vpack.c.bf16 %v1582_v51, %v1581_v49  ;;  %v10457_v58 = vpack.c.bf16 %v1584_v41, %v1583_v3  ;;  %v1602_v49 = vld [vmem:[#allocation2 + $0x12a] sm:$0xff]  ;;  %v1603_v3 = vld [vmem:[#allocation2 + $0x13a] sm:$0xff]  ;;  %v1604_v41 = vld [vmem:[#allocation2 + $0x142] sm:$0xff] }
 0x310   : > { %v10497_v42 = vpack.c.bf16 %v1604_v41, %v1603_v3  ;;  %v3658_v3 = vld [vmem:[%s11795_s5 + $0xa8] sm:$0xff] }
 0x315   : > { %7890 = vmatmul.mubr.msk.bf16.gmra.mrb[4].mxu0 %vm410_vm0, %v10390_v38 }
 0x316   : > { %7893 = vmatprep.mubr.msk.bf16.mxu0 %vm410_vm0, %v10392_v14 }
 0x31d   : > { %7894 = vmatmul.mubr.msk.bf16.gmra.mrb[8].mxu0 %vm410_vm0, %v10398_v43 }
 0x31e   : > { %7897 = vmatprep.mubr.msk.bf16.mxu0 %vm410_vm0, %v10400_v52 }
 0x325   : > { %7898 = vmatmul.mubr.msk.bf16.gmra.mrb[12].mxu0 %vm410_vm0, %v10406_v55 }
 0x326   : > { %7901 = vmatprep.mubr.msk.bf16.mxu0 %vm410_vm0, %v10408_v53 }
 0x32d   : > { %7902 = vmatmul.mubr.msk.bf16.gmra.mrb[16].mxu0 %vm410_vm0, %v10414_v17 }
 0x32e   : > { %7905 = vmatprep.mubr.msk.bf16.mxu0 %vm410_vm0, %v10416_v13 }
 0x335   : > { %7906 = vmatmul.mubr.msk.bf16.gmra.mrb[20].mxu0 %vm410_vm0, %v10422_v12 }
 0x336   : > { %7909 = vmatprep.mubr.msk.bf16.mxu0 %vm410_vm0, %v10424_v40 }
 0x33d   : > { %7910 = vmatmul.mubr.msk.bf16.gmra.mrb[24].mxu0 %vm410_vm0, %v10430_v63 }
 0x33e   : > { %7913 = vmatprep.mubr.msk.bf16.mxu0 %vm410_vm0, %v10432_v50 }
 0x345   : > { %7914 = vmatmul.mubr.msk.bf16.gmra.mrb[28].mxu0 %vm410_vm0, %v10438_v11 }
 0x346   : > { %7919 = vmatprep.mubr.msk.bf16.mxu0 %vm410_vm0, %v1609_v10  ;;  %v1599_v10 = vld [vmem:[#allocation2 + $0x10a] sm:$0xff] }
 0x347   : > { %v10489_v51 = vpack.c.bf16 %v1600_v28, %v1599_v10  ;;  %v3639_v10 = vld [vmem:[%s11795_s5 + $0x10] sm:$0xff]  ;;  %v8499_v28 = vpack.c.bf16 %v3656_v60, %v3655_v62  ;;  %v3648_v60 = vld [vmem:[%s11795_s5 + $0x58] sm:$0xff] }
 0x34d   : > { %7920 = vmatmul.mubr.msk.bf16.vlgmr.msra.gmra.mrb[0].mxu0 %vm410_vm0, %v10443_v36 }
 0x34e   : > { %7952 = vmatpush3.bf16.msra.mxu0 %v1970_v32  ;;  %7923 = vmatprep.mubr.msk.bf16.mxu0 %vm410_vm0, %v10447_v46  ;;  %v10491_v32 = vpack.c.bf16 %v1602_v49, %v1601_v1  ;;  %v3640_v1 = vld [vmem:[%s11795_s5 + $0x18] sm:$0xff]  ;;  %v3657_v49 = vld [vmem:[%s11795_s5 + $0xa0] sm:$0xff] }
 0x34f   : > { %9109 = vmatprep.subr.msk.bf16.mxu0 %vm1200_vm2, %v7200_v61  ;;  %v1902_v61 = vld [vmem:[#allocation2 + $0x188] sm:$0xff]  ;;  %v8501_v41 = vpack.c.bf16 %v3640_v1, %v3639_v10  ;;  %v8503_v31 = vpack.c.bf16 %v3658_v3, %v3657_v49  ;;  %v3665_v10 = vld [vmem:[%s11795_s5 + $0xe0] sm:$0xff] }
 0x350   : > { %v3649_v3 = vld [vmem:[%s11795_s5 + $0x60] sm:$0xff] }
 0x355   : > { %7924 = vmatmul.mubr.msk.bf16.gmra.mrb[4].mxu0 %vm410_vm0, %v10457_v58 }
 0x356   : > { %7927 = vmatprep.mubr.msk.bf16.mxu0 %vm410_vm0, %v10459_v57 }
 0x35d   : > { %7928 = vmatmul.mubr.msk.bf16.gmra.mrb[8].mxu0 %vm410_vm0, %v10465_v8 }
 0x35e   : > { %7931 = vmatprep.mubr.msk.bf16.mxu0 %vm410_vm0, %v10467_v34 }
 0x365   : > { %7932 = vmatmul.mubr.msk.bf16.gmra.mrb[12].mxu0 %vm410_vm0, %v10473_v30 }
 0x366   : > { %7935 = vmatprep.mubr.msk.bf16.mxu0 %vm410_vm0, %v10475_v21 }
 0x36d   : > { %7936 = vmatmul.mubr.msk.bf16.gmra.mrb[16].mxu0 %vm410_vm0, %v10481_v24 }
 0x36e   : > { %7939 = vmatprep.mubr.msk.bf16.mxu0 %vm410_vm0, %v10483_v37 }
 0x375   : > { %7940 = vmatmul.mubr.msk.bf16.gmra.mrb[20].mxu0 %vm410_vm0, %v10489_v51 }
 0x376   : > { %7943 = vmatprep.mubr.msk.bf16.mxu0 %vm410_vm0, %v10491_v32 }
 0x37d   : > { %7944 = vmatmul.mubr.msk.bf16.gmra.mrb[24].mxu0 %vm410_vm0, %v10497_v42 }
 0x37e   : > { %7947 = vmatprep.mubr.msk.bf16.mxu0 %vm410_vm0, %v10499_v47 }
 0x385   : > { %7948 = vmatmul.mubr.msk.bf16.gmra.mrb[28].mxu0 %vm410_vm0, %v10505_v23 }
 0x386   : > { %7953 = vmatprep.mubr.msk.bf16.mxu0 %vm410_vm0, %v10373_v44  ;;  %v1901_v44 = vld [vmem:[#allocation2 + $0x180] sm:$0xff] }
 0x387   : > { %v10544_v35 = vpack.c.bf16 %v1902_v61, %v1901_v44  ;;  %v3643_v44 = vld [vmem:[%s11795_s5 + $0x30] sm:$0xff] }
 0x38d   : > { %7954 = vmatmul.mubr.msk.bf16.vlgmr.msra.gmra.mrb[0].mxu0 %vm410_vm0, %v10377_v9 }
 0x38e   : > { %7986 = vmatpush3.bf16.msra.mxu0 %v2264_v27  ;;  %7957 = vmatprep.mubr.msk.bf16.mxu0 %vm410_vm0, %v10390_v38  ;;  %v3659_v27 = vld [vmem:[%s11795_s5 + $0xb0] sm:$0xff] }
 0x38f   : > { %9110 = vmatprep.subr.msk.bf16.mxu0 %vm1200_vm2, %v7217_v45  ;;  %v3660_v45 = vld [vmem:[%s11795_s5 + $0xb8] sm:$0xff] }
 0x390   : > { %v8507_v61 = vpack.c.bf16 %v3660_v45, %v3659_v27  ;;  %v3671_v27 = vlaneseq  ;;  %v8523_v45 = vpack.c.bf16 %v3668_v59, %v3667_v2  ;;  %v3078_v59 = vld [vmem:[#allocation2 + $0x199] sm:$0xff] }
 0x395   : > { %7958 = vmatmul.mubr.msk.bf16.gmra.mrb[4].mxu0 %vm410_vm0, %v10392_v14 }
 0x396   : > { %7961 = vmatprep.mubr.msk.bf16.mxu0 %vm410_vm0, %v10398_v43 }
 0x39d   : > { %7962 = vmatmul.mubr.msk.bf16.gmra.mrb[8].mxu0 %vm410_vm0, %v10400_v52 }
 0x39e   : > { %7965 = vmatprep.mubr.msk.bf16.mxu0 %vm410_vm0, %v10406_v55 }
 0x3a5   : > { %7966 = vmatmul.mubr.msk.bf16.gmra.mrb[12].mxu0 %vm410_vm0, %v10408_v53 }
 0x3a6   : > { %7969 = vmatprep.mubr.msk.bf16.mxu0 %vm410_vm0, %v10414_v17 }
 0x3ad   : > { %7970 = vmatmul.mubr.msk.bf16.gmra.mrb[16].mxu0 %vm410_vm0, %v10416_v13 }
 0x3ae   : > { %7973 = vmatprep.mubr.msk.bf16.mxu0 %vm410_vm0, %v10422_v12 }
 0x3b5   : > { %7974 = vmatmul.mubr.msk.bf16.gmra.mrb[20].mxu0 %vm410_vm0, %v10424_v40 }
 0x3b6   : > { %7977 = vmatprep.mubr.msk.bf16.mxu0 %vm410_vm0, %v10430_v63 }
 0x3bd   : > { %7978 = vmatmul.mubr.msk.bf16.gmra.mrb[24].mxu0 %vm410_vm0, %v10432_v50 }
 0x3be   : > { %7981 = vmatprep.mubr.msk.bf16.mxu0 %vm410_vm0, %v10438_v11 }
 0x3c5   : > { %7982 = vmatmul.mubr.msk.bf16.gmra.mrb[28].mxu0 %vm410_vm0, %v10544_v35 }
 0x3c6   : > { %7987 = vmatprep.mubr.msk.bf16.mxu0 %vm410_vm0, %v10301_v4  ;;  %v2195_v4 = vld [vmem:[#allocation2 + $0x181] sm:$0xff] }
 0x3cd   : > { %7988 = vmatmul.mubr.msk.bf16.vlgmr.msra.gmra.mrb[0].mxu0 %vm410_vm0, %v10314_v16  ;;  %v2196_v16 = vld [vmem:[#allocation2 + $0x189] sm:$0xff] }
 0x3ce   : > { %8020 = vmatpush3.bf16.msra.mxu0 %v2558_v15  ;;  %7991 = vmatprep.mubr.msk.bf16.mxu0 %vm410_vm0, %v10320_v33  ;;  %v10583_v33 = vpack.c.bf16 %v2196_v16, %v2195_v4  ;;  %v3644_v15 = vld [vmem:[%s11795_s5 + $0x38] sm:$0xff]  ;;  %v3662_v4 = vld [vmem:[%s11795_s5 + $0xc8] sm:$0xff] }
 0x3cf   : > { %9111 = vmatprep.subr.msk.bf16.mxu0 %vm1200_vm2, %v7234_v48  ;;  %v8509_v16 = vpack.c.bf16 %v3644_v15, %v3643_v44  ;;  %v3652_v44 = vld [vmem:[%s11795_s5 + $0x78] sm:$0xff]  ;;  %v10713_v15 = vshrl.u32 %v3671_v27, 7 }
 0x3d5   : > { %7992 = vmatmul.mubr.msk.bf16.gmra.mrb[4].mxu0 %vm410_vm0, %v10322_v25 }
 0x3d6   : > { %7995 = vmatprep.mubr.msk.bf16.mxu0 %vm410_vm0, %v10328_v56 }
 0x3dd   : > { %7996 = vmatmul.mubr.msk.bf16.gmra.mrb[8].mxu0 %vm410_vm0, %v10330_v7 }
 0x3de   : > { %7999 = vmatprep.mubr.msk.bf16.mxu0 %vm410_vm0, %v10336_v20 }
 0x3e5   : > { %8000 = vmatmul.mubr.msk.bf16.gmra.mrb[12].mxu0 %vm410_vm0, %v10338_v39 }
 0x3e6   : > { %8003 = vmatprep.mubr.msk.bf16.mxu0 %vm410_vm0, %v10344_v26  ;;  %v3653_v26 = vld [vmem:[%s11795_s5 + $0x80] sm:$0xff] }
 0x3ed   : > { %8004 = vmatmul.mubr.msk.bf16.gmra.mrb[16].mxu0 %vm410_vm0, %v10346_v29  ;;  %v3654_v29 = vld [vmem:[%s11795_s5 + $0x88] sm:$0xff] }
 0x3ee   : > { %8007 = vmatprep.mubr.msk.bf16.mxu0 %vm410_vm0, %v10352_v19  ;;  %v3637_v19 = vld [vmem:[%s11795_s5] sm:$0xff] }
 0x3f5   : > { %8008 = vmatmul.mubr.msk.bf16.gmra.mrb[20].mxu0 %vm410_vm0, %v10354_v18  ;;  %v8495_v18 = vpack.c.bf16 %v3654_v29, %v3653_v26  ;;  %v3645_v29 = vld [vmem:[%s11795_s5 + $0x40] sm:$0xff] }
 0x3f6   : > { %8011 = vmatprep.mubr.msk.bf16.mxu0 %vm410_vm0, %v10360_v22  ;;  %v3638_v22 = vld [vmem:[%s11795_s5 + $0x8] sm:$0xff] }
 0x3f7   : > { %8496 = vmatprep.subr.bf16.mxu1 %v8495_v18 }
 0x3fd   : > { %8012 = vmatmul.mubr.msk.bf16.gmra.mrb[24].mxu0 %vm410_vm0, %v10362_v54  ;;  %v8497_v54 = vpack.c.bf16 %v3638_v22, %v3637_v19  ;;  %v3646_v19 = vld [vmem:[%s11795_s5 + $0x48] sm:$0xff]  ;;  %v3663_v22 = vld [vmem:[%s11795_s5 + $0xd0] sm:$0xff] }
 0x3fe   : > { %8015 = vmatprep.mubr.msk.bf16.mxu0 %vm410_vm0, %v10368_v5  ;;  %v2853_v5 = vsel %vm1200_vm2, %v7234_v48, 0  ;;  %v3661_v48 = vld [vmem:[%s11795_s5 + $0xc0] sm:$0xff]  ;;  %v8513_v18 = vpack.c.bf16 %v3646_v19, %v3645_v29 }
 0x3ff   : > { %8498 = vmatpush3.bf16.msra.mxu1 %v8497_v54  ;;  %v8511_v26 = vpack.c.bf16 %v3662_v4, %v3661_v48  ;;  %v3664_v54 = vld [vmem:[%s11795_s5 + $0xd8] sm:$0xff]  ;;  %v3636_v48 = vld [vmem:[%s371_s12] sm:$0x3]  ;;  %v3673_v4 = vsub.s32 0, %v10713_v15  ;;  %v2489_v19 = vld [vmem:[#allocation2 + $0x182] sm:$0xff] }
 0x400   : > { %8500 = vmatprep.subr.bf16.mxu1 %v8499_v28  ;;  %v8515_v62 = vpack.c.bf16 %v3664_v54, %v3663_v22  ;;  %v3666_v28 = vld [vmem:[%s11795_s5 + $0xe8] sm:$0xff] }
 0x401   : > { %v8519_v49 = vpack.c.bf16 %v3666_v28, %v3665_v10  ;;  %v3072_v28 = vld [vmem:[#allocation2 + $0x151] sm:$0xff] }
 0x403   : > { %8502 = vmatpush3.bf16.msra.mxu1 %v8501_v41  ;;  %v3650_v41 = vld [vmem:[%s11795_s5 + $0x68] sm:$0xff] }
 0x404   : > { %8504 = vmatprep.subr.bf16.mxu1 %v8503_v31  ;;  %v8521_v31 = vpack.c.bf16 %v3650_v41, %v3649_v3  ;;  %v3074_v41 = vld [vmem:[#allocation2 + $0x169] sm:$0xff] }
 0x405   : > { %8016 = vmatmul.mubr.msk.bf16.gmra.mrb[28].mxu0 %vm410_vm0, %v10583_v33 }
 0x406   : > { %8021 = vmatprep.mubr.msk.bf16.mxu0 %vm410_vm0, %v10443_v36  ;;  %v10605_v36 = vld [vmem:[%s11793_s3 + $0xe] sm:$0x3] }
 0x407   : > { %8506 = vmatpush3.bf16.msra.mxu1 %v8505_v6  ;;  %v3651_v6 = vld [vmem:[%s11795_s5 + $0x70] sm:$0xff]  ;;  %v3147_v54 = vsel %vm1200_vm2, %v10605_v36, 0 }
 0x408   : > { %8508 = vmatprep.subr.bf16.mxu1 %v8507_v61  ;;  %v8525_v61 = vpack.c.bf16 %v3652_v44, %v3651_v6  ;;  %v3079_v6 = vld [vmem:[#allocation2 + $0x1a1] sm:$0xff] }
 0x409   : > { %v3095_v27 = vpack.c.bf16 %v3079_v6, %v3078_v59 }
 0x40b   : > { %8510 = vmatpush3.bf16.msra.mxu1 %v8509_v16  ;;  %v3677_v16 = vsub.s32 1, %v10713_v15 }
 0x40c   : > { %8512 = vmatprep.subr.bf16.mxu1 %v8511_v26  ;;  %v3674_v26 = vrot.slane %v3636_v48, %v3673_v4 }
 0x40d   : > { %8022 = vmatmul.mubr.msk.bf16.vlgmr.msra.gmra.mrb[0].mxu0 %vm410_vm0, %v10447_v46  ;;  %v3678_v29 = vrot.slane %v3636_v48, %v3677_v16 }
 0x40e   : > { %8054 = vmatpush3.bf16.msra.mxu0 %v2853_v5  ;;  %8025 = vmatprep.mubr.msk.bf16.mxu0 %vm410_vm0, %v10457_v58  ;;  %v3647_v5 = vld [vmem:[%s11795_s5 + $0x50] sm:$0xff] }
 0x40f   : > { %9112 = vmatprep.subr.msk.bf16.mxu0 %vm1200_vm2, %v10605_v36  ;;  %8514 = vmatpush3.bf16.msra.mxu1 %v8513_v18  ;;  %v8517_v1 = vpack.c.bf16 %v3648_v60, %v3647_v5  ;;  %v2490_v18 = vld [vmem:[#allocation2 + $0x18a] sm:$0xff] }
 0x410   : > { %8516 = vmatprep.subr.bf16.mxu1 %v8515_v62  ;;  %3745 = vmatprep.mubr.f32.mxu1 %v3678_v29  ;;  %v10731_v22 = vpack.c.bf16 %v2490_v18, %v2489_v19  ;;  %v7268_v5 = vld [vmem:[%s11793_s3 + $0x10] sm:$0x3]  ;;  %v3068_v62 = vld [vmem:[#allocation2 + $0x121] sm:$0xff] }
 0x413   : > { %8518 = vmatpush3.bf16.msra.mxu1 %v8517_v1  ;;  %v3073_v1 = vld [vmem:[#allocation2 + $0x159] sm:$0xff] }
 0x414   : > { %8520 = vmatprep.subr.bf16.mxu1 %v8519_v49  ;;  %v3092_v3 = vpack.c.bf16 %v3073_v1, %v3072_v28 }
 0x415   : > { %8026 = vmatmul.mubr.msk.bf16.gmra.mrb[4].mxu0 %vm410_vm0, %v10459_v57 }
 0x416   : > { %8029 = vmatprep.mubr.msk.bf16.mxu0 %vm410_vm0, %v10465_v8 }
 0x417   : > { %8522 = vmatpush3.bf16.msra.mxu1 %v8521_v31  ;;  %v3075_v31 = vld [vmem:[#allocation2 + $0x171] sm:$0xff] }
 0x418   : > { %8524 = vmatprep.subr.bf16.mxu1 %v8523_v45  ;;  %v3093_v2 = vpack.c.bf16 %v3075_v31, %v3074_v41 }
 0x41b   : > { %8526 = vmatpush3.bf16.msra.mxu1 %v8525_v61 }
 0x41d   : > { %8030 = vmatmul.mubr.msk.bf16.gmra.mrb[8].mxu0 %vm410_vm0, %v10467_v34 }
 0x41e   : > { %8033 = vmatprep.mubr.msk.bf16.mxu0 %vm410_vm0, %v10473_v30  ;;  %3746 = vmatmul.mubr.f32.vlgmr.msra.gmra.mrb[0].mxu1 %v3674_v26 }
 0x425   : > { %8034 = vmatmul.mubr.msk.bf16.gmra.mrb[12].mxu0 %vm410_vm0, %v10475_v21 }
 0x426   : > { %8037 = vmatprep.mubr.msk.bf16.mxu0 %vm410_vm0, %v10481_v24 }
 0x42d   : > { %8038 = vmatmul.mubr.msk.bf16.gmra.mrb[16].mxu0 %vm410_vm0, %v10483_v37 }
 0x42e   : > { %8041 = vmatprep.mubr.msk.bf16.mxu0 %vm410_vm0, %v10489_v51 }
 0x435   : > { %8042 = vmatmul.mubr.msk.bf16.gmra.mrb[20].mxu0 %vm410_vm0, %v10491_v32 }
 0x436   : > { %8045 = vmatprep.mubr.msk.bf16.mxu0 %vm410_vm0, %v10497_v42 }
 0x43d   : > { %8046 = vmatmul.mubr.msk.bf16.gmra.mrb[24].mxu0 %vm410_vm0, %v10499_v47 }
 0x43e   : > { %8049 = vmatprep.mubr.msk.bf16.mxu0 %vm410_vm0, %v10505_v23 }
 0x445   : > { %8050 = vmatmul.mubr.msk.bf16.gmra.mrb[28].mxu0 %vm410_vm0, %v10731_v22 }
 0x446   : > { %8055 = vmatprep.mubr.msk.bf16.mxu0 %vm410_vm0, %v10377_v9  ;;  %v2784_v9 = vld [vmem:[#allocation2 + $0x198] sm:$0xff] }
 0x44d   : > { %8056 = vmatmul.mubr.msk.bf16.vlgmr.msra.gmra.mrb[0].mxu0 %vm410_vm0, %v10390_v38  ;;  %v2785_v38 = vld [vmem:[#allocation2 + $0x1a0] sm:$0xff] }
 0x44e   : > { %8088 = vmatpush3.bf16.msra.mxu0 %v3147_v54  ;;  %8059 = vmatprep.mubr.msk.bf16.mxu0 %vm410_vm0, %v10392_v14  ;;  %v2801_v14 = vpack.c.bf16 %v2785_v38, %v2784_v9 }
 0x44f   : > { %9113 = vmatprep.subr.msk.bf16.mxu0 %vm1200_vm2, %v7268_v5 }
 0x455   : > { %8060 = vmatmul.mubr.msk.bf16.gmra.mrb[4].mxu0 %vm410_vm0, %v10398_v43  ;;  %v3048_v43 = vld [vmem:[#allocation2 + $0x31] sm:$0xff] }
 0x456   : > { %8063 = vmatprep.mubr.msk.bf16.mxu0 %vm410_vm0, %v10400_v52  ;;  %v3049_v52 = vld [vmem:[#allocation2 + $0x39] sm:$0xff] }
 0x45d   : > { %8064 = vmatmul.mubr.msk.bf16.gmra.mrb[8].mxu0 %vm410_vm0, %v10406_v55  ;;  %v3080_v55 = vpack.c.bf16 %v3049_v52, %v3048_v43 }
 0x45e   : > { %8067 = vmatprep.mubr.msk.bf16.mxu0 %vm410_vm0, %v10408_v53  ;;  %v3050_v53 = vld [vmem:[#allocation2 + $0x49] sm:$0xff] }
 0x465   : > { %8068 = vmatmul.mubr.msk.bf16.gmra.mrb[12].mxu0 %vm410_vm0, %v10414_v17  ;;  %v3051_v17 = vld [vmem:[#allocation2 + $0x51] sm:$0xff] }
 0x466   : > { %8071 = vmatprep.mubr.msk.bf16.mxu0 %vm410_vm0, %v10416_v13  ;;  %v3081_v13 = vpack.c.bf16 %v3051_v17, %v3050_v53 }
 0x46d   : > { %8072 = vmatmul.mubr.msk.bf16.gmra.mrb[16].mxu0 %vm410_vm0, %v10422_v12  ;;  %v3441_v12 = vsel %vm1200_vm2, %v7268_v5, 0 }
 0x46e   : > { %8075 = vmatprep.mubr.msk.bf16.mxu0 %vm410_vm0, %v10424_v40  ;;  %v3062_v40 = vld [vmem:[#allocation2 + $0xd9] sm:$0xff] }
 0x475   : > { %8076 = vmatmul.mubr.msk.bf16.gmra.mrb[20].mxu0 %vm410_vm0, %v10430_v63  ;;  %v3063_v63 = vld [vmem:[#allocation2 + $0xe1] sm:$0xff] }
 0x476   : > { %8079 = vmatprep.mubr.msk.bf16.mxu0 %vm410_vm0, %v10432_v50  ;;  %v3064_v50 = vld [vmem:[#allocation2 + $0xf1] sm:$0xff] }
 0x47d   : > { %8080 = vmatmul.mubr.msk.bf16.gmra.mrb[24].mxu0 %vm410_vm0, %v10438_v11  ;;  %v3065_v11 = vld [vmem:[#allocation2 + $0xf9] sm:$0xff] }
 0x47e   : > { %8083 = vmatprep.mubr.msk.bf16.mxu0 %vm410_vm0, %v10544_v35  ;;  %v3087_v35 = vpack.c.bf16 %v3063_v63, %v3062_v40  ;;  %v3088_v36 = vpack.c.bf16 %v3065_v11, %v3064_v50 }
 0x485   : > { %8084 = vmatmul.mubr.msk.bf16.gmra.mrb[28].mxu0 %vm410_vm0, %v2801_v14 }
 0x486   : > { %8089 = vmatprep.mubr.msk.bf16.mxu0 %vm410_vm0, %v3080_v55 }
 0x48d   : > { %8090 = vmatmul.mubr.msk.bf16.vlgmr.msra.gmra.mrb[0].mxu0 %vm410_vm0, %v3081_v13 }
 0x48e   : > { %8122 = vmatpush3.bf16.msra.mxu0 %v3441_v12  ;;  %8093 = vmatprep.mubr.msk.bf16.mxu0 %vm410_vm0, %v10322_v25  ;;  %v3066_v25 = vld [vmem:[#allocation2 + $0x109] sm:$0xff] }
 0x495   : > { %8094 = vmatmul.mubr.msk.bf16.gmra.mrb[4].mxu0 %vm410_vm0, %v10328_v56  ;;  %v3067_v56 = vld [vmem:[#allocation2 + $0x111] sm:$0xff] }
 0x496   : > { %8097 = vmatprep.mubr.msk.bf16.mxu0 %vm410_vm0, %v10330_v7  ;;  %v3069_v7 = vld [vmem:[#allocation2 + $0x129] sm:$0xff]  ;;  %v3089_v60 = vpack.c.bf16 %v3067_v56, %v3066_v25 }
 0x497   : > { %v3090_v10 = vpack.c.bf16 %v3069_v7, %v3068_v62 }
 0x49d   : > { %8098 = vmatmul.mubr.msk.bf16.gmra.mrb[8].mxu0 %vm410_vm0, %v10336_v20  ;;  %v3070_v20 = vld [vmem:[#allocation2 + $0x139] sm:$0xff] }
 0x49e   : > { %8101 = vmatprep.mubr.msk.bf16.mxu0 %vm410_vm0, %v10338_v39  ;;  %v3071_v39 = vld [vmem:[#allocation2 + $0x141] sm:$0xff] }
 0x49f   : > { %v3091_v49 = vpack.c.bf16 %v3071_v39, %v3070_v20 }
 0x4a5   : > { %8102 = vmatmul.mubr.msk.bf16.gmra.mrb[12].mxu0 %vm410_vm0, %v3087_v35 }
 0x4a6   : > { %8105 = vmatprep.mubr.msk.bf16.mxu0 %vm410_vm0, %v3088_v36 }
 0x4ad   : > { %8106 = vmatmul.mubr.msk.bf16.gmra.mrb[16].mxu0 %vm410_vm0, %v3089_v60 }
 0x4ae   : > { %8109 = vmatprep.mubr.msk.bf16.mxu0 %vm410_vm0, %v3090_v10 }
 0x4b5   : > { %8110 = vmatmul.mubr.msk.bf16.gmra.mrb[20].mxu0 %vm410_vm0, %v3091_v49 }
 0x4b6   : > { %8113 = vmatprep.mubr.msk.bf16.mxu0 %vm410_vm0, %v3092_v3 }
 0x4bd   : > { %8114 = vmatmul.mubr.msk.bf16.gmra.mrb[24].mxu0 %vm410_vm0, %v3093_v2 }
 0x4be   : > { %8117 = vmatprep.mubr.msk.bf16.mxu0 %vm410_vm0, %v10583_v33 }
 0x4c5   : > { %8118 = vmatmul.mubr.msk.bf16.gmra.mrb[28].mxu0 %vm410_vm0, %v3095_v27 }
 0x4c6   : > { %8123 = vmatprep.mubr.msk.bf16.mxu0 %vm410_vm0, %v10447_v46  ;;  %v3372_v46 = vld [vmem:[#allocation2 + $0x19a] sm:$0xff] }
 0x4cd   : > { %8124 = vmatmul.mubr.msk.bf16.vlgmr.msra.gmra.mrb[0].mxu0 %vm410_vm0, %v10457_v58  ;;  %v3373_v58 = vld [vmem:[#allocation2 + $0x1a2] sm:$0xff] }
 0x4ce   : > { %8127 = vmatprep.mubr.msk.bf16.mxu0 %vm410_vm0, %v10459_v57  ;;  %v3389_v57 = vpack.c.bf16 %v3373_v58, %v3372_v46 }
 0x4d5   : > { %8128 = vmatmul.mubr.msk.bf16.gmra.mrb[4].mxu0 %vm410_vm0, %v10465_v8 }
 0x4d6   : > { %8131 = vmatprep.mubr.msk.bf16.mxu0 %vm410_vm0, %v10467_v34 }
 0x4dd   : > { %8132 = vmatmul.mubr.msk.bf16.gmra.mrb[8].mxu0 %vm410_vm0, %v10473_v30 }
 0x4de   : > { %8135 = vmatprep.mubr.msk.bf16.mxu0 %vm410_vm0, %v10475_v21  ;;  %v7318_v21 = vld [vmem:[%s11797_s7 + $0x4] sm:$0xf] }
 0x4df   : > { %9114 = vmatprep.subr.msk.bf16.mxu0 %vm4254_vm5, %v7318_v21  ;;  %9115 = vmatprep.subr.msk.bf16.mxu1 %vm4254_vm5, %v7318_v21 }
 0x4e5   : > { %8136 = vmatmul.mubr.msk.bf16.gmra.mrb[12].mxu0 %vm410_vm0, %v10481_v24  ;;  %v4256_v24 = vsel %vm4254_vm5, %v7318_v21, 0 }
 0x4e6   : > { %8139 = vmatprep.mubr.msk.bf16.mxu0 %vm410_vm0, %v10483_v37  ;;  %v4156_v37 = vld [vmem:[#allocation3 + $0x1] sm:$0xff]  ;;  %8156 = vmatpush3.bf16.msra.mxu0 %v4256_v24 }
 0x4e7   : > { %8528 = vmatpush3.bf16.msra.mxu1 %v4256_v24 }
 0x4ed   : > { %8140 = vmatmul.mubr.msk.bf16.gmra.mrb[16].mxu0 %vm410_vm0, %v10489_v51  ;;  %v4157_v51 = vld [vmem:[#allocation3 + $0x9] sm:$0xff] }
 0x4ee   : > { %8143 = vmatprep.mubr.msk.bf16.mxu0 %vm410_vm0, %v10491_v32  ;;  %v4188_v32 = vpack.c.bf16 %v4157_v51, %v4156_v37 }
 0x4f1   : > { %v7676_v8 = vpop.f32.mrb[0].mxu1 }
 0x4f2   : > { %v7677_v34 = vpop.f32.mrb[1].mxu1 }
 0x4f3   : > { %v10825_v30 = vadd.f32 %v7677_v34, %v7676_v8 }
 0x4f5   : > { %8144 = vmatmul.mubr.msk.bf16.gmra.mrb[20].mxu0 %vm410_vm0, %v10497_v42  ;;  %v3748_v42 = vadd.f32 %v10825_v30, %v3669_v0 }
 0x4f6   : > { %8147 = vmatprep.mubr.msk.bf16.mxu0 %vm410_vm0, %v10499_v47 }
 0x4f7   : > { %v7285_v47 = vmul.f32 -1.442695, %v3748_v42 }
 0x4f9   : > { %9270 = vpow2.f32 %v7285_v47 }
 0x4fd   : > { %8148 = vmatmul.mubr.msk.bf16.gmra.mrb[24].mxu0 %vm410_vm0, %v10505_v23  ;;  %v10950_v23 = vld [vmem:[%s11797_s7] sm:$0xf] }
 0x4fe   : > { %8151 = vmatprep.mubr.msk.bf16.mxu0 %vm410_vm0, %v10731_v22  ;;  %9116 = vmatprep.subr.msk.bf16.mxu1 %vm4254_vm5, %v10950_v23 }
 0x503   : > { %v9271_v33 = vpop.eup %9270 }
 0x504   : > { %v3754_v45 = vadd.f32 1.0, %v9271_v33 }
 0x505   : > { %8152 = vmatmul.mubr.msk.bf16.gmra.mrb[28].mxu0 %vm410_vm0, %v3389_v57 }
 0x506   : > { %8157 = vmatprep.mubr.msk.bf16.mxu0 %vm4018_vm3, %v4188_v32  ;;  %9272 = vrcp.f32 %v3754_v45 }
 0x510   : > { %v9273_v44 = vpop.eup %9272 }
 0x511   : > { %v3757_v61 = vmul.f32 %v9273_v44, %v3748_v42 }
 0x513   : > { %v10956_v48 = vrot.slane %v3757_v61, %v3673_v4 }
 0x5a0   : > { %v8125_v16 = vpop.f32.mrb[0].mxu0 }
 0x5a1   : > { %v10959_v26 = vadd.f32 %v8125_v16, %v10956_v48  ;;  %v3477_v29 = vpop.f32.mrb[1].mxu0 }
 0x5a2   : > { %v10962_v19 = vadd.f32 %v10956_v48, %v3477_v29  ;;  %v8126_v18 = vpop.f32.mrb[2].mxu0 }
 0x5a3   : > { %v7288_v22 = vmul.f32 -1.442695, %v10959_v26  ;;  %v10966_v54 = vadd.f32 %v8126_v18, %v10956_v48  ;;  %v3480_v5 = vpop.f32.mrb[3].mxu0 }
 0x5a4   : > { %v7286_v9 = vmul.f32 -1.442695, %v10962_v19  ;;  %v10970_v15 = vadd.f32 %v10956_v48, %v3480_v5 }
 0x5a5   : > { %9274 = vpow2.f32 %v7288_v22  ;;  %v7289_v4 = vmul.f32 -1.442695, %v10966_v54 }
 0x5a6   : > { %9276 = vpow2.f32 %v7286_v9  ;;  %v7287_v38 = vmul.f32 -1.442695, %v10970_v15 }
 0x5a7   : > { %9278 = vpow2.f32 %v7289_v4 }
 0x5a8   : > { %9280 = vpow2.f32 %v7287_v38  ;;  %v8129_v14 = vpop.f32.mrb[4].mxu0 }
 0x5a9   : > { %v10975_v43 = vadd.f32 %v8129_v14, %v10956_v48  ;;  %v3493_v52 = vpop.f32.mrb[5].mxu0 }
 0x5aa   : > { %v10978_v55 = vadd.f32 %v10956_v48, %v3493_v52  ;;  %v8130_v53 = vpop.f32.mrb[6].mxu0 }
 0x5ab   : > { %v7292_v17 = vmul.f32 -1.442695, %v10975_v43  ;;  %v10982_v13 = vadd.f32 %v8130_v53, %v10956_v48  ;;  %v3496_v12 = vpop.f32.mrb[7].mxu0 }
 0x5ac   : > { %v7290_v40 = vmul.f32 -1.442695, %v10978_v55  ;;  %v10986_v63 = vadd.f32 %v10956_v48, %v3496_v12 }
 0x5ad   : > { %9282 = vpow2.f32 %v7292_v17  ;;  %v7293_v50 = vmul.f32 -1.442695, %v10982_v13 }
 0x5ae   : > { %9284 = vpow2.f32 %v7290_v40  ;;  %v7291_v11 = vmul.f32 -1.442695, %v10986_v63 }
 0x5af   : > { %v9275_v35 = vpop.eup %9274  ;;  %9286 = vpow2.f32 %v7293_v50 }
 0x5b0   : > { %v9277_v36 = vpop.eup %9276  ;;  %v3892_v25 = vadd.f32 1.0, %v9275_v35  ;;  %9288 = vpow2.f32 %v7291_v11  ;;  %v8133_v56 = vpop.f32.mrb[8].mxu0 }
 0x5b1   : > { %v9279_v62 = vpop.eup %9278  ;;  %v3890_v7 = vadd.f32 1.0, %v9277_v36  ;;  %v10991_v60 = vadd.f32 %v8133_v56, %v10956_v48  ;;  %v3509_v10 = vpop.f32.mrb[9].mxu0 }
 0x5b2   : > { %v9281_v20 = vpop.eup %9280  ;;  %9290 = vrcp.f32 %v3892_v25  ;;  %v3893_v39 = vadd.f32 1.0, %v9279_v62  ;;  %v10994_v28 = vadd.f32 %v10956_v48, %v3509_v10  ;;  %v8134_v1 = vpop.f32.mrb[10].mxu0 }
 0x5b3   : > { %9292 = vrcp.f32 %v3890_v7  ;;  %v3891_v49 = vadd.f32 1.0, %v9281_v20  ;;  %v7296_v3 = vmul.f32 -1.442695, %v10991_v60  ;;  %v10998_v41 = vadd.f32 %v8134_v1, %v10956_v48  ;;  %v3512_v31 = vpop.f32.mrb[11].mxu0 }
 0x5b4   : > { %9294 = vrcp.f32 %v3893_v39  ;;  %v7294_v2 = vmul.f32 -1.442695, %v10994_v28  ;;  %v11002_v59 = vadd.f32 %v10956_v48, %v3512_v31 }
 0x5b5   : > { %9296 = vrcp.f32 %v3891_v49  ;;  %v7297_v6 = vmul.f32 -1.442695, %v10998_v41 }
 0x5b6   : > { %9298 = vpow2.f32 %v7296_v3  ;;  %v7295_v27 = vmul.f32 -1.442695, %v11002_v59 }
 0x5b7   : > { %v9283_v46 = vpop.eup %9282  ;;  %9300 = vpow2.f32 %v7294_v2 }
 0x5b8   : > { %v9285_v58 = vpop.eup %9284  ;;  %v3896_v57 = vadd.f32 1.0, %v9283_v46  ;;  %9302 = vpow2.f32 %v7297_v6  ;;  %v8137_v8 = vpop.f32.mrb[12].mxu0 }
 0x5b9   : > { %v9287_v34 = vpop.eup %9286  ;;  %v3894_v30 = vadd.f32 1.0, %v9285_v58  ;;  %9304 = vpow2.f32 %v7295_v27  ;;  %v11007_v21 = vadd.f32 %v8137_v8, %v10956_v48  ;;  %v3525_v24 = vpop.f32.mrb[13].mxu0 }
 0x5ba   : > { %v9289_v37 = vpop.eup %9288  ;;  %9306 = vrcp.f32 %v3896_v57  ;;  %v3897_v51 = vadd.f32 1.0, %v9287_v34  ;;  %v11010_v32 = vadd.f32 %v10956_v48, %v3525_v24  ;;  %v8138_v0 = vpop.f32.mrb[14].mxu0 }
 0x5bb   : > { %9308 = vrcp.f32 %v3894_v30  ;;  %v3895_v42 = vadd.f32 1.0, %v9289_v37  ;;  %v7300_v47 = vmul.f32 -1.442695, %v11007_v21  ;;  %v11014_v33 = vadd.f32 %v8138_v0, %v10956_v48  ;;  %v3528_v45 = vpop.f32.mrb[15].mxu0 }
 0x5bc   : > { %v9291_v44 = vpop.eup %9290  ;;  %9310 = vrcp.f32 %v3897_v51  ;;  %v7298_v61 = vmul.f32 -1.442695, %v11010_v32  ;;  %v11018_v16 = vadd.f32 %v10956_v48, %v3528_v45 }
 0x5bd   : > { %v9293_v29 = vpop.eup %9292  ;;  %v3988_v18 = vmul.f32 %v9291_v44, %v10959_v26  ;;  %9312 = vrcp.f32 %v3895_v42  ;;  %v7301_v22 = vmul.f32 -1.442695, %v11014_v33 }
 0x5be   : > { %v9295_v5 = vpop.eup %9294  ;;  %v3986_v9 = vmul.f32 %v9293_v29, %v10962_v19  ;;  %9314 = vpow2.f32 %v7300_v47  ;;  %v7299_v4 = vmul.f32 -1.442695, %v11018_v16 }
 0x5bf   : > { %v9297_v38 = vpop.eup %9296  ;;  %4077 = vst.msk [vmem:[#allocation3 + $0x31] sm:$0xff] %vm4018_vm3, %v3988_v18  ;;  %v3989_v14 = vmul.f32 %v9295_v5, %v10966_v54  ;;  %9316 = vpow2.f32 %v7298_v61 }
 0x5c0   : > { %v9299_v52 = vpop.eup %9298  ;;  %4075 = vst.msk [vmem:[#allocation3 + $0x19] sm:$0xff] %vm4018_vm3, %v3986_v9  ;;  %v3987_v26 = vmul.f32 %v9297_v38, %v10970_v15  ;;  %9318 = vpow2.f32 %v7301_v22  ;;  %v8141_v53 = vpop.f32.mrb[16].mxu0 }
 0x5c1   : > { %v9301_v17 = vpop.eup %9300  ;;  %4078 = vst.msk [vmem:[#allocation3 + $0x39] sm:$0xff] %vm4018_vm3, %v3989_v14  ;;  %v3900_v19 = vadd.f32 1.0, %v9299_v52  ;;  %9320 = vpow2.f32 %v7299_v4  ;;  %v11030_v12 = vadd.f32 %v8141_v53, %v10956_v48  ;;  %v3541_v40 = vpop.f32.mrb[17].mxu0 }
 0x5c2   : > { %v9303_v50 = vpop.eup %9302  ;;  %4076 = vst.msk [vmem:[#allocation3 + $0x21] sm:$0xff] %vm4018_vm3, %v3987_v26  ;;  %v3898_v54 = vadd.f32 1.0, %v9301_v17  ;;  %v11034_v11 = vadd.f32 %v10956_v48, %v3541_v40  ;;  %v8142_v35 = vpop.f32.mrb[18].mxu0 }
 0x5c3   : > { %v9305_v15 = vpop.eup %9304  ;;  %9322 = vrcp.f32 %v3900_v19  ;;  %v3901_v36 = vadd.f32 1.0, %v9303_v50  ;;  %v7304_v25 = vmul.f32 -1.442695, %v11030_v12  ;;  %v11038_v56 = vadd.f32 %v8142_v35, %v10956_v48  ;;  %v3544_v62 = vpop.f32.mrb[19].mxu0 }
 0x5c4   : > { %v9307_v7 = vpop.eup %9306  ;;  %9324 = vrcp.f32 %v3898_v54  ;;  %v3899_v10 = vadd.f32 1.0, %v9305_v15  ;;  %v7302_v20 = vmul.f32 -1.442695, %v11034_v11  ;;  %v11042_v39 = vadd.f32 %v10956_v48, %v3544_v62 }
 0x5c5   : > { %v9309_v1 = vpop.eup %9308  ;;  %v3992_v49 = vmul.f32 %v9307_v7, %v10975_v43  ;;  %9326 = vrcp.f32 %v3901_v36  ;;  %v7305_v3 = vmul.f32 -1.442695, %v11038_v56 }
 0x5c6   : > { %v9311_v31 = vpop.eup %9310  ;;  %v3990_v2 = vmul.f32 %v9309_v1, %v10978_v55  ;;  %9328 = vrcp.f32 %v3899_v10  ;;  %v7303_v6 = vmul.f32 -1.442695, %v11042_v39  ;;  %v4160_v8 = vld [vmem:[#allocation3 + $0x31] sm:$0xff] }
 0x5c7   : > { %v9313_v27 = vpop.eup %9312  ;;  %4081 = vst.msk [vmem:[#allocation3 + $0x61] sm:$0xff] %vm4018_vm3, %v3992_v49  ;;  %v3993_v46 = vmul.f32 %v9311_v31, %v10982_v13  ;;  %9330 = vpow2.f32 %v7304_v25  ;;  %v4158_v13 = vld [vmem:[#allocation3 + $0x19] sm:$0xff] }
 0x5c8   : > { %v9315_v58 = vpop.eup %9314  ;;  %4079 = vst.msk [vmem:[#allocation3 + $0x49] sm:$0xff] %vm4018_vm3, %v3990_v2  ;;  %v3991_v43 = vmul.f32 %v9313_v27, %v10986_v63  ;;  %9332 = vpow2.f32 %v7302_v20  ;;  %v8145_v57 = vpop.f32.mrb[20].mxu0  ;;  %v4161_v34 = vld [vmem:[#allocation3 + $0x39] sm:$0xff] }
 0x5c9   : > { %v9317_v30 = vpop.eup %9316  ;;  %4082 = vst.msk [vmem:[#allocation3 + $0x69] sm:$0xff] %vm4018_vm3, %v3993_v46  ;;  %v3904_v55 = vadd.f32 1.0, %v9315_v58  ;;  %9334 = vpow2.f32 %v7305_v3  ;;  %v11054_v24 = vadd.f32 %v8145_v57, %v10956_v48  ;;  %v3557_v37 = vpop.f32.mrb[21].mxu0  ;;  %v4159_v51 = vld [vmem:[#allocation3 + $0x21] sm:$0xff]  ;;  %v11056_v0 = vpack.c.bf16 %v4161_v34, %v4160_v8 }
 0x5ca   : > { %v9319_v42 = vpop.eup %9318  ;;  %4080 = vst.msk [vmem:[#allocation3 + $0x51] sm:$0xff] %vm4018_vm3, %v3991_v43  ;;  %v3902_v63 = vadd.f32 1.0, %v9317_v30  ;;  %9336 = vpow2.f32 %v7303_v6  ;;  %v11060_v47 = vadd.f32 %v10956_v48, %v3557_v37  ;;  %v8146_v45 = vpop.f32.mrb[22].mxu0  ;;  %v11062_v44 = vpack.c.bf16 %v4159_v51, %v4158_v13 }
 0x5cb   : > { %v9321_v61 = vpop.eup %9320  ;;  %9338 = vrcp.f32 %v3904_v55  ;;  %v3905_v29 = vadd.f32 1.0, %v9319_v42  ;;  %v7308_v18 = vmul.f32 -1.442695, %v11054_v24  ;;  %v11066_v22 = vadd.f32 %v8146_v45, %v10956_v48  ;;  %v3560_v5 = vpop.f32.mrb[23].mxu0 }
 0x5cc   : > { %9340 = vrcp.f32 %v3902_v63  ;;  %v3903_v9 = vadd.f32 1.0, %v9321_v61  ;;  %v7306_v4 = vmul.f32 -1.442695, %v11060_v47  ;;  %v11070_v38 = vadd.f32 %v10956_v48, %v3560_v5  ;;  %8158 = vmatmul.mubr.msk.bf16.vlgmr.msra.gmra.mrb[32].mxu0 %vm4018_vm3, %v11062_v44 }
 0x5cd   : > { %v9323_v14 = vpop.eup %9322  ;;  %9342 = vrcp.f32 %v3905_v29  ;;  %v7309_v52 = vmul.f32 -1.442695, %v11066_v22  ;;  %8161 = vmatprep.mubr.msk.bf16.mxu0 %vm4018_vm3, %v11056_v0 }
 0x5ce   : > { %v9325_v26 = vpop.eup %9324  ;;  %v3996_v53 = vmul.f32 %v9323_v14, %v10991_v60  ;;  %9344 = vrcp.f32 %v3903_v9  ;;  %v7307_v17 = vmul.f32 -1.442695, %v11070_v38  ;;  %v4164_v3 = vld [vmem:[#allocation3 + $0x61] sm:$0xff] }
 0x5cf   : > { %v9327_v19 = vpop.eup %9326  ;;  %v3994_v40 = vmul.f32 %v9325_v26, %v10994_v28  ;;  %9346 = vpow2.f32 %v7308_v18  ;;  %v4162_v28 = vld [vmem:[#allocation3 + $0x49] sm:$0xff] }
 0x5d0   : > { %v9329_v50 = vpop.eup %9328  ;;  %4085 = vst.msk [vmem:[#allocation3 + $0x91] sm:$0xff] %vm4018_vm3, %v3996_v53  ;;  %v3997_v54 = vmul.f32 %v9327_v19, %v10998_v41  ;;  %9348 = vpow2.f32 %v7306_v4  ;;  %v8149_v35 = vpop.f32.mrb[24].mxu0  ;;  %v4165_v15 = vld [vmem:[#allocation3 + $0x69] sm:$0xff] }
 0x5d1   : > { %v9331_v36 = vpop.eup %9330  ;;  %4083 = vst.msk [vmem:[#allocation3 + $0x79] sm:$0xff] %vm4018_vm3, %v3994_v40  ;;  %v3995_v60 = vmul.f32 %v9329_v50, %v11002_v59  ;;  %9350 = vpow2.f32 %v7309_v52  ;;  %v11085_v25 = vadd.f32 %v8149_v35, %v10956_v48  ;;  %v3573_v62 = vpop.f32.mrb[25].mxu0  ;;  %v4163_v7 = vld [vmem:[#allocation3 + $0x51] sm:$0xff]  ;;  %v11097_v27 = vpack.c.bf16 %v4165_v15, %v4164_v3 }
 0x5d2   : > { %v9333_v10 = vpop.eup %9332  ;;  %4086 = vst.msk [vmem:[#allocation3 + $0x99] sm:$0xff] %vm4018_vm3, %v3997_v54  ;;  %v3908_v20 = vadd.f32 1.0, %v9331_v36  ;;  %9352 = vpow2.f32 %v7307_v17  ;;  %v11089_v41 = vadd.f32 %v10956_v48, %v3573_v62  ;;  %v8150_v1 = vpop.f32.mrb[26].mxu0  ;;  %v11091_v49 = vpack.c.bf16 %v4163_v7, %v4162_v28 }
 0x5d3   : > { %v9335_v59 = vpop.eup %9334  ;;  %4084 = vst.msk [vmem:[#allocation3 + $0x81] sm:$0xff] %vm4018_vm3, %v3995_v60  ;;  %v3906_v31 = vadd.f32 1.0, %v9333_v10  ;;  %v11095_v2 = vadd.f32 %v8150_v1, %v10956_v48  ;;  %v3576_v6 = vpop.f32.mrb[27].mxu0  ;;  %v7312_v43 = vmul.f32 -1.442695, %v11085_v25 }
 0x5d4   : > { %v9337_v46 = vpop.eup %9336  ;;  %9354 = vrcp.f32 %v3908_v20  ;;  %v3909_v58 = vadd.f32 1.0, %v9335_v59  ;;  %v11101_v57 = vadd.f32 %v10956_v48, %v3576_v6  ;;  %8162 = vmatmul.mubr.msk.bf16.gmra.mrb[36].mxu0 %vm4018_vm3, %v11091_v49  ;;  %v7310_v30 = vmul.f32 -1.442695, %v11089_v41 }
 0x5d5   : > { %v9339_v8 = vpop.eup %9338  ;;  %9356 = vrcp.f32 %v3906_v31  ;;  %v3907_v34 = vadd.f32 1.0, %v9337_v46  ;;  %8165 = vmatprep.mubr.msk.bf16.mxu0 %vm4018_vm3, %v11097_v27  ;;  %v7313_v13 = vmul.f32 -1.442695, %v11095_v2 }
 0x5d6   : > { %v9341_v55 = vpop.eup %9340  ;;  %v4000_v37 = vmul.f32 %v9339_v8, %v11007_v21  ;;  %9358 = vrcp.f32 %v3909_v58  ;;  %v7311_v63 = vmul.f32 -1.442695, %v11101_v57 }
 0x5d7   : > { %v9343_v51 = vpop.eup %9342  ;;  %v3998_v42 = vmul.f32 %v9341_v55, %v11010_v32  ;;  %9360 = vrcp.f32 %v3907_v34  ;;  %v4168_v28 = vld [vmem:[#allocation3 + $0x91] sm:$0xff] }
 0x5d8   : > { %v9345_v45 = vpop.eup %9344  ;;  %4089 = vst.msk [vmem:[#allocation3 + $0xc1] sm:$0xff] %vm4018_vm3, %v4000_v37  ;;  %v4001_v61 = vmul.f32 %v9343_v51, %v11014_v33  ;;  %9362 = vpow2.f32 %v7312_v43  ;;  %v8153_v29 = vpop.f32.mrb[28].mxu0  ;;  %v4166_v15 = vld [vmem:[#allocation3 + $0x79] sm:$0xff] }
 0x5d9   : > { %v9347_v18 = vpop.eup %9346  ;;  %4087 = vst.msk [vmem:[#allocation3 + $0xa9] sm:$0xff] %vm4018_vm3, %v3998_v42  ;;  %v3999_v21 = vmul.f32 %v9345_v45, %v11018_v16  ;;  %9364 = vpow2.f32 %v7310_v30  ;;  %v11117_v5 = vadd.f32 %v8153_v29, %v10956_v48  ;;  %v3589_v32 = vpop.f32.mrb[29].mxu0  ;;  %v4169_v19 = vld [vmem:[#allocation3 + $0x99] sm:$0xff] }
 0x5da   : > { %v9349_v9 = vpop.eup %9348  ;;  %4090 = vst.msk [vmem:[#allocation3 + $0xc9] sm:$0xff] %vm4018_vm3, %v4001_v61  ;;  %v3912_v4 = vadd.f32 1.0, %v9347_v18  ;;  %9366 = vpow2.f32 %v7313_v13  ;;  %v11121_v14 = vadd.f32 %v10956_v48, %v3589_v32  ;;  %v8154_v33 = vpop.f32.mrb[30].mxu0  ;;  %v4167_v52 = vld [vmem:[#allocation3 + $0x81] sm:$0xff]  ;;  %v11135_v20 = vpack.c.bf16 %v4169_v19, %v4168_v28 }
 0x5db   : > { %v9351_v26 = vpop.eup %9350  ;;  %4088 = vst.msk [vmem:[#allocation3 + $0xb1] sm:$0xff] %vm4018_vm3, %v3999_v21  ;;  %v3910_v53 = vadd.f32 1.0, %v9349_v9  ;;  %9368 = vpow2.f32 %v7311_v63  ;;  %v11125_v16 = vadd.f32 %v8154_v33, %v10956_v48  ;;  %v3592_v17 = vpop.f32.mrb[31].mxu0  ;;  %v7316_v54 = vmul.f32 -1.442695, %v11117_v5 }
 0x5dc   : > { %v9353_v40 = vpop.eup %9352  ;;  %9370 = vrcp.f32 %v3912_v4  ;;  %v3913_v50 = vadd.f32 1.0, %v9351_v26  ;;  %v11129_v35 = vadd.f32 %v10956_v48, %v3592_v17  ;;  %v7314_v60 = vmul.f32 -1.442695, %v11121_v14 }
 0x5dd   : > { %9372 = vrcp.f32 %v3910_v53  ;;  %v3911_v36 = vadd.f32 1.0, %v9353_v40  ;;  %v11132_v62 = vpack.c.bf16 %v4167_v52, %v4166_v15  ;;  %v7317_v10 = vmul.f32 -1.442695, %v11125_v16 }
 0x5de   : > { %v9355_v7 = vpop.eup %9354  ;;  %9374 = vrcp.f32 %v3913_v50  ;;  %v7315_v48 = vmul.f32 -1.442695, %v11129_v35 }
 0x5df   : > { %v9357_v1 = vpop.eup %9356  ;;  %v4004_v3 = vmul.f32 %v9355_v7, %v11030_v12  ;;  %9376 = vrcp.f32 %v3911_v36  ;;  %8166 = vmatmul.mubr.msk.bf16.gmra.mrb[40].mxu0 %vm4018_vm3, %v11132_v62  ;;  %v4172_v42 = vld [vmem:[#allocation3 + $0xc1] sm:$0xff] }
 0x5e0   : > { %v9359_v59 = vpop.eup %9358  ;;  %v4002_v31 = vmul.f32 %v9357_v1, %v11034_v11  ;;  %9378 = vpow2.f32 %v7316_v54  ;;  %8169 = vmatprep.mubr.msk.bf16.mxu0 %vm4018_vm3, %v11135_v20  ;;  %v4170_v43 = vld [vmem:[#allocation3 + $0xa9] sm:$0xff] }
 0x5e1   : > { %v9361_v6 = vpop.eup %9360  ;;  %4093 = vst.msk [vmem:[#allocation3 + $0xf1] sm:$0xff] %vm4018_vm3, %v4004_v3  ;;  %v4005_v46 = vmul.f32 %v9359_v59, %v11038_v56  ;;  %9380 = vpow2.f32 %v7314_v60  ;;  %v4173_v55 = vld [vmem:[#allocation3 + $0xc9] sm:$0xff] }
 0x5e2   : > { %v9363_v12 = vpop.eup %9362  ;;  %4091 = vst.msk [vmem:[#allocation3 + $0xd9] sm:$0xff] %vm4018_vm3, %v4002_v31  ;;  %v4003_v58 = vmul.f32 %v9361_v6, %v11042_v39  ;;  %9382 = vpow2.f32 %v7317_v10  ;;  %v4171_v8 = vld [vmem:[#allocation3 + $0xb1] sm:$0xff]  ;;  %v11152_v45 = vpack.c.bf16 %v4173_v55, %v4172_v42  ;;  %v4108_v42 = vld [vmem:[#allocation3 + $0x8] sm:$0xff] }
 0x5e3   : > { %v9365_v34 = vpop.eup %9364  ;;  %4094 = vst.msk [vmem:[#allocation3 + $0xf9] sm:$0xff] %vm4018_vm3, %v4005_v46  ;;  %v3916_v11 = vadd.f32 1.0, %v9363_v12  ;;  %9384 = vpow2.f32 %v7315_v48  ;;  %v11149_v30 = vpack.c.bf16 %v4171_v8, %v4170_v43 }
 0x5e4   : > { %v9367_v37 = vpop.eup %9366  ;;  %4092 = vst.msk [vmem:[#allocation3 + $0xe1] sm:$0xff] %vm4018_vm3, %v4003_v58  ;;  %v3914_v56 = vadd.f32 1.0, %v9365_v34 }
 0x5e5   : > { %v9369_v13 = vpop.eup %9368  ;;  %9386 = vrcp.f32 %v3916_v11  ;;  %v3917_v51 = vadd.f32 1.0, %v9367_v37 }
 0x5e6   : > { %v9371_v39 = vpop.eup %9370  ;;  %9388 = vrcp.f32 %v3914_v56  ;;  %v3915_v63 = vadd.f32 1.0, %v9369_v13 }
 0x5e7   : > { %v9373_v61 = vpop.eup %9372  ;;  %v4008_v29 = vmul.f32 %v9371_v39, %v11054_v24  ;;  %9390 = vrcp.f32 %v3917_v51  ;;  %8170 = vmatmul.mubr.msk.bf16.gmra.mrb[44].mxu0 %vm4018_vm3, %v11149_v30 }
 0x5e8   : > { %v9375_v18 = vpop.eup %9374  ;;  %v4006_v21 = vmul.f32 %v9373_v61, %v11060_v47  ;;  %9392 = vrcp.f32 %v3915_v63  ;;  %8173 = vmatprep.mubr.msk.bf16.mxu0 %vm4018_vm3, %v11152_v45  ;;  %v4176_v54 = vld [vmem:[#allocation3 + $0xf1] sm:$0xff] }
 0x5e9   : > { %v9377_v32 = vpop.eup %9376  ;;  %4097 = vst.msk [vmem:[#allocation3 + $0x121] sm:$0xff] %vm4018_vm3, %v4008_v29  ;;  %v4009_v9 = vmul.f32 %v9375_v18, %v11066_v22  ;;  %v4174_v26 = vld [vmem:[#allocation3 + $0xd9] sm:$0xff] }
 0x5ea   : > { %v9379_v4 = vpop.eup %9378  ;;  %4095 = vst.msk [vmem:[#allocation3 + $0x109] sm:$0xff] %vm4018_vm3, %v4006_v21  ;;  %v4007_v24 = vmul.f32 %v9377_v32, %v11070_v38  ;;  %v4177_v53 = vld [vmem:[#allocation3 + $0xf9] sm:$0xff] }
 0x5eb   : > { %v9381_v33 = vpop.eup %9380  ;;  %4098 = vst.msk [vmem:[#allocation3 + $0x129] sm:$0xff] %vm4018_vm3, %v4009_v9  ;;  %v3920_v52 = vadd.f32 1.0, %v9379_v4  ;;  %v4175_v47 = vld [vmem:[#allocation3 + $0xe1] sm:$0xff]  ;;  %v11168_v38 = vpack.c.bf16 %v4177_v53, %v4176_v54  ;;  %v4112_v18 = vld [vmem:[#allocation3 + $0x38] sm:$0xff]  ;;  %v4111_v4 = vld [vmem:[#allocation3 + $0x30] sm:$0xff] }
 0x5ec   : > { %v9383_v17 = vpop.eup %9382  ;;  %4096 = vst.msk [vmem:[#allocation3 + $0x111] sm:$0xff] %vm4018_vm3, %v4007_v24  ;;  %v3918_v19 = vadd.f32 1.0, %v9381_v33  ;;  %v11166_v40 = vpack.c.bf16 %v4175_v47, %v4174_v26  ;;  %v4110_v29 = vld [vmem:[#allocation3 + $0x20] sm:$0xff]  ;;  %v4109_v21 = vld [vmem:[#allocation3 + $0x18] sm:$0xff]  ;;  %v11220_v24 = vpack.c.bf16 %v4112_v18, %v4111_v4  ;;  %v4116_v26 = vld [vmem:[#allocation3 + $0x68] sm:$0xff] }
 0x5ed   : > { %v9385_v50 = vpop.eup %9384  ;;  %9394 = vrcp.f32 %v3920_v52  ;;  %v3921_v22 = vadd.f32 1.0, %v9383_v17  ;;  %v11217_v32 = vpack.c.bf16 %v4110_v29, %v4109_v21  ;;  %v11225_v33 = vld [vmem:[%s11797_s7 + $0xc] sm:$0xf]  ;;  %v4114_v52 = vld [vmem:[#allocation3 + $0x50] sm:$0xff]  ;;  %v4113_v47 = vld [vmem:[#allocation3 + $0x48] sm:$0xff] }
 0x5ee   : > { %9396 = vrcp.f32 %v3918_v19  ;;  %v3919_v15 = vadd.f32 1.0, %v9385_v50  ;;  %v11233_v53 = vpack.c.bf16 %v4114_v52, %v4113_v47  ;;  %v4115_v17 = vld [vmem:[#allocation3 + $0x60] sm:$0xff]  ;;  %v4117_v54 = vld [vmem:[#allocation3 + $0x78] sm:$0xff] }
 0x5ef   : > { %v9387_v36 = vpop.eup %9386  ;;  %9398 = vrcp.f32 %v3921_v22  ;;  %8174 = vmatmul.mubr.msk.bf16.gmra.mrb[48].mxu0 %vm4018_vm3, %v11166_v40  ;;  %v11235_v19 = vpack.c.bf16 %v4116_v26, %v4115_v17  ;;  %v4118_v50 = vld [vmem:[#allocation3 + $0x80] sm:$0xff]  ;;  %v4120_v22 = vld [vmem:[#allocation3 + $0x98] sm:$0xff]  ;;  %v5024_v26 = vsel %vm4254_vm5, %v11225_v33, 0 }
 0x5f0   : > { %v9389_v60 = vpop.eup %9388  ;;  %v4012_v28 = vmul.f32 %v9387_v36, %v11085_v25  ;;  %9400 = vrcp.f32 %v3919_v15  ;;  %8177 = vmatprep.mubr.msk.bf16.mxu0 %vm4018_vm3, %v11168_v38  ;;  %v4180_v48 = vld [vmem:[#allocation3 + $0x121] sm:$0xff]  ;;  %v11241_v15 = vpack.c.bf16 %v4118_v50, %v4117_v54  ;;  %v4119_v36 = vld [vmem:[#allocation3 + $0x90] sm:$0xff] }
 0x5f1   : > { %v9391_v7 = vpop.eup %9390  ;;  %v4010_v10 = vmul.f32 %v9389_v60, %v11089_v41  ;;  %v4178_v25 = vld [vmem:[#allocation3 + $0x109] sm:$0xff]  ;;  %v11243_v60 = vpack.c.bf16 %v4120_v22, %v4119_v36  ;;  %v4633_v18 = vld [vmem:[#allocation3 + $0x1a] sm:$0xff]  ;;  %v4638_v22 = vld [vmem:[#allocation3 + $0x52] sm:$0xff] }
 0x5f2   : > { %v9393_v1 = vpop.eup %9392  ;;  %4101 = vst.msk [vmem:[#allocation3 + $0x151] sm:$0xff] %vm4018_vm3, %v4012_v28  ;;  %v4013_v3 = vmul.f32 %v9391_v7, %v11095_v2  ;;  %v4181_v59 = vld [vmem:[#allocation3 + $0x129] sm:$0xff]  ;;  %v4636_v4 = vld [vmem:[#allocation3 + $0x3a] sm:$0xff] }
 0x5f3   : > { %4099 = vst.msk [vmem:[#allocation3 + $0x139] sm:$0xff] %vm4018_vm3, %v4010_v10  ;;  %v4011_v31 = vmul.f32 %v9393_v1, %v11101_v57  ;;  %v11180_v6 = vpack.c.bf16 %v4181_v59, %v4180_v48  ;;  %v4179_v46 = vld [vmem:[#allocation3 + $0x111] sm:$0xff]  ;;  %v4124_v7 = vld [vmem:[#allocation3 + $0xc8] sm:$0xff]  ;;  %v4126_v59 = vld [vmem:[#allocation3 + $0xe0] sm:$0xff] }
 0x5f4   : > { %4102 = vst.msk [vmem:[#allocation3 + $0x159] sm:$0xff] %vm4018_vm3, %v4013_v3  ;;  %v11183_v12 = vpack.c.bf16 %v4179_v46, %v4178_v25  ;;  %v4122_v28 = vld [vmem:[#allocation3 + $0xb0] sm:$0xff]  ;;  %v4121_v10 = vld [vmem:[#allocation3 + $0xa8] sm:$0xff]  ;;  %v4123_v3 = vld [vmem:[#allocation3 + $0xc0] sm:$0xff] }
 0x5f5   : > { %4100 = vst.msk [vmem:[#allocation3 + $0x141] sm:$0xff] %vm4018_vm3, %v4011_v31  ;;  %8181 = vmatprep.mubr.msk.bf16.mxu1 %vm4018_vm3, %v11180_v6  ;;  %v11249_v1 = vpack.c.bf16 %v4122_v28, %v4121_v10  ;;  %v11251_v48 = vpack.c.bf16 %v4124_v7, %v4123_v3  ;;  %v4128_v31 = vld [vmem:[#allocation3 + $0xf8] sm:$0xff]  ;;  %v4634_v21 = vld [vmem:[#allocation3 + $0x22] sm:$0xff]  ;;  %v4637_v50 = vld [vmem:[#allocation3 + $0x4a] sm:$0xff] }
 0x5f6   : > { %v4125_v25 = vld [vmem:[#allocation3 + $0xd8] sm:$0xff]  ;;  %v11286_v52 = vpack.c.bf16 %v4634_v21, %v4633_v18  ;;  %v7385_v17 = vld [vmem:[%s11797_s7 + $0x10] sm:$0xf]  ;;  %v4640_v36 = vld [vmem:[#allocation3 + $0x6a] sm:$0xff] }
 0x5f7   : > { %v9395_v41 = vpop.eup %9394  ;;  %8178 = vmatmul.mubr.msk.bf16.gmra.mrb[52].mxu0 %vm4018_vm3, %v11183_v12  ;;  %v11257_v46 = vpack.c.bf16 %v4126_v59, %v4125_v25  ;;  %v4639_v54 = vld [vmem:[#allocation3 + $0x62] sm:$0xff]  ;;  %v4641_v7 = vld [vmem:[#allocation3 + $0x7a] sm:$0xff]  ;;  %v4643_v3 = vld [vmem:[#allocation3 + $0x92] sm:$0xff] }
 0x5f8   : > { %v9397_v2 = vpop.eup %9396  ;;  %v4016_v57 = vmul.f32 %v9395_v41, %v11117_v5  ;;  %v4127_v41 = vld [vmem:[#allocation3 + $0xf0] sm:$0xff]  ;;  %v11302_v28 = vpack.c.bf16 %v4640_v36, %v4639_v54  ;;  %v4642_v10 = vld [vmem:[#allocation3 + $0x82] sm:$0xff]  ;;  %v4644_v59 = vld [vmem:[#allocation3 + $0x9a] sm:$0xff] }
 0x5f9   : > { %v9399_v58 = vpop.eup %9398  ;;  %v4014_v43 = vmul.f32 %v9397_v2, %v11121_v14  ;;  %v4468_v14 = vsel %vm4254_vm5, %v10950_v23, 0  ;;  %v4184_v13 = vld [vmem:[#allocation3 + $0x151] sm:$0xff]  ;;  %v11259_v2 = vpack.c.bf16 %v4128_v31, %v4127_v41  ;;  %v11308_v31 = vpack.c.bf16 %v4642_v10, %v4641_v7  ;;  %v4655_v18 = vld [vmem:[#allocation3 + $0x122] sm:$0xff] }
 0x5fa   : > { %v9401_v8 = vpop.eup %9400  ;;  %4105 = vst.msk [vmem:[#allocation3 + $0x181] sm:$0xff] %vm4018_vm3, %v4016_v57  ;;  %v4017_v34 = vmul.f32 %v9399_v58, %v11125_v16  ;;  %v4182_v37 = vld [vmem:[#allocation3 + $0x139] sm:$0xff]  ;;  %v4130_v57 = vld [vmem:[#allocation3 + $0x110] sm:$0xff]  ;;  %v4132_v58 = vld [vmem:[#allocation3 + $0x128] sm:$0xff]  ;;  %v11310_v25 = vpack.c.bf16 %v4644_v59, %v4643_v3 }
 0x5fb   : > { %4103 = vst.msk [vmem:[#allocation3 + $0x169] sm:$0xff] %vm4018_vm3, %v4014_v43  ;;  %v4015_v11 = vmul.f32 %v9401_v8, %v11129_v35  ;;  %v4185_v55 = vld [vmem:[#allocation3 + $0x159] sm:$0xff]  ;;  %v4129_v43 = vld [vmem:[#allocation3 + $0x108] sm:$0xff] }
 0x5fc   : > { %4106 = vst.msk [vmem:[#allocation3 + $0x189] sm:$0xff] %vm4018_vm3, %v4017_v34  ;;  %v4183_v56 = vld [vmem:[#allocation3 + $0x141] sm:$0xff]  ;;  %v11202_v51 = vpack.c.bf16 %v4185_v55, %v4184_v13  ;;  %v7351_v16 = vld [vmem:[%s11797_s7 + $0x8] sm:$0xf]  ;;  %v11265_v8 = vpack.c.bf16 %v4130_v57, %v4129_v43  ;;  %v4135_v13 = vld [vmem:[#allocation3 + $0x150] sm:$0xff] }
 0x5fd   : > { %4104 = vst.msk [vmem:[#allocation3 + $0x171] sm:$0xff] %vm4018_vm3, %v4015_v11  ;;  %v11198_v5 = vpack.c.bf16 %v4183_v56, %v4182_v37  ;;  %v4107_v35 = vld [vmem:[#allocation3] sm:$0xff]  ;;  %v4730_v9 = vsel %vm4254_vm5, %v7351_v16, 0  ;;  %v4136_v37 = vld [vmem:[#allocation3 + $0x158] sm:$0xff]  ;;  %v4645_v41 = vld [vmem:[#allocation3 + $0xaa] sm:$0xff] }
 0x5fe   : > { %v4139_v63 = vpack.c.bf16 %v4108_v42, %v4107_v35  ;;  %v4131_v34 = vld [vmem:[#allocation3 + $0x120] sm:$0xff]  ;;  %v4133_v56 = vld [vmem:[#allocation3 + $0x138] sm:$0xff]  ;;  %v4632_v42 = vld [vmem:[#allocation3 + $0xa] sm:$0xff] }
 0x5ff   : > { %8182 = vmatmul.mubr.msk.bf16.vlgmr.msra.gmra.mrb[4].mxu1 %vm4018_vm3, %v11198_v5  ;;  %v11267_v11 = vpack.c.bf16 %v4132_v58, %v4131_v34  ;;  %v4134_v55 = vld [vmem:[#allocation3 + $0x140] sm:$0xff]  ;;  %v4646_v57 = vld [vmem:[#allocation3 + $0xb2] sm:$0xff]  ;;  %v4648_v43 = vld [vmem:[#allocation3 + $0xca] sm:$0xff] }
 0x600   : > { %8190 = vmatpush3.bf16.msra.mxu1 %v4468_v14  ;;  %8185 = vmatprep.mubr.msk.bf16.mxu1 %vm4018_vm3, %v11202_v51  ;;  %v11273_v14 = vpack.c.bf16 %v4134_v55, %v4133_v56  ;;  %v4631_v35 = vld [vmem:[#allocation3 + $0x2] sm:$0xff]  ;;  %v11316_v34 = vpack.c.bf16 %v4646_v57, %v4645_v41  ;;  %v4656_v21 = vld [vmem:[#allocation3 + $0x12a] sm:$0xff]  ;;  %v4660_v54 = vld [vmem:[#allocation3 + $0x15a] sm:$0xff]  ;;  %v5318_v41 = vsel %vm4254_vm5, %v7385_v17, 0 }
 0x601   : > { %9117 = vmatprep.subr.msk.bf16.mxu1 %vm4254_vm5, %v7351_v16  ;;  %v11275_v16 = vpack.c.bf16 %v4136_v37, %v4135_v13  ;;  %v4647_v58 = vld [vmem:[#allocation3 + $0xc2] sm:$0xff]  ;;  %v4649_v37 = vld [vmem:[#allocation3 + $0xda] sm:$0xff]  ;;  %v4651_v13 = vld [vmem:[#allocation3 + $0xf2] sm:$0xff] }
 0x602   : > { %v4186_v39 = vld [vmem:[#allocation3 + $0x169] sm:$0xff]  ;;  %v11318_v55 = vpack.c.bf16 %v4648_v43, %v4647_v58  ;;  %v7402_v57 = vld [vmem:[%s11797_s7 + $0x14] sm:$0xf] }
 0x603   : > { %v4650_v56 = vld [vmem:[#allocation3 + $0xe2] sm:$0xff] }
 0x604   : > { %v4187_v23 = vld [vmem:[#allocation3 + $0x171] sm:$0xff] }
 0x605   : > { %v11212_v61 = vpack.c.bf16 %v4187_v23, %v4186_v39  ;;  %v4138_v39 = vld [vmem:[#allocation3 + $0x170] sm:$0xff]  ;;  %v4137_v23 = vld [vmem:[#allocation3 + $0x168] sm:$0xff] }
 0x606   : > { %v11281_v29 = vpack.c.bf16 %v4138_v39, %v4137_v23  ;;  %v4653_v23 = vld [vmem:[#allocation3 + $0x10a] sm:$0xff]  ;;  %v4662_v3 = vld [vmem:[#allocation3 + $0x172] sm:$0xff] }
 0x607   : > { %8186 = vmatmul.mubr.msk.bf16.gmra.mrb[8].mxu1 %vm4018_vm3, %v11212_v61  ;;  %v4661_v10 = vld [vmem:[#allocation3 + $0x16a] sm:$0xff] }
 0x608   : > { %8191 = vmatprep.mubr.msk.bf16.mxu1 %vm4018_vm3, %v4139_v63  ;;  %v4663_v63 = vpack.c.bf16 %v4632_v42, %v4631_v35  ;;  %v4652_v35 = vld [vmem:[#allocation3 + $0xfa] sm:$0xff]  ;;  %v11324_v42 = vpack.c.bf16 %v4650_v56, %v4649_v37  ;;  %v11348_v59 = vpack.c.bf16 %v4662_v3, %v4661_v10  ;;  %v4956_v3 = vld [vmem:[#allocation3 + $0x188] sm:$0xff] }
 0x609   : > { %v11326_v39 = vpack.c.bf16 %v4652_v35, %v4651_v13 }
 0x60f   : > { %8192 = vmatmul.mubr.msk.bf16.vlgmr.msra.gmra.mrb[12].mxu1 %vm4018_vm3, %v11217_v32 }
 0x610   : > { %8224 = vmatpush3.bf16.msra.mxu1 %v4730_v9  ;;  %8195 = vmatprep.mubr.msk.bf16.mxu1 %vm4018_vm3, %v11220_v24  ;;  %v4635_v9 = vld [vmem:[#allocation3 + $0x32] sm:$0xff] }
 0x611   : > { %9118 = vmatprep.subr.msk.bf16.mxu1 %vm4254_vm5, %v11225_v33  ;;  %v11290_v47 = vpack.c.bf16 %v4636_v4, %v4635_v9  ;;  %v11300_v33 = vpack.c.bf16 %v4638_v22, %v4637_v50  ;;  %v11334_v4 = vpack.c.bf16 %v4656_v21, %v4655_v18  ;;  %v4658_v50 = vld [vmem:[#allocation3 + $0x142] sm:$0xff]  ;;  %v4659_v22 = vld [vmem:[#allocation3 + $0x152] sm:$0xff] }
 0x612   : > { %v11342_v7 = vpack.c.bf16 %v4660_v54, %v4659_v22 }
 0x617   : > { %8196 = vmatmul.mubr.msk.bf16.gmra.mrb[16].mxu1 %vm4018_vm3, %v11233_v53 }
 0x618   : > { %8199 = vmatprep.mubr.msk.bf16.mxu1 %vm4018_vm3, %v11235_v19 }
 0x61f   : > { %8200 = vmatmul.mubr.msk.bf16.gmra.mrb[20].mxu1 %vm4018_vm3, %v11241_v15 }
 0x620   : > { %8203 = vmatprep.mubr.msk.bf16.mxu1 %vm4018_vm3, %v11243_v60 }
 0x627   : > { %8204 = vmatmul.mubr.msk.bf16.gmra.mrb[24].mxu1 %vm4018_vm3, %v11249_v1 }
 0x628   : > { %8207 = vmatprep.mubr.msk.bf16.mxu1 %vm4018_vm3, %v11251_v48 }
 0x62f   : > { %8208 = vmatmul.mubr.msk.bf16.gmra.mrb[28].mxu1 %vm4018_vm3, %v11257_v46 }
 0x630   : > { %8211 = vmatprep.mubr.msk.bf16.mxu1 %vm4018_vm3, %v11259_v2 }
 0x637   : > { %8212 = vmatmul.mubr.msk.bf16.gmra.mrb[32].mxu1 %vm4018_vm3, %v11265_v8 }
 0x638   : > { %8215 = vmatprep.mubr.msk.bf16.mxu1 %vm4018_vm3, %v11267_v11 }
 0x63f   : > { %8216 = vmatmul.mubr.msk.bf16.gmra.mrb[4].mxu1 %vm4018_vm3, %v11273_v14 }
 0x640   : > { %8219 = vmatprep.mubr.msk.bf16.mxu1 %vm4018_vm3, %v11275_v16 }
 0x647   : > { %8220 = vmatmul.mubr.msk.bf16.gmra.mrb[8].mxu1 %vm4018_vm3, %v11281_v29 }
 0x648   : > { %8225 = vmatprep.mubr.msk.bf16.mxu1 %vm4018_vm3, %v4663_v63  ;;  %v4654_v63 = vld [vmem:[#allocation3 + $0x112] sm:$0xff] }
 0x649   : > { %v11332_v9 = vpack.c.bf16 %v4654_v63, %v4653_v23 }
 0x64f   : > { %8226 = vmatmul.mubr.msk.bf16.vlgmr.msra.gmra.mrb[12].mxu1 %vm4018_vm3, %v11286_v52 }
 0x650   : > { %8258 = vmatpush3.bf16.msra.mxu1 %v5024_v26  ;;  %8229 = vmatprep.mubr.msk.bf16.mxu1 %vm4018_vm3, %v11290_v47  ;;  %v4657_v26 = vld [vmem:[#allocation3 + $0x13a] sm:$0xff] }
 0x651   : > { %9119 = vmatprep.subr.msk.bf16.mxu1 %vm4254_vm5, %v7385_v17  ;;  %v11340_v36 = vpack.c.bf16 %v4658_v50, %v4657_v26 }
 0x657   : > { %8230 = vmatmul.mubr.msk.bf16.gmra.mrb[16].mxu1 %vm4018_vm3, %v11300_v33 }
 0x658   : > { %8233 = vmatprep.mubr.msk.bf16.mxu1 %vm4018_vm3, %v11302_v28 }
 0x65f   : > { %8234 = vmatmul.mubr.msk.bf16.gmra.mrb[20].mxu1 %vm4018_vm3, %v11308_v31 }
 0x660   : > { %8237 = vmatprep.mubr.msk.bf16.mxu1 %vm4018_vm3, %v11310_v25 }
 0x667   : > { %8238 = vmatmul.mubr.msk.bf16.gmra.mrb[24].mxu1 %vm4018_vm3, %v11316_v34 }
 0x668   : > { %8241 = vmatprep.mubr.msk.bf16.mxu1 %vm4018_vm3, %v11318_v55 }
 0x66f   : > { %8242 = vmatmul.mubr.msk.bf16.gmra.mrb[28].mxu1 %vm4018_vm3, %v11324_v42 }
 0x670   : > { %8245 = vmatprep.mubr.msk.bf16.mxu1 %vm4018_vm3, %v11326_v39 }
 0x677   : > { %8246 = vmatmul.mubr.msk.bf16.gmra.mrb[32].mxu1 %vm4018_vm3, %v11332_v9 }
 0x678   : > { %8249 = vmatprep.mubr.msk.bf16.mxu1 %vm4018_vm3, %v11334_v4 }
 0x67f   : > { %8250 = vmatmul.mubr.msk.bf16.gmra.mrb[4].mxu1 %vm4018_vm3, %v11340_v36 }
 0x680   : > { %8253 = vmatprep.mubr.msk.bf16.mxu1 %vm4018_vm3, %v11342_v7 }
 0x687   : > { %8254 = vmatmul.mubr.msk.bf16.gmra.mrb[8].mxu1 %vm4018_vm3, %v11348_v59 }
 0x688   : > { %8259 = vmatprep.mubr.msk.bf16.mxu1 %vm4018_vm3, %v11217_v32 }
 0x68f   : > { %8260 = vmatmul.mubr.msk.bf16.vlgmr.msra.gmra.mrb[12].mxu1 %vm4018_vm3, %v11220_v24 }
 0x690   : > { %8292 = vmatpush3.bf16.msra.mxu1 %v5318_v41  ;;  %8263 = vmatprep.mubr.msk.bf16.mxu1 %vm4018_vm3, %v11233_v53 }
 0x691   : > { %9120 = vmatprep.subr.msk.bf16.mxu1 %vm4254_vm5, %v7402_v57 }
 0x697   : > { %8264 = vmatmul.mubr.msk.bf16.gmra.mrb[16].mxu1 %vm4018_vm3, %v11235_v19 }
 0x698   : > { %8267 = vmatprep.mubr.msk.bf16.mxu1 %vm4018_vm3, %v11241_v15 }
 0x69f   : > { %8268 = vmatmul.mubr.msk.bf16.gmra.mrb[20].mxu1 %vm4018_vm3, %v11243_v60  ;;  %v11369_v32 = vpop.f32.mrb[32].mxu0 }
 0x6a0   : > { %8271 = vmatprep.mubr.msk.bf16.mxu1 %vm4018_vm3, %v11249_v1  ;;  %v11373_v17 = vpop.f32.mrb[33].mxu0 }
 0x6a1   : > { %v11375_v58 = vpop.f32.mrb[34].mxu0 }
 0x6a2   : > { %v11377_v43 = vpop.f32.mrb[35].mxu0 }
 0x6a7   : > { %8272 = vmatmul.mubr.msk.bf16.gmra.mrb[24].mxu1 %vm4018_vm3, %v11251_v48  ;;  %v11381_v37 = vpop.f32.mrb[36].mxu0 }
 0x6a8   : > { %8275 = vmatprep.mubr.msk.bf16.mxu1 %vm4018_vm3, %v11257_v46  ;;  %v11385_v56 = vpop.f32.mrb[37].mxu0 }
 0x6a9   : > { %v11387_v13 = vpop.f32.mrb[38].mxu0 }
 0x6aa   : > { %v11389_v35 = vpop.f32.mrb[39].mxu0 }
 0x6af   : > { %8276 = vmatmul.mubr.msk.bf16.gmra.mrb[28].mxu1 %vm4018_vm3, %v11259_v2 }
 0x6b0   : > { %8279 = vmatprep.mubr.msk.bf16.mxu1 %vm4018_vm3, %v11265_v8 }
 0x6b2   : > { %v11395_v23 = vpop.f32.mrb[40].mxu0 }
 0x6b3   : > { %v11397_v63 = vpop.f32.mrb[41].mxu0 }
 0x6b4   : > { %v11399_v18 = vpop.f32.mrb[42].mxu0 }
 0x6b5   : > { %11801 = vst [vmem:[#allocation4_spill] sm:$0xff] %v11399_v18  ;;  %v11401_v21 = vpop.f32.mrb[43].mxu0 }
 0x6b6   : > { %11802 = vst [vmem:[#allocation5_spill] sm:$0xff] %v11401_v21 }
 0x6b7   : > { %8280 = vmatmul.mubr.msk.bf16.gmra.mrb[32].mxu1 %vm4018_vm3, %v11267_v11 }
 0x6b8   : > { %8283 = vmatprep.mubr.msk.bf16.mxu1 %vm4018_vm3, %v11273_v14 }
 0x6ba   : > { %v11407_v26 = vpop.f32.mrb[44].mxu0 }
 0x6bb   : > { %11803 = vst [vmem:[#allocation6_spill] sm:$0xff] %v11407_v26  ;;  %v11409_v50 = vpop.f32.mrb[45].mxu0  ;;  %v4955_v26 = vld [vmem:[#allocation3 + $0x180] sm:$0xff] }
 0x6bc   : > { %11804 = vst [vmem:[#allocation7_spill] sm:$0xff] %v11409_v50  ;;  %v11411_v22 = vpop.f32.mrb[46].mxu0  ;;  %v11427_v50 = vpack.c.bf16 %v4956_v3, %v4955_v26  ;;  %v7419_v26 = vld [vmem:[%s11797_s7 + $0x18] sm:$0xf] }
 0x6bd   : > { %11805 = vst [vmem:[#allocation8_spill] sm:$0xff] %v11411_v22  ;;  %v11413_v54 = vpop.f32.mrb[47].mxu0 }
 0x6be   : > { %11806 = vst [vmem:[#allocation9_spill] sm:$0xff] %v11413_v54 }
 0x6bf   : > { %8284 = vmatmul.mubr.msk.bf16.gmra.mrb[4].mxu1 %vm4018_vm3, %v11275_v16 }
 0x6c0   : > { %8287 = vmatprep.mubr.msk.bf16.mxu1 %vm4018_vm3, %v11281_v29 }
 0x6c2   : > { %v11419_v10 = vpop.f32.mrb[48].mxu0 }
 0x6c3   : > { %11807 = vst [vmem:[#allocation10_spill] sm:$0xff] %v11419_v10  ;;  %v11421_v41 = vpop.f32.mrb[49].mxu0 }
 0x6c4   : > { %11808 = vst [vmem:[#allocation11_spill] sm:$0xff] %v11421_v41  ;;  %v11423_v21 = vpop.f32.mrb[50].mxu0 }
 0x6c5   : > { %11809 = vst [vmem:[#allocation12_spill] sm:$0xff] %v11423_v21  ;;  %v11425_v18 = vpop.f32.mrb[51].mxu0  ;;  %v5612_v21 = vsel %vm4254_vm5, %v7402_v57, 0  ;;  %v6113_v57 = vld [vmem:[#allocation3 + $0xb1] sm:$0xff] }
 0x6c7   : > { %8288 = vmatmul.mubr.msk.bf16.gmra.mrb[8].mxu1 %vm4018_vm3, %v11427_v50 }
 0x6c8   : > { %8293 = vmatprep.mubr.msk.bf16.mxu1 %vm4018_vm3, %v11062_v44  ;;  %v5249_v44 = vld [vmem:[#allocation3 + $0x181] sm:$0xff] }
 0x6ca   : > { %v11433_v54 = vpop.f32.mrb[52].mxu0 }
 0x6cb   : > { %v11435_v22 = vpop.f32.mrb[53].mxu0 }
 0x6cc   : > { %v11437_v10 = vpop.f32.mrb[54].mxu0 }
 0x6cd   : > { %v11439_v41 = vpop.f32.mrb[55].mxu0 }
 0x6cf   : > { %8294 = vmatmul.mubr.msk.bf16.vlgmr.msra.gmra.mrb[12].mxu1 %vm4018_vm3, %v11056_v0  ;;  %v5250_v0 = vld [vmem:[#allocation3 + $0x189] sm:$0xff] }
 0x6d0   : > { %8326 = vmatpush3.bf16.msra.mxu1 %v5612_v21  ;;  %8297 = vmatprep.mubr.msk.bf16.mxu1 %vm4018_vm3, %v11091_v49  ;;  %v11474_v49 = vpack.c.bf16 %v5250_v0, %v5249_v44  ;;  %v6115_v21 = vld [vmem:[#allocation3 + $0xc9] sm:$0xff]  ;;  %v6117_v44 = vld [vmem:[#allocation3 + $0xe1] sm:$0xff] }
 0x6d1   : > { %9121 = vmatprep.subr.msk.bf16.mxu1 %vm4254_vm5, %v7419_v26 }
 0x6d7   : > { %8298 = vmatmul.mubr.msk.bf16.gmra.mrb[16].mxu1 %vm4018_vm3, %v11097_v27  ;;  %v5907_v27 = vsel %vm4254_vm5, %v7419_v26, 0  ;;  %v6114_v26 = vld [vmem:[#allocation3 + $0xc1] sm:$0xff] }
 0x6d8   : > { %8301 = vmatprep.mubr.msk.bf16.mxu1 %vm4018_vm3, %v11132_v62  ;;  %v7436_v62 = vld [vmem:[%s11797_s7 + $0x1c] sm:$0xf]  ;;  %v6140_v0 = vpack.c.bf16 %v6115_v21, %v6114_v26 }
 0x6d9   : > { %v6701_v21 = vld [vmem:[%s9590_s18 + $0x58] sm:$0xff] }
 0x6df   : > { %8302 = vmatmul.mubr.msk.bf16.gmra.mrb[20].mxu1 %vm4018_vm3, %v11135_v20  ;;  %v5543_v20 = vld [vmem:[#allocation3 + $0x182] sm:$0xff] }
 0x6e0   : > { %8305 = vmatprep.mubr.msk.bf16.mxu1 %vm4018_vm3, %v11149_v30  ;;  %v5544_v30 = vld [vmem:[#allocation3 + $0x18a] sm:$0xff] }
 0x6e7   : > { %8306 = vmatmul.mubr.msk.bf16.gmra.mrb[24].mxu1 %vm4018_vm3, %v11152_v45  ;;  %v11513_v45 = vpack.c.bf16 %v5544_v30, %v5543_v20  ;;  %v6118_v30 = vld [vmem:[#allocation3 + $0xf1] sm:$0xff] }
 0x6e8   : > { %8309 = vmatprep.mubr.msk.bf16.mxu1 %vm4018_vm3, %v11166_v40  ;;  %v6201_v40 = vsel %vm4254_vm5, %v7436_v62, 0 }
 0x6ef   : > { %8310 = vmatmul.mubr.msk.bf16.gmra.mrb[28].mxu1 %vm4018_vm3, %v11168_v38  ;;  %v7453_v38 = vld [vmem:[%s11797_s7 + $0x20] sm:$0xf] }
 0x6f0   : > { %8313 = vmatprep.mubr.msk.bf16.mxu1 %vm4018_vm3, %v11183_v12  ;;  %v5839_v12 = vld [vmem:[#allocation3 + $0x1a0] sm:$0xff] }
 0x6f7   : > { %8314 = vmatmul.mubr.msk.bf16.gmra.mrb[32].mxu1 %vm4018_vm3, %v11180_v6  ;;  %v5838_v6 = vld [vmem:[#allocation3 + $0x198] sm:$0xff] }
 0x6f8   : > { %8317 = vmatprep.mubr.msk.bf16.mxu1 %vm4018_vm3, %v11198_v5  ;;  %v5855_v5 = vpack.c.bf16 %v5839_v12, %v5838_v6  ;;  %v6123_v6 = vld [vmem:[#allocation3 + $0x129] sm:$0xff] }
 0x6f9   : > { %v6120_v12 = vld [vmem:[#allocation3 + $0x109] sm:$0xff] }
 0x6ff   : > { %8318 = vmatmul.mubr.msk.bf16.gmra.mrb[4].mxu1 %vm4018_vm3, %v11202_v51  ;;  %v6103_v51 = vld [vmem:[#allocation3 + $0x39] sm:$0xff] }
 0x700   : > { %8321 = vmatprep.mubr.msk.bf16.mxu1 %vm4018_vm3, %v11212_v61  ;;  %v6102_v61 = vld [vmem:[#allocation3 + $0x31] sm:$0xff] }
 0x707   : > { %8322 = vmatmul.mubr.msk.bf16.gmra.mrb[8].mxu1 %vm4018_vm3, %v11474_v49 }
 0x708   : > { %8327 = vmatprep.mubr.msk.bf16.mxu1 %vm4018_vm3, %v11286_v52 }
 0x70f   : > { %8328 = vmatmul.mubr.msk.bf16.vlgmr.msra.gmra.mrb[12].mxu1 %vm4018_vm3, %v11290_v47 }
 0x710   : > { %8360 = vmatpush3.bf16.msra.mxu1 %v5907_v27  ;;  %8331 = vmatprep.mubr.msk.bf16.mxu1 %vm4018_vm3, %v11300_v33  ;;  %v6119_v27 = vld [vmem:[#allocation3 + $0xf9] sm:$0xff] }
 0x711   : > { %9122 = vmatprep.subr.msk.bf16.mxu1 %vm4254_vm5, %v7436_v62  ;;  %v6116_v62 = vld [vmem:[#allocation3 + $0xd9] sm:$0xff] }
 0x712   : > { %v6141_v20 = vpack.c.bf16 %v6117_v44, %v6116_v62  ;;  %v6704_v44 = vld [vmem:[%s9590_s18 + $0x70] sm:$0xff]  ;;  %v6706_v62 = vld [vmem:[%s9590_s18 + $0x80] sm:$0xff] }
 0x717   : > { %8332 = vmatmul.mubr.msk.bf16.gmra.mrb[16].mxu1 %vm4018_vm3, %v11302_v28 }
 0x718   : > { %8335 = vmatprep.mubr.msk.bf16.mxu1 %vm4018_vm3, %v11308_v31 }
 0x71f   : > { %8336 = vmatmul.mubr.msk.bf16.gmra.mrb[20].mxu1 %vm4018_vm3, %v11310_v25 }
 0x720   : > { %8339 = vmatprep.mubr.msk.bf16.mxu1 %vm4018_vm3, %v11316_v34 }
 0x727   : > { %8340 = vmatmul.mubr.msk.bf16.gmra.mrb[24].mxu1 %vm4018_vm3, %v11318_v55 }
 0x728   : > { %8343 = vmatprep.mubr.msk.bf16.mxu1 %vm4018_vm3, %v11324_v42 }
 0x72f   : > { %8344 = vmatmul.mubr.msk.bf16.gmra.mrb[28].mxu1 %vm4018_vm3, %v11326_v39 }
 0x730   : > { %8347 = vmatprep.mubr.msk.bf16.mxu1 %vm4018_vm3, %v11332_v9 }
 0x737   : > { %8348 = vmatmul.mubr.msk.bf16.gmra.mrb[32].mxu1 %vm4018_vm3, %v11334_v4 }
 0x738   : > { %8351 = vmatprep.mubr.msk.bf16.mxu1 %vm4018_vm3, %v11340_v36 }
 0x73f   : > { %8352 = vmatmul.mubr.msk.bf16.gmra.mrb[4].mxu1 %vm4018_vm3, %v11342_v7 }
 0x740   : > { %8355 = vmatprep.mubr.msk.bf16.mxu1 %vm4018_vm3, %v11348_v59 }
 0x747   : > { %8356 = vmatmul.mubr.msk.bf16.gmra.mrb[8].mxu1 %vm4018_vm3, %v11513_v45 }
 0x748   : > { %8361 = vmatprep.mubr.msk.bf16.mxu1 %vm4018_vm3, %v11220_v24  ;;  %v6134_v24 = vpack.c.bf16 %v6103_v51, %v6102_v61  ;;  %v6122_v51 = vld [vmem:[#allocation3 + $0x121] sm:$0xff] }
 0x749   : > { %v6144_v61 = vpack.c.bf16 %v6123_v6, %v6122_v51  ;;  %v6709_v6 = vld [vmem:[%s9590_s18 + $0x98] sm:$0xff] }
 0x74f   : > { %8362 = vmatmul.mubr.msk.bf16.vlgmr.msra.gmra.mrb[12].mxu1 %vm4018_vm3, %v11233_v53  ;;  %v6105_v53 = vld [vmem:[#allocation3 + $0x51] sm:$0xff] }
 0x750   : > { %8394 = vmatpush3.bf16.msra.mxu1 %v6201_v40  ;;  %8365 = vmatprep.mubr.msk.bf16.mxu1 %vm4018_vm3, %v11235_v19  ;;  %v6107_v19 = vld [vmem:[#allocation3 + $0x69] sm:$0xff]  ;;  %v6142_v40 = vpack.c.bf16 %v6119_v27, %v6118_v30 }
 0x751   : > { %9123 = vmatprep.subr.msk.bf16.mxu1 %vm4254_vm5, %v7453_v38  ;;  %v6705_v27 = vld [vmem:[%s9590_s18 + $0x78] sm:$0xff] }
 0x752   : > { %v6729_v30 = vpack.c.bf16 %v6705_v27, %v6704_v44 }
 0x757   : > { %8366 = vmatmul.mubr.msk.bf16.gmra.mrb[16].mxu1 %vm4018_vm3, %v11241_v15  ;;  %v6104_v15 = vld [vmem:[#allocation3 + $0x49] sm:$0xff] }
 0x758   : > { %8369 = vmatprep.mubr.msk.bf16.mxu1 %vm4018_vm3, %v11243_v60  ;;  %v6135_v60 = vpack.c.bf16 %v6105_v53, %v6104_v15  ;;  %v6127_v53 = vld [vmem:[#allocation3 + $0x159] sm:$0xff] }
 0x75f   : > { %8370 = vmatmul.mubr.msk.bf16.gmra.mrb[20].mxu1 %vm4018_vm3, %v11249_v1  ;;  %v6495_v1 = vsel %vm4254_vm5, %v7453_v38, 0  ;;  %v6121_v38 = vld [vmem:[#allocation3 + $0x111] sm:$0xff] }
 0x760   : > { %8373 = vmatprep.mubr.msk.bf16.mxu1 %vm4018_vm3, %v11251_v48  ;;  %v6106_v48 = vld [vmem:[#allocation3 + $0x61] sm:$0xff] }
 0x767   : > { %8374 = vmatmul.mubr.msk.bf16.gmra.mrb[24].mxu1 %vm4018_vm3, %v11257_v46  ;;  %v6136_v46 = vpack.c.bf16 %v6107_v19, %v6106_v48  ;;  %v6124_v19 = vld [vmem:[#allocation3 + $0x139] sm:$0xff]  ;;  %v6129_v48 = vld [vmem:[#allocation3 + $0x171] sm:$0xff] }
 0x768   : > { %8377 = vmatprep.mubr.msk.bf16.mxu1 %vm4018_vm3, %v11259_v2  ;;  %v6738_v2 = vld [vmem:[%s11798_s8] sm:$0x3] }
 0x76f   : > { %8378 = vmatmul.mubr.msk.bf16.gmra.mrb[28].mxu1 %vm4018_vm3, %v11265_v8  ;;  %v6109_v8 = vld [vmem:[#allocation3 + $0x81] sm:$0xff] }
 0x770   : > { %8381 = vmatprep.mubr.msk.bf16.mxu1 %vm4018_vm3, %v11267_v11  ;;  %v6111_v11 = vld [vmem:[#allocation3 + $0x99] sm:$0xff] }
 0x777   : > { %8382 = vmatmul.mubr.msk.bf16.gmra.mrb[32].mxu1 %vm4018_vm3, %v11273_v14  ;;  %v6108_v14 = vld [vmem:[#allocation3 + $0x79] sm:$0xff] }
 0x778   : > { %8385 = vmatprep.mubr.msk.bf16.mxu1 %vm4018_vm3, %v11275_v16  ;;  %v6137_v16 = vpack.c.bf16 %v6109_v8, %v6108_v14  ;;  %v6133_v14 = vld [vmem:[#allocation3 + $0x1a1] sm:$0xff] }
 0x77f   : > { %8386 = vmatmul.mubr.msk.bf16.gmra.mrb[4].mxu1 %vm4018_vm3, %v11281_v29  ;;  %v6110_v29 = vld [vmem:[#allocation3 + $0x91] sm:$0xff] }
 0x780   : > { %8389 = vmatprep.mubr.msk.bf16.mxu1 %vm4018_vm3, %v11427_v50  ;;  %v6138_v52 = vpack.c.bf16 %v6111_v11, %v6110_v29  ;;  %v6112_v50 = vld [vmem:[#allocation3 + $0xa9] sm:$0xff]  ;;  %v6132_v11 = vld [vmem:[#allocation3 + $0x199] sm:$0xff]  ;;  %v6795_v29 = vsel %vm1200_vm2, %v6738_v2, 0 }
 0x781   : > { %v6139_v3 = vpack.c.bf16 %v6113_v57, %v6112_v50  ;;  %v6700_v57 = vld [vmem:[%s9590_s18 + $0x50] sm:$0xff]  ;;  %v6702_v50 = vld [vmem:[%s9590_s18 + $0x60] sm:$0xff] }
 0x782   : > { %v6727_v26 = vpack.c.bf16 %v6701_v21, %v6700_v57 }
 0x787   : > { %8390 = vmatmul.mubr.msk.bf16.gmra.mrb[8].mxu1 %vm4018_vm3, %v5855_v5  ;;  %v6143_v5 = vpack.c.bf16 %v6121_v38, %v6120_v12  ;;  %v6708_v38 = vld [vmem:[%s9590_s18 + $0x90] sm:$0xff]  ;;  %v6710_v12 = vld [vmem:[%s9590_s18 + $0xa0] sm:$0xff] }
 0x788   : > { %8395 = vmatprep.mubr.msk.bf16.mxu1 %vm4018_vm3, %v6134_v24  ;;  %v6125_v24 = vld [vmem:[#allocation3 + $0x141] sm:$0xff]  ;;  %v6731_v51 = vpack.c.bf16 %v6709_v6, %v6708_v38 }
 0x789   : > { %v6145_v15 = vpack.c.bf16 %v6125_v24, %v6124_v19  ;;  %v6712_v24 = vld [vmem:[%s9590_s18 + $0xb0] sm:$0xff]  ;;  %v6714_v19 = vld [vmem:[%s9590_s18 + $0xc0] sm:$0xff] }
 0x78f   : > { %8396 = vmatmul.mubr.msk.bf16.vlgmr.msra.gmra.mrb[12].mxu1 %vm4018_vm3, %v6135_v60  ;;  %v6126_v60 = vld [vmem:[#allocation3 + $0x151] sm:$0xff] }
 0x790   : > { %8428 = vmatpush3.bf16.msra.mxu1 %v6495_v1  ;;  %8399 = vmatprep.mubr.msk.bf16.mxu1 %vm4018_vm3, %v6136_v46  ;;  %v6146_v1 = vpack.c.bf16 %v6127_v53, %v6126_v60  ;;  %v6128_v46 = vld [vmem:[#allocation3 + $0x169] sm:$0xff] }
 0x791   : > { %9124 = vmatprep.subr.msk.bf16.mxu1 %vm1200_vm2, %v6738_v2  ;;  %v6147_v8 = vpack.c.bf16 %v6129_v48, %v6128_v46  ;;  %v6713_v53 = vld [vmem:[%s9590_s18 + $0xb8] sm:$0xff]  ;;  %v6716_v48 = vld [vmem:[%s9590_s18 + $0xd0] sm:$0xff] }
 0x792   : > { %v6733_v60 = vpack.c.bf16 %v6713_v53, %v6712_v24  ;;  %v6717_v46 = vld [vmem:[%s9590_s18 + $0xd8] sm:$0xff]  ;;  %v11814_v24 = vld [vmem:[#allocation8_spill] sm:$0xff] }
 0x797   : > { %8400 = vmatmul.mubr.msk.bf16.gmra.mrb[16].mxu1 %vm4018_vm3, %v6137_v16  ;;  %v6149_v16 = vpack.c.bf16 %v6133_v14, %v6132_v11  ;;  %v6719_v11 = vld [vmem:[%s9590_s18 + $0xe8] sm:$0xff]  ;;  %v6735_v14 = vpack.c.bf16 %v6717_v46, %v6716_v48 }
 0x798   : > { %8403 = vmatprep.mubr.msk.bf16.mxu1 %vm4018_vm3, %v6138_v52 }
 0x79f   : > { %8404 = vmatmul.mubr.msk.bf16.gmra.mrb[20].mxu1 %vm4018_vm3, %v6139_v3  ;;  %v6703_v3 = vld [vmem:[%s9590_s18 + $0x68] sm:$0xff] }
 0x7a0   : > { %8407 = vmatprep.mubr.msk.bf16.mxu1 %vm4018_vm3, %v6140_v0  ;;  %v6728_v0 = vpack.c.bf16 %v6703_v3, %v6702_v50 }
 0x7a7   : > { %8408 = vmatmul.mubr.msk.bf16.gmra.mrb[24].mxu1 %vm4018_vm3, %v6141_v20  ;;  %v6707_v20 = vld [vmem:[%s9590_s18 + $0x88] sm:$0xff] }
 0x7a8   : > { %8411 = vmatprep.mubr.msk.bf16.mxu1 %vm4018_vm3, %v6142_v40  ;;  %v6730_v40 = vpack.c.bf16 %v6707_v20, %v6706_v62  ;;  %v11811_v62 = vld [vmem:[#allocation5_spill] sm:$0xff] }
 0x7af   : > { %8412 = vmatmul.mubr.msk.bf16.gmra.mrb[28].mxu1 %vm4018_vm3, %v6143_v5  ;;  %v6711_v5 = vld [vmem:[%s9590_s18 + $0xa8] sm:$0xff] }
 0x7b0   : > { %8415 = vmatprep.mubr.msk.bf16.mxu1 %vm4018_vm3, %v6144_v61  ;;  %v6732_v61 = vpack.c.bf16 %v6711_v5, %v6710_v12  ;;  %v11813_v5 = vld [vmem:[#allocation7_spill] sm:$0xff] }
 0x7b7   : > { %8416 = vmatmul.mubr.msk.bf16.gmra.mrb[32].mxu1 %vm4018_vm3, %v6145_v15  ;;  %v6715_v15 = vld [vmem:[%s9590_s18 + $0xc8] sm:$0xff] }
 0x7b8   : > { %8419 = vmatprep.mubr.msk.bf16.mxu1 %vm4018_vm3, %v6146_v1  ;;  %v6734_v1 = vpack.c.bf16 %v6715_v15, %v6714_v19 }
 0x7bf   : > { %8420 = vmatmul.mubr.msk.bf16.gmra.mrb[4].mxu1 %vm4018_vm3, %v6147_v8  ;;  %v6718_v8 = vld [vmem:[%s9590_s18 + $0xe0] sm:$0xff] }
 0x7c0   : > { %8423 = vmatprep.mubr.msk.bf16.mxu1 %vm4018_vm3, %v11474_v49  ;;  %v6698_v49 = vld [vmem:[%s9590_s18 + $0x40] sm:$0xff] }
 0x7c7   : > { %8424 = vmatmul.mubr.msk.bf16.gmra.mrb[8].mxu1 %vm4018_vm3, %v6149_v16  ;;  %v6736_v16 = vpack.c.bf16 %v6719_v11, %v6718_v8 }
 0x7c8   : > { %8429 = vmatprep.mubr.msk.bf16.mxu1 %vm4018_vm3, %v11290_v47  ;;  %v6426_v47 = vld [vmem:[#allocation3 + $0x19a] sm:$0xff] }
 0x7cf   : > { %8430 = vmatmul.mubr.msk.bf16.vlgmr.msra.gmra.mrb[12].mxu1 %vm4018_vm3, %v11300_v33  ;;  %v6427_v33 = vld [vmem:[#allocation3 + $0x1a2] sm:$0xff] }
 0x7d0   : > { %8462 = vmatpush3.bf16.msra.mxu1 %v6795_v29  ;;  %8433 = vmatprep.mubr.msk.bf16.mxu1 %vm4018_vm3, %v11302_v28  ;;  %v6690_v28 = vld [vmem:[%s9590_s18] sm:$0xff]  ;;  %v6720_v29 = vld [vmem:[%s9590_s18 + $0xf0] sm:$0xff] }
 0x7d7   : > { %8434 = vmatmul.mubr.msk.bf16.gmra.mrb[16].mxu1 %vm4018_vm3, %v11308_v31  ;;  %v6691_v31 = vld [vmem:[%s9590_s18 + $0x8] sm:$0xff] }
 0x7d8   : > { %8437 = vmatprep.mubr.msk.bf16.mxu1 %vm4018_vm3, %v11310_v25  ;;  %v6443_v25 = vpack.c.bf16 %v6427_v33, %v6426_v47  ;;  %v6721_v47 = vld [vmem:[%s9590_s18 + $0xf8] sm:$0xff] }
 0x7d9   : > { %v6737_v33 = vpack.c.bf16 %v6721_v47, %v6720_v29  ;;  %v11817_v47 = vld [vmem:[#allocation11_spill] sm:$0xff] }
 0x7df   : > { %8438 = vmatmul.mubr.msk.bf16.gmra.mrb[20].mxu1 %vm4018_vm3, %v11316_v34  ;;  %v6722_v34 = vpack.c.bf16 %v6691_v31, %v6690_v28  ;;  %v11658_v28 = vld [vmem:[%s11799_s9] ss:$0 sm:$0xff] }
 0x7e0   : > { %8441 = vmatprep.mubr.msk.bf16.mxu1 %vm4018_vm3, %v11318_v55  ;;  %v6692_v55 = vld [vmem:[%s9590_s18 + $0x10] sm:$0xff]  ;;  %v8551_v20 = vadd.f32 %v11658_v28, %v11811_v62  ;;  %v8557_v53 = vadd.f32 %v11814_v24, %v11658_v28 }
 0x7e7   : > { %8442 = vmatmul.mubr.msk.bf16.gmra.mrb[24].mxu1 %vm4018_vm3, %v11324_v42  ;;  %v6693_v42 = vld [vmem:[%s9590_s18 + $0x18] sm:$0xff] }
 0x7e8   : > { %8445 = vmatprep.mubr.msk.bf16.mxu1 %vm4018_vm3, %v11326_v39  ;;  %v6694_v39 = vld [vmem:[%s9590_s18 + $0x20] sm:$0xff] }
 0x7ef   : > { %8446 = vmatmul.mubr.msk.bf16.gmra.mrb[28].mxu1 %vm4018_vm3, %v11332_v9  ;;  %v6695_v9 = vld [vmem:[%s9590_s18 + $0x28] sm:$0xff] }
 0x7f0   : > { %8449 = vmatprep.mubr.msk.bf16.mxu1 %vm4018_vm3, %v11334_v4  ;;  %v6723_v4 = vpack.c.bf16 %v6693_v42, %v6692_v55  ;;  %v8535_v42 = vadd.f32 %v11658_v28, %v11377_v43 }
 0x7f7   : > { %8450 = vmatmul.mubr.msk.bf16.gmra.mrb[32].mxu1 %vm4018_vm3, %v11340_v36  ;;  %v6724_v36 = vpack.c.bf16 %v6695_v9, %v6694_v39 }
 0x7f8   : > { %8453 = vmatprep.mubr.msk.bf16.mxu1 %vm4018_vm3, %v11342_v7  ;;  %v6696_v7 = vld [vmem:[%s9590_s18 + $0x30] sm:$0xff] }
 0x7ff   : > { %8454 = vmatmul.mubr.msk.bf16.gmra.mrb[4].mxu1 %vm4018_vm3, %v11348_v59  ;;  %v6697_v59 = vld [vmem:[%s9590_s18 + $0x38] sm:$0xff] }
 0x800   : > { %8457 = vmatprep.mubr.msk.bf16.mxu1 %vm4018_vm3, %v11513_v45  ;;  %v6699_v45 = vld [vmem:[%s9590_s18 + $0x48] sm:$0xff]  ;;  %v6725_v2 = vpack.c.bf16 %v6697_v59, %v6696_v7  ;;  %v8539_v7 = vadd.f32 %v11658_v28, %v11385_v56  ;;  %v8545_v56 = vadd.f32 %v11395_v23, %v11658_v28 }
 0x801   : > { %v6726_v52 = vpack.c.bf16 %v6699_v45, %v6698_v49  ;;  %v8541_v49 = vadd.f32 %v11387_v13, %v11658_v28  ;;  %v8547_v13 = vadd.f32 %v11658_v28, %v11397_v63  ;;  %v11812_v63 = vld [vmem:[#allocation6_spill] sm:$0xff] }
 0x802   : > { %v8553_v12 = vadd.f32 %v11812_v63, %v11658_v28 }
 0x807   : > { %8458 = vmatmul.mubr.msk.bf16.gmra.mrb[8].mxu1 %vm4018_vm3, %v6443_v25  ;;  %v8533_v25 = vadd.f32 %v11375_v58, %v11658_v28 }
 0x808   : > { %8463 = vmatprep.mubr.msk.bf16.mxu1 %vm410_vm0, %v6722_v34 }
 0x80f   : > { %8464 = vmatmul.mubr.msk.bf16.vlgmr.msra.gmra.mrb[12].mxu1 %vm410_vm0, %v6723_v4 }
 0x810   : > { %8467 = vmatprep.mubr.msk.bf16.mxu1 %vm410_vm0, %v6724_v36 }
 0x817   : > { %8468 = vmatmul.mubr.msk.bf16.gmra.mrb[16].mxu1 %vm410_vm0, %v6725_v2 }
 0x818   : > { %8471 = vmatprep.mubr.msk.bf16.mxu1 %vm410_vm0, %v6726_v52  ;;  %v8543_v52 = vadd.f32 %v11658_v28, %v11389_v35 }
 0x81f   : > { %8472 = vmatmul.mubr.msk.bf16.gmra.mrb[20].mxu1 %vm410_vm0, %v6727_v26  ;;  %v11810_v26 = vld [vmem:[#allocation4_spill] sm:$0xff] }
 0x820   : > { %8475 = vmatprep.mubr.msk.bf16.mxu1 %vm410_vm0, %v6728_v0  ;;  %v8549_v0 = vadd.f32 %v11810_v26, %v11658_v28 }
 0x827   : > { %8476 = vmatmul.mubr.msk.bf16.gmra.mrb[24].mxu1 %vm410_vm0, %v6729_v30 }
 0x828   : > { %8479 = vmatprep.mubr.msk.bf16.mxu1 %vm410_vm0, %v6730_v40 }
 0x82f   : > { %8480 = vmatmul.mubr.msk.bf16.gmra.mrb[28].mxu1 %vm410_vm0, %v6731_v51  ;;  %v8555_v51 = vadd.f32 %v11658_v28, %v11813_v5 }
 0x830   : > { %8483 = vmatprep.mubr.msk.bf16.mxu1 %vm410_vm0, %v6732_v61 }
 0x837   : > { %8484 = vmatmul.mubr.msk.bf16.gmra.mrb[32].mxu1 %vm410_vm0, %v6733_v60  ;;  %v11815_v60 = vld [vmem:[#allocation9_spill] sm:$0xff] }
 0x838   : > { %8487 = vmatprep.mubr.msk.bf16.mxu1 %vm410_vm0, %v6734_v1  ;;  %v8559_v1 = vadd.f32 %v11658_v28, %v11815_v60 }
 0x83f   : > { %8488 = vmatmul.mubr.msk.bf16.gmra.mrb[4].mxu1 %vm410_vm0, %v6735_v14 }
 0x840   : > { %8491 = vmatprep.mubr.msk.bf16.mxu1 %vm410_vm0, %v6736_v16  ;;  %v11816_v16 = vld [vmem:[#allocation10_spill] sm:$0xff] }
 0x841   : > { %v8561_v29 = vadd.f32 %v11816_v16, %v11658_v28 }
 0x847   : > { %8492 = vmatmul.mubr.msk.bf16.gmra.mrb[8].mxu1 %vm410_vm0, %v6737_v33  ;;  %v8563_v33 = vadd.f32 %v11658_v28, %v11817_v47 }
 0x8e2   : > { %v8465_v31 = vpop.f32.mrb[12].mxu1 }
 0x8e3   : > { %v8529_v34 = vadd.f32 %v8465_v31, %v11369_v32  ;;  %v6831_v55 = vpop.f32.mrb[13].mxu1 }
 0x8e4   : > { %v8531_v39 = vadd.f32 %v6831_v55, %v11373_v17  ;;  %v8466_v9 = vpop.f32.mrb[14].mxu1  ;;  %v8537_v17 = vadd.f32 %v11381_v37, %v11658_v28 }
 0x8e5   : > { %v8530_v58 = vadd.f32 %v8529_v34, %v11658_v28  ;;  %v8534_v32 = vadd.f32 %v8533_v25, %v8466_v9  ;;  %v6834_v4 = vpop.f32.mrb[15].mxu1  ;;  %v11818_v25 = vld [vmem:[#allocation12_spill] sm:$0xff] }
 0x8e6   : > { %v8532_v43 = vadd.f32 %v8531_v39, %v11658_v28  ;;  %v8536_v36 = vadd.f32 %v8535_v42, %v6834_v4  ;;  %v8565_v34 = vadd.f32 %v11818_v25, %v11658_v28  ;;  %v8567_v39 = vadd.f32 %v11658_v28, %v11425_v18 }
 0x8e7   : > { %6992 = vst.msk [vmem:[%s11670_s28 + $0x10] sm:$0xff] %vm4018_vm3, %v8530_v58  ;;  %6993 = vst.msk [vmem:[%s11670_s28 + $0x18] sm:$0xff] %vm4018_vm3, %v8534_v32  ;;  %v8569_v18 = vadd.f32 %v11433_v54, %v11658_v28 }
 0x8e8   : > { %6990 = vst.msk [vmem:[%s11670_s28] sm:$0xff] %vm4018_vm3, %v8532_v43  ;;  %6991 = vst.msk [vmem:[%s11670_s28 + $0x8] sm:$0xff] %vm4018_vm3, %v8536_v36  ;;  %v8571_v36 = vadd.f32 %v11658_v28, %v11435_v22 }
 0x8ea   : > { %v8469_v59 = vpop.f32.mrb[16].mxu1 }
 0x8eb   : > { %v8538_v45 = vadd.f32 %v8537_v17, %v8469_v59  ;;  %v6847_v2 = vpop.f32.mrb[17].mxu1 }
 0x8ec   : > { %v8540_v57 = vadd.f32 %v8539_v7, %v6847_v2  ;;  %v8470_v21 = vpop.f32.mrb[18].mxu1  ;;  %v8573_v7 = vadd.f32 %v11437_v10, %v11658_v28 }
 0x8ed   : > { %6996 = vst.msk [vmem:[%s11670_s28 + $0x30] sm:$0xff] %vm4018_vm3, %v8538_v45  ;;  %v8542_v50 = vadd.f32 %v8541_v49, %v8470_v21  ;;  %v6850_v3 = vpop.f32.mrb[19].mxu1  ;;  %v8575_v45 = vadd.f32 %v11658_v28, %v11439_v41 }
 0x8ee   : > { %6994 = vst.msk [vmem:[%s11670_s28 + $0x20] sm:$0xff] %vm4018_vm3, %v8540_v57  ;;  %v8544_v37 = vadd.f32 %v8543_v52, %v6850_v3 }
 0x8ef   : > { %6997 = vst.msk [vmem:[%s11670_s28 + $0x38] sm:$0xff] %vm4018_vm3, %v8542_v50 }
 0x8f0   : > { %6995 = vst.msk [vmem:[%s11670_s28 + $0x28] sm:$0xff] %vm4018_vm3, %v8544_v37 }
 0x8f2   : > { %v8473_v35 = vpop.f32.mrb[20].mxu1 }
 0x8f3   : > { %v8546_v44 = vadd.f32 %v8545_v56, %v8473_v35  ;;  %v6863_v27 = vpop.f32.mrb[21].mxu1 }
 0x8f4   : > { %v8548_v30 = vadd.f32 %v8547_v13, %v6863_v27  ;;  %v8474_v40 = vpop.f32.mrb[22].mxu1 }
 0x8f5   : > { %7000 = vst.msk [vmem:[%s11670_s28 + $0x50] sm:$0xff] %vm4018_vm3, %v8546_v44  ;;  %v8550_v38 = vadd.f32 %v8549_v0, %v8474_v40  ;;  %v6866_v6 = vpop.f32.mrb[23].mxu1 }
 0x8f6   : > { %6998 = vst.msk [vmem:[%s11670_s28 + $0x40] sm:$0xff] %vm4018_vm3, %v8548_v30  ;;  %v8552_v23 = vadd.f32 %v8551_v20, %v6866_v6 }
 0x8f7   : > { %7001 = vst.msk [vmem:[%s11670_s28 + $0x58] sm:$0xff] %vm4018_vm3, %v8550_v38 }
 0x8f8   : > { %6999 = vst.msk [vmem:[%s11670_s28 + $0x48] sm:$0xff] %vm4018_vm3, %v8552_v23 }
 0x8fa   : > { %v8477_v61 = vpop.f32.mrb[24].mxu1 }
 0x8fb   : > { %v8554_v19 = vadd.f32 %v8553_v12, %v8477_v61  ;;  %v6879_v15 = vpop.f32.mrb[25].mxu1 }
 0x8fc   : > { %v8556_v48 = vadd.f32 %v8555_v51, %v6879_v15  ;;  %v8478_v46 = vpop.f32.mrb[26].mxu1 }
 0x8fd   : > { %7004 = vst.msk [vmem:[%s11670_s28 + $0x70] sm:$0xff] %vm4018_vm3, %v8554_v19  ;;  %v8558_v8 = vadd.f32 %v8557_v53, %v8478_v46  ;;  %v6882_v11 = vpop.f32.mrb[27].mxu1 }
 0x8fe   : > { %7002 = vst.msk [vmem:[%s11670_s28 + $0x60] sm:$0xff] %vm4018_vm3, %v8556_v48  ;;  %v8560_v14 = vadd.f32 %v8559_v1, %v6882_v11 }
 0x8ff   : > { %7005 = vst.msk [vmem:[%s11670_s28 + $0x78] sm:$0xff] %vm4018_vm3, %v8558_v8 }
 0x900   : > { %7003 = vst.msk [vmem:[%s11670_s28 + $0x68] sm:$0xff] %vm4018_vm3, %v8560_v14 }
 0x902   : > { %v8481_v31 = vpop.f32.mrb[28].mxu1 }
 0x903   : > { %v8562_v55 = vadd.f32 %v8561_v29, %v8481_v31  ;;  %v6895_v42 = vpop.f32.mrb[29].mxu1 }
 0x904   : > { %v8564_v9 = vadd.f32 %v8563_v33, %v6895_v42  ;;  %v8482_v58 = vpop.f32.mrb[30].mxu1 }
 0x905   : > { %7008 = vst.msk [vmem:[%s11670_s28 + $0x90] sm:$0xff] %vm4018_vm3, %v8562_v55  ;;  %v8566_v32 = vadd.f32 %v8565_v34, %v8482_v58  ;;  %v6898_v4 = vpop.f32.mrb[31].mxu1 }
 0x906   : > { %7006 = vst.msk [vmem:[%s11670_s28 + $0x80] sm:$0xff] %vm4018_vm3, %v8564_v9  ;;  %v8568_v43 = vadd.f32 %v8567_v39, %v6898_v4 }
 0x907   : > { %7009 = vst.msk [vmem:[%s11670_s28 + $0x98] sm:$0xff] %vm4018_vm3, %v8566_v32 }
 0x908   : > { %7007 = vst.msk [vmem:[%s11670_s28 + $0x88] sm:$0xff] %vm4018_vm3, %v8568_v43 }
 0x90a   : > { %v8485_v17 = vpop.f32.mrb[32].mxu1 }
 0x90b   : > { %v8570_v59 = vadd.f32 %v8569_v18, %v8485_v17  ;;  %v6911_v49 = vpop.f32.mrb[33].mxu1 }
 0x90c   : > { %v8572_v2 = vadd.f32 %v8571_v36, %v6911_v49  ;;  %v8486_v52 = vpop.f32.mrb[34].mxu1 }
 0x90d   : > { %7012 = vst.msk [vmem:[%s11670_s28 + $0xb0] sm:$0xff] %vm4018_vm3, %v8570_v59  ;;  %v8574_v57 = vadd.f32 %v8573_v7, %v8486_v52  ;;  %v6914_v54 = vpop.f32.mrb[35].mxu1 }
 0x90e   : > { %7010 = vst.msk [vmem:[%s11670_s28 + $0xa0] sm:$0xff] %vm4018_vm3, %v8572_v2  ;;  %v8576_v22 = vadd.f32 %v8575_v45, %v6914_v54 }
 0x90f   : > { %7013 = vst.msk [vmem:[%s11670_s28 + $0xb8] sm:$0xff] %vm4018_vm3, %v8574_v57 }
 0x910   : > { %7011 = vst.msk [vmem:[%s11670_s28 + $0xa8] sm:$0xff] %vm4018_vm3, %v8576_v22 }
 0x912   : > { %v8489_v10 = vpop.f32.mrb[4].mxu1 }
 0x913   : > { %v6936_v21 = vadd.f32 %v8489_v10, %v11658_v28  ;;  %v6927_v41 = vpop.f32.mrb[5].mxu1 }
 0x914   : > { %v6928_v50 = vadd.f32 %v11658_v28, %v6927_v41  ;;  %v8490_v3 = vpop.f32.mrb[6].mxu1 }
 0x915   : > { %7016 = vst.msk [vmem:[%s11670_s28 + $0xd0] sm:$0xff] %vm4018_vm3, %v6936_v21  ;;  %v6939_v37 = vadd.f32 %v8490_v3, %v11658_v28  ;;  %v6930_v56 = vpop.f32.mrb[7].mxu1 }
 0x916   : > { %7014 = vst.msk [vmem:[%s11670_s28 + $0xc0] sm:$0xff] %vm4018_vm3, %v6928_v50  ;;  %v6931_v13 = vadd.f32 %v11658_v28, %v6930_v56 }
 0x917   : > { %7017 = vst.msk [vmem:[%s11670_s28 + $0xd8] sm:$0xff] %vm4018_vm3, %v6939_v37 }
 0x918   : > { %7015 = vst.msk [vmem:[%s11670_s28 + $0xc8] sm:$0xff] %vm4018_vm3, %v6931_v13 }
 0x91a   : > { %v8493_v35 = vpop.f32.mrb[8].mxu1 }
 0x91b   : > { %v6952_v26 = vadd.f32 %v8493_v35, %v11658_v28  ;;  %v6943_v0 = vpop.f32.mrb[9].mxu1 }
 0x91c   : > { %v6944_v44 = vadd.f32 %v11658_v28, %v6943_v0  ;;  %v8494_v27 = vpop.f32.mrb[10].mxu1 }
 0x91d   : > { %7020 = vst.msk [vmem:[%s11670_s28 + $0xf0] sm:$0xff] %vm4018_vm3, %v6952_v26  ;;  %v6955_v62 = vadd.f32 %v8494_v27, %v11658_v28  ;;  %v6946_v20 = vpop.f32.mrb[11].mxu1 }
 0x91e   : > { %7018 = vst.msk [vmem:[%s11670_s28 + $0xe0] sm:$0xff] %vm4018_vm3, %v6944_v44  ;;  %v6947_v30 = vadd.f32 %v11658_v28, %v6946_v20 }
 0x91f   : > { %7021 = vst.msk [vmem:[%s11670_s28 + $0xf8] sm:$0xff] %vm4018_vm3, %v6955_v62 }
 0x920   : > { %7019 = vst.msk [vmem:[%s11670_s28 + $0xe8] sm:$0xff] %vm4018_vm3, %v6947_v30 }
 0x921 PF: > { %s20_s13 = sadd.s32 1, %s9408_s13  }
 0x922   : > { %p17_p4 = scmp.ge.s32.totalorder %s20_s13, 4  }
 0x924   :  { %19 = sbr.rel (!%p17_p4) target bundleno = 1 (0x1), region = 113 }

</bundles_post_ra>
